<compile_context>
chip_gen: v6e
topology: v6e:2x2x1
jax: 0.10.0
libtpu: 0.0.40
codegen_flags: <defaults>
</compile_context>

<pallas_src>
import functools

import jax
import jax.numpy as jnp
from jax import lax
from jax.experimental import pallas as pl
from jax.experimental.pallas import tpu as pltpu


# ----------------------------- Pallas kernel -----------------------------
def _appnp_gcn_kernel(a_ref, dinv_ref, x_ref, w1_ref, b1_ref, w2_ref, b2_ref,
                      wfc_ref, bfc_ref, out_ref,
                      acc_ref, z_ref, ah0_ref,
                      *, alpha, tm, tk, n_pad, f_pad, h_pad, c_pad, c_real,
                      a_resident):
    p = pl.program_id(0)            # phase: 0=GCN1, 1=GCN2, 2..K+1=APPNP
    i = pl.program_id(1)            # node row block
    k = pl.program_id(2)            # contraction block over nodes
    nk = pl.num_programs(2)
    p_last = pl.num_programs(0) - 1

    rows = pl.ds(pl.multiple_of(i * tm, tm), tm)
    kcols = pl.ds(pl.multiple_of(k * tk, tk), tk)

    # (A+I) tile: sliced from the resident VMEM copy, or a streamed (tm,tk)
    # block.  int8 -> bf16 cast is exact (small integer multiplicities).
    if a_resident:
        a_blk = a_ref[rows, kcols]
    else:
        a_blk = a_ref[...]
    a_blk = a_blk.astype(jnp.bfloat16)

    # ---- reset the f32 accumulator at the start of each contraction ----
    @pl.when(k == 0)
    def _():
        acc_ref[...] = jnp.zeros_like(acc_ref)

    # ---- accumulate (A+I)_tile @ rhs_tile on the MXU (bf16 in, f32 acc) ----
    # Phase 0 rhs is (D^-1/2 x); later phases read the D^-1/2-scaled z, so the
    # column scaling of A_hat is already folded in.
    @pl.when(p == 0)
    def _():
        xs = x_ref[kcols, :]                                      # (tk, f_pad)
        acc_ref[:, 0:f_pad] += jnp.dot(a_blk, xs,
                                       preferred_element_type=jnp.float32)

    @pl.when(p != 0)
    def _():
        rslot = (p + 1) % 2         # slot written by the previous phase
        zoff = pl.multiple_of(rslot * n_pad + k * tk, tk)
        zs = z_ref[pl.ds(zoff, tk), :]                            # (tk, h_pad)
        acc_ref[:, 0:h_pad] += jnp.dot(a_blk, zs,
                                       preferred_element_type=jnp.float32)

    # ---- phase epilogue once the contraction over nodes is complete ----
    @pl.when(k == nk - 1)
    def _():
        wslot = p % 2
        woff = pl.multiple_of(wslot * n_pad + i * tm, tm)
        wrows = pl.ds(woff, tm)
        dv = dinv_ref[...]          # (tm, 1) f32, D^-1/2 for this row block

        def head(z_rows_f32):       # linear head + masked log_softmax
            logits = jnp.dot(z_rows_f32.astype(jnp.bfloat16), wfc_ref[...],
                             preferred_element_type=jnp.float32) + bfc_ref[...]
            lane = lax.broadcasted_iota(jnp.int32, (tm, c_pad), 1)
            logits = jnp.where(lane < c_real, logits, -1e30)      # mask pad
            m = jnp.max(logits, axis=1, keepdims=True)
            s = logits - m
            lse = jnp.log(jnp.sum(jnp.exp(s), axis=1, keepdims=True))
            out_ref[...] = s - lse

        @pl.when(p == 0)            # GCNConv 1
        def _():
            ax = dv * acc_ref[:, 0:f_pad]                         # (A_hat x)[rows]
            h = jnp.dot(ax.astype(jnp.bfloat16), w1_ref[...],
                        preferred_element_type=jnp.float32) + b1_ref[...]
            h = jnp.maximum(h, 0.0)
            z_ref[wrows, :] = (dv * h).astype(jnp.bfloat16)       # store D^-1/2 h1

        @pl.when(p == 1)            # GCNConv 2 (+ hoisted alpha*h2 term)
        def _():
            ah = dv * acc_ref[:, 0:h_pad]                         # (A_hat h1)[rows]
            h = jnp.dot(ah.astype(jnp.bfloat16), w2_ref[...],
                        preferred_element_type=jnp.float32) + b2_ref[...]
            h = jnp.maximum(h, 0.0)
            z_ref[wrows, :] = (dv * h).astype(jnp.bfloat16)       # store D^-1/2 h2
            ah0_ref[rows, :] = (alpha * h).astype(jnp.bfloat16)

            @pl.when(p == p_last)   # only taken when K == 0
            def _():
                head(h)

        @pl.when(p >= 2)            # APPNP propagation step
        def _():
            zn = ((1.0 - alpha) * (dv * acc_ref[:, 0:h_pad])
                  + ah0_ref[rows, :].astype(jnp.float32))
            z_ref[wrows, :] = (dv * zn).astype(jnp.bfloat16)

            @pl.when(p == p_last)
            def _():
                head(zn)


# ----------------------------- wrapper -----------------------------------
def _round_up(v, m):
    return ((v + m - 1) // m) * m


def _pick_tiles(n):
    if n <= 128:
        return 128, 128
    if n <= 256:
        return 256, 256
    return 256, 512                 # (tm, tk): wider contraction tile


def _vmem_budget_bytes():
    try:
        cap = int(pltpu.get_tpu_info().vmem_capacity_bytes)
    except Exception:
        cap = 64 * 1024 * 1024      # conservative (v7x-sized) fallback
    return int(cap * 0.85)


def appnp_gcn_forward(adj, dinv, x, params, *, alpha, K, force_stream=False):
    """adj = dense (A + I) edge-multiplicity matrix (small non-negative ints),
    dinv = D^-1/2 vector, so A_hat = dinv[:,None] * adj * dinv[None,:]."""
    n, f_in = x.shape
    hidden = params["w1"].shape[1]
    classes = params["wfc"].shape[1]

    tm, tk = _pick_tiles(n)
    n_pad = _round_up(n, tk)        # tk is a multiple of tm
    f_pad = _round_up(f_in, 128)
    h_pad = _round_up(hidden, 128)
    c_pad = _round_up(classes, 128)
    w_acc = max(f_pad, h_pad)

    def pad2(m_, r, c):
        return jnp.pad(m_, ((0, r - m_.shape[0]), (0, c - m_.shape[1])))

    # int8 (A+I): exact values, half the HBM/VMEM bytes of bf16.
    a_i8 = pad2(adj.astype(jnp.float32), n_pad, n_pad).astype(jnp.int8)
    dinv_col = jnp.pad(dinv.astype(jnp.float32), (0, n_pad - n)).reshape(n_pad, 1)
    # x pre-scaled by D^-1/2 once; phase 0 then contracts (A+I) @ (D^-1/2 x).
    x_s = pad2(dinv[:, None] * x.astype(jnp.float32), n_pad, f_pad).astype(jnp.bfloat16)
    w1 = pad2(params["w1"], f_pad, h_pad).astype(jnp.bfloat16)
    b1 = pad2(params["b1"], 1, h_pad).astype(jnp.float32)
    w2 = pad2(params["w2"], h_pad, h_pad).astype(jnp.bfloat16)
    b2 = pad2(params["b2"], 1, h_pad).astype(jnp.float32)
    wfc = pad2(params["wfc"], h_pad, c_pad).astype(jnp.bfloat16)
    bfc = pad2(params["bfc"], 1, c_pad).astype(jnp.float32)

    # ---- generation-aware VMEM budget; decide if (A+I) can stay resident ----
    budget = _vmem_budget_bytes()
    fixed_bytes = (
        2 * (f_pad * h_pad + h_pad * h_pad + h_pad * c_pad)   # bf16 weights
        + 4 * 8 * (2 * h_pad + c_pad)                         # biases (sublane pad)
        + 4 * tm * w_acc                                      # f32 accumulator
        + 2 * 4 * tm * c_pad                                  # streamed out (2 bufs)
        + 2 * 4 * tm * 128)                                   # dinv blocks (lane pad)
    nodes_bytes = (2 * n_pad * f_pad                          # x (bf16, resident)
                   + 2 * 2 * n_pad * h_pad                    # z ping-pong (bf16)
                   + 2 * n_pad * h_pad)                       # alpha*h2 (bf16)
    a_resident = (not force_stream) and (
        fixed_bytes + nodes_bytes + n_pad * n_pad <= budget)
    need = fixed_bytes + nodes_bytes + (n_pad * n_pad if a_resident
                                        else 3 * tm * tk)
    if need > budget:
        # TODO(synk): stream x / the z ping-pong (or use a sparse A format) for
        # graphs whose node-resident buffers exceed VMEM instead of erroring.
        raise ValueError(f"graph too large for fused kernel: need {need} B VMEM, "
                         f"budget {budget} B")

    n_phases = 2 + K                # GCN1, GCN2, K APPNP steps
    grid = (n_phases, n_pad // tm, n_pad // tk)

    kernel = functools.partial(
        _appnp_gcn_kernel, alpha=float(alpha), tm=tm, tk=tk, n_pad=n_pad,
        f_pad=f_pad, h_pad=h_pad, c_pad=c_pad, c_real=classes,
        a_resident=a_resident)

    vmem_res = pl.BlockSpec(memory_space=pltpu.MemorySpace.VMEM)  # resident

    def run(a_spec):
        return pl.pallas_call(
            kernel,
            out_shape=jax.ShapeDtypeStruct((n_pad, c_pad), jnp.float32),
            grid_spec=pltpu.PrefetchScalarGridSpec(
                num_scalar_prefetch=0,
                grid=grid,
                in_specs=[
                    a_spec,                                         # (A+I) int8
                    pl.BlockSpec((tm, 1), lambda p, i, k: (i, 0)),  # D^-1/2 rows
                    vmem_res,                                       # D^-1/2 x
                    vmem_res, vmem_res,                             # W1, b1
                    vmem_res, vmem_res,                             # W2, b2
                    vmem_res, vmem_res,                             # Wfc, bfc
                ],
                out_specs=pl.BlockSpec((tm, c_pad), lambda p, i, k: (i, 0)),
                scratch_shapes=[
                    pltpu.VMEM((tm, w_acc), jnp.float32),           # f32 acc
                    pltpu.VMEM((2 * n_pad, h_pad), jnp.bfloat16),   # z ping-pong
                    pltpu.VMEM((n_pad, h_pad), jnp.bfloat16),       # alpha * h2
                ]),
            compiler_params=pltpu.CompilerParams(
                dimension_semantics=("arbitrary", "arbitrary", "arbitrary"),
                vmem_limit_bytes=budget),
        )(a_i8, dinv_col, x_s, w1, b1, w2, b2, wfc, bfc)

    if a_resident:
        out_pad = run(vmem_res)     # single HBM pass over A, resident in VMEM
    else:
        stream_idx = lambda p, i, k: (i, k)
        try:
            # Triple-buffer A so DMA stays ahead across the long phase epilogue.
            out_pad = run(pl.BlockSpec((tm, tk), stream_idx,
                                       pipeline_mode=pl.Buffered(3)))
            out_pad.block_until_ready()
        except Exception:
            out_pad = run(pl.BlockSpec((tm, tk), stream_idx))

    return out_pad[:n, :classes]


# ------------------------- plain-JAX glue ---------------------------------
def gcn_norm_parts(edge_index, num_nodes):
    """Dense (A+I) multiplicity matrix and D^-1/2 (PyG gcn_norm semantics:
    add remaining self-loops, symmetric normalization)."""
    src, dst = edge_index[0], edge_index[1]
    A = jnp.zeros((num_nodes, num_nodes), jnp.float32).at[dst, src].add(1.0)
    diag = jnp.diagonal(A)
    adj = A + jnp.diag(jnp.where(diag > 0.0, 0.0, 1.0))
    deg = adj.sum(axis=1)
    dinv = jnp.where(deg > 0.0, lax.rsqrt(deg), 0.0)
    return adj, dinv


def glorot(key, shape):
    limit = (6.0 / (shape[0] + shape[1])) ** 0.5
    return jax.random.uniform(key, shape, jnp.float32, -limit, limit)


def init_params(key, in_features, hidden_dim, num_classes):
    k1, k2, k3, k4 = jax.random.split(key, 4)
    return {
        "w1": glorot(k1, (in_features, hidden_dim)),
        "b1": jnp.zeros((1, hidden_dim), jnp.float32),
        "w2": glorot(k2, (hidden_dim, hidden_dim)),
        "b2": jnp.zeros((1, hidden_dim), jnp.float32),
        "wfc": glorot(k3, (hidden_dim, num_classes)),
        "bfc": jax.random.uniform(k4, (1, num_classes), jnp.float32, -0.1, 0.1),
    }


def reference_forward(adj, dinv, x, params, *, alpha, K):
    a_hat = dinv[:, None] * adj * dinv[None, :]
    h = jnp.maximum(a_hat @ (x @ params["w1"]) + params["b1"], 0.0)
    h = jnp.maximum(a_hat @ (h @ params["w2"]) + params["b2"], 0.0)
    z = h
    for _ in range(K):
        z = (1.0 - alpha) * (a_hat @ z) + alpha * h
    logits = z @ params["wfc"] + params["bfc"]
    return jax.nn.log_softmax(logits, axis=1)


# ----------------------------- demo / test --------------------------------
if __name__ == "__main__":
    ALPHA, K = 0.1, 3
    root = jax.random.PRNGKey(0)

    def run_case(seed_key, n, f_in, hidden, classes, num_edges, force_stream):
        kx, ks, kd, kp = jax.random.split(seed_key, 4)
        x = jax.random.normal(kx, (n, f_in), jnp.float32)
        src = jax.random.randint(ks, (num_edges,), 0, n)
        dst = jax.random.randint(kd, (num_edges,), 0, n)
        edge_index = jnp.stack([src, dst], axis=0)           # [2, E]

        adj, dinv = gcn_norm_parts(edge_index, n)
        params = init_params(kp, f_in, hidden, classes)

        out = appnp_gcn_forward(adj, dinv, x, params, alpha=ALPHA, K=K,
                                force_stream=force_stream)
        out = jax.block_until_ready(out)

        assert out.shape == (n, classes)
        # rows of log_softmax must sum to 1 in prob space
        assert jnp.allclose(jnp.sum(jnp.exp(out), axis=1), 1.0, atol=1e-4)
        # loose check vs f32 reference (bf16 MXU operands => small deviations)
        ref = reference_forward(adj, dinv, x, params, alpha=ALPHA, K=K)
        err = float(jnp.max(jnp.abs(out - ref)))
        assert err < 0.15, f"max abs error vs reference: {err}"

    k1, k2 = jax.random.split(root)
    # Small graph: (A+I) held resident in VMEM (single HBM pass over A).
    run_case(k1, 200, 48, 64, 10, 600, force_stream=False)
    # Larger graph forced down the streamed-A path (multi row/k tiles, tk=512).
    run_case(k2, 600, 48, 64, 10, 2400, force_stream=True)
    print("KERNEL_OK")
</pallas_src>

<mosaic_0001>
module attributes {stable_mosaic.version = 11 : i64} {
  func.func @_appnp_gcn_kernel(%arg0: i32, %arg1: i32, %arg2: i32, %arg3: memref<256x256xi8, #tpu.memory_space<vmem>>, %arg4: memref<256x1xf32, #tpu.memory_space<vmem>>, %arg5: memref<256x128xbf16, #tpu.memory_space<vmem>>, %arg6: memref<128x128xbf16, #tpu.memory_space<vmem>>, %arg7: memref<1x128xf32, #tpu.memory_space<vmem>>, %arg8: memref<128x128xbf16, #tpu.memory_space<vmem>>, %arg9: memref<1x128xf32, #tpu.memory_space<vmem>>, %arg10: memref<128x128xbf16, #tpu.memory_space<vmem>>, %arg11: memref<1x128xf32, #tpu.memory_space<vmem>>, %arg12: memref<256x128xf32, #tpu.memory_space<vmem>>, %arg13: memref<256x128xf32, #tpu.memory_space<vmem>>, %arg14: memref<512x128xbf16, #tpu.memory_space<vmem>>, %arg15: memref<256x128xbf16, #tpu.memory_space<vmem>>) attributes {dimension_semantics = [#tpu.dimension_semantics<arbitrary>, #tpu.dimension_semantics<arbitrary>, #tpu.dimension_semantics<arbitrary>], iteration_bounds = array<i64: 5, 1, 1>, scalar_prefetch = 0 : i64, scratch_operands = 3 : i64, tpu.core_type = #tpu.core_type<tc>, window_params = [{pipeline_mode = #tpu.pipeline_mode<synchronous>, transform_indices = @transform_0, window_bounds = array<i64: 256, 256>}, {transform_indices = @transform_1, window_bounds = array<i64: 256, 1>}, {pipeline_mode = #tpu.pipeline_mode<synchronous>, transform_indices = @transform_2, window_bounds = array<i64: 256, 128>}, {pipeline_mode = #tpu.pipeline_mode<synchronous>, transform_indices = @transform_3, window_bounds = array<i64: 128, 128>}, {pipeline_mode = #tpu.pipeline_mode<synchronous>, transform_indices = @transform_4, window_bounds = array<i64: 1, 128>}, {pipeline_mode = #tpu.pipeline_mode<synchronous>, transform_indices = @transform_5, window_bounds = array<i64: 128, 128>}, {pipeline_mode = #tpu.pipeline_mode<synchronous>, transform_indices = @transform_6, window_bounds = array<i64: 1, 128>}, {pipeline_mode = #tpu.pipeline_mode<synchronous>, transform_indices = @transform_7, window_bounds = array<i64: 128, 128>}, {pipeline_mode = #tpu.pipeline_mode<synchronous>, transform_indices = @transform_8, window_bounds = array<i64: 1, 128>}, {transform_indices = @transform_9, window_bounds = array<i64: 256, 128>}]} {
    %c256_i32 = arith.constant 256 : i32
    %0 = arith.muli %arg1, %c256_i32 : i32
    %1 = tpu.assume_multiple %0, 256 : i32
    %c256_i32_0 = arith.constant 256 : i32
    %2 = arith.muli %arg2, %c256_i32_0 : i32
    %3 = tpu.assume_multiple %2, 256 : i32
    %4 = arith.index_cast %1 : i32 to index
    %5 = arith.index_cast %3 : i32 to index
    %6 = vector.load %arg3[%4, %5] : memref<256x256xi8, #tpu.memory_space<vmem>>, vector<256x256xi8>
    %7 = arith.sitofp %6 : vector<256x256xi8> to vector<256x256xbf16>
    %c0_i32 = arith.constant 0 : i32
    %8 = arith.cmpi eq, %arg2, %c0_i32 : i32
    %9 = arith.extui %8 : i1 to i32
    %c0_i32_1 = arith.constant 0 : i32
    %10 = arith.cmpi ne, %9, %c0_i32_1 : i32
    scf.if %10 {
      %cst = arith.constant 0.000000e+00 : f32
      %20 = vector.broadcast %cst : f32 to vector<256x128xf32>
      %c0 = arith.constant 0 : index
      %c0_8 = arith.constant 0 : index
      %21 = vector.load %arg13[%c0, %c0_8] : memref<256x128xf32, #tpu.memory_space<vmem>>, vector<256x128xf32>
      tpu.vector_store %arg13[%c0, %c0_8], %20 {strides = array<i32>} : memref<256x128xf32, #tpu.memory_space<vmem>>, vector<256x128xf32>,
    } else {
    }
    %c0_i32_2 = arith.constant 0 : i32
    %11 = arith.cmpi eq, %arg0, %c0_i32_2 : i32
    %12 = arith.extui %11 : i1 to i32
    %c0_i32_3 = arith.constant 0 : i32
    %13 = arith.cmpi ne, %12, %c0_i32_3 : i32
    scf.if %13 {
      %20 = arith.index_cast %3 : i32 to index
      %c0 = arith.constant 0 : index
      %21 = vector.load %arg5[%20, %c0] : memref<256x128xbf16, #tpu.memory_space<vmem>>, vector<256x128xbf16>
      %c0_8 = arith.constant 0 : index
      %c0_9 = arith.constant 0 : index
      %22 = vector.load %arg13[%c0_8, %c0_9] : memref<256x128xf32, #tpu.memory_space<vmem>>, vector<256x128xf32>
      %cst = arith.constant dense<0.000000e+00> : vector<256x128xf32>
      %23 = tpu.matmul %7, %21, %cst {dimension_numbers = #tpu.dot_dimension_numbers<[1], [0], [0], [1], [0, 0, 1, 1], [], []>} : vector<256x256xbf16>, vector<256x128xbf16>, vector<256x128xf32> -> vector<256x128xf32>
      %24 = arith.addf %22, %23 : vector<256x128xf32>
      %c0_10 = arith.constant 0 : index
      %c0_11 = arith.constant 0 : index
      %25 = vector.load %arg13[%c0_10, %c0_11] : memref<256x128xf32, #tpu.memory_space<vmem>>, vector<256x128xf32>
      tpu.vector_store %arg13[%c0_10, %c0_11], %24 {strides = array<i32>} : memref<256x128xf32, #tpu.memory_space<vmem>>, vector<256x128xf32>,
    } else {
    }
    %c0_i32_4 = arith.constant 0 : i32
    %14 = arith.cmpi ne, %arg0, %c0_i32_4 : i32
    %15 = arith.extui %14 : i1 to i32
    %c0_i32_5 = arith.constant 0 : i32
    %16 = arith.cmpi ne, %15, %c0_i32_5 : i32
    scf.if %16 {
      %c1_i32 = arith.constant 1 : i32
      %20 = arith.addi %arg0, %c1_i32 : i32
      %c2_i32 = arith.constant 2 : i32
      %c0_i32_8 = arith.constant 0 : i32
      %21 = arith.cmpi eq, %c2_i32, %c0_i32_8 : i32
      %c1_i32_9 = arith.constant 1 : i32
      %22 = arith.select %21, %c1_i32_9, %c2_i32 : i32
      %23 = arith.remsi %20, %22 : i32
      %c0_i32_10 = arith.constant 0 : i32
      %24 = arith.cmpi ne, %23, %c0_i32_10 : i32
      %c0_i32_11 = arith.constant 0 : i32
      %25 = arith.cmpi slt, %23, %c0_i32_11 : i32
      %c0_i32_12 = arith.constant 0 : i32
      %26 = arith.cmpi slt, %22, %c0_i32_12 : i32
      %27 = arith.xori %25, %26 : i1
      %28 = arith.andi %27, %24 : i1
      %29 = arith.addi %23, %22 : i32
      %30 = arith.select %28, %29, %23 : i32
      %c256_i32_13 = arith.constant 256 : i32
      %31 = arith.muli %30, %c256_i32_13 : i32
      %c256_i32_14 = arith.constant 256 : i32
      %32 = arith.muli %arg2, %c256_i32_14 : i32
      %33 = arith.addi %31, %32 : i32
      %34 = tpu.assume_multiple %33, 256 : i32
      %35 = arith.index_cast %34 : i32 to index
      %c0 = arith.constant 0 : index
      %36 = vector.load %arg14[%35, %c0] : memref<512x128xbf16, #tpu.memory_space<vmem>>, vector<256x128xbf16>
      %c0_15 = arith.constant 0 : index
      %c0_16 = arith.constant 0 : index
      %37 = vector.load %arg13[%c0_15, %c0_16] : memref<256x128xf32, #tpu.memory_space<vmem>>, vector<256x128xf32>
      %cst = arith.constant dense<0.000000e+00> : vector<256x128xf32>
      %38 = tpu.matmul %7, %36, %cst {dimension_numbers = #tpu.dot_dimension_numbers<[1], [0], [0], [1], [0, 0, 1, 1], [], []>} : vector<256x256xbf16>, vector<256x128xbf16>, vector<256x128xf32> -> vector<256x128xf32>
      %39 = arith.addf %37, %38 : vector<256x128xf32>
      %c0_17 = arith.constant 0 : index
      %c0_18 = arith.constant 0 : index
      %40 = vector.load %arg13[%c0_17, %c0_18] : memref<256x128xf32, #tpu.memory_space<vmem>>, vector<256x128xf32>
      tpu.vector_store %arg13[%c0_17, %c0_18], %39 {strides = array<i32>} : memref<256x128xf32, #tpu.memory_space<vmem>>, vector<256x128xf32>,
    } else {
    }
    %c0_i32_6 = arith.constant 0 : i32
    %17 = arith.cmpi eq, %arg2, %c0_i32_6 : i32
    %18 = arith.extui %17 : i1 to i32
    %c0_i32_7 = arith.constant 0 : i32
    %19 = arith.cmpi ne, %18, %c0_i32_7 : i32
    scf.if %19 {
      %c2_i32 = arith.constant 2 : i32
      %c0_i32_8 = arith.constant 0 : i32
      %20 = arith.cmpi eq, %c2_i32, %c0_i32_8 : i32
      %c1_i32 = arith.constant 1 : i32
      %21 = arith.select %20, %c1_i32, %c2_i32 : i32
      %22 = arith.remsi %arg0, %21 : i32
      %c0_i32_9 = arith.constant 0 : i32
      %23 = arith.cmpi ne, %22, %c0_i32_9 : i32
      %c0_i32_10 = arith.constant 0 : i32
      %24 = arith.cmpi slt, %22, %c0_i32_10 : i32
      %c0_i32_11 = arith.constant 0 : i32
      %25 = arith.cmpi slt, %21, %c0_i32_11 : i32
      %26 = arith.xori %24, %25 : i1
      %27 = arith.andi %26, %23 : i1
      %28 = arith.addi %22, %21 : i32
      %29 = arith.select %27, %28, %22 : i32
      %c256_i32_12 = arith.constant 256 : i32
      %30 = arith.muli %29, %c256_i32_12 : i32
      %c256_i32_13 = arith.constant 256 : i32
      %31 = arith.muli %arg1, %c256_i32_13 : i32
      %32 = arith.addi %30, %31 : i32
      %33 = tpu.assume_multiple %32, 256 : i32
      %c0 = arith.constant 0 : index
      %c0_14 = arith.constant 0 : index
      %34 = vector.load %arg4[%c0, %c0_14] : memref<256x1xf32, #tpu.memory_space<vmem>>, vector<256x1xf32>
      %c0_i32_15 = arith.constant 0 : i32
      %35 = arith.cmpi eq, %arg0, %c0_i32_15 : i32
      %36 = arith.extui %35 : i1 to i32
      %c0_i32_16 = arith.constant 0 : i32
      %37 = arith.cmpi ne, %36, %c0_i32_16 : i32
      scf.if %37 {
        %c0_21 = arith.constant 0 : index
        %c0_22 = arith.constant 0 : index
        %44 = vector.load %arg13[%c0_21, %c0_22] : memref<256x128xf32, #tpu.memory_space<vmem>>, vector<256x128xf32>
        %45 = vector.broadcast %34 : vector<256x1xf32> to vector<256x128xf32>
        %46 = arith.mulf %45, %44 : vector<256x128xf32>
        %47 = arith.truncf %46 : vector<256x128xf32> to vector<256x128xbf16>
        %c0_23 = arith.constant 0 : index
        %c0_24 = arith.constant 0 : index
        %48 = vector.load %arg6[%c0_23, %c0_24] : memref<128x128xbf16, #tpu.memory_space<vmem>>, vector<128x128xbf16>
        %cst = arith.constant dense<0.000000e+00> : vector<256x128xf32>
        %49 = tpu.matmul %47, %48, %cst {dimension_numbers = #tpu.dot_dimension_numbers<[1], [0], [0], [1], [0, 0, 1, 1], [], []>} : vector<256x128xbf16>, vector<128x128xbf16>, vector<256x128xf32> -> vector<256x128xf32>
        %c0_25 = arith.constant 0 : index
        %c0_26 = arith.constant 0 : index
        %50 = vector.load %arg7[%c0_25, %c0_26] : memref<1x128xf32, #tpu.memory_space<vmem>>, vector<1x128xf32>
        %51 = vector.broadcast %50 : vector<1x128xf32> to vector<256x128xf32>
        %52 = arith.addf %49, %51 : vector<256x128xf32>
        %cst_27 = arith.constant 0.000000e+00 : f32
        %53 = vector.broadcast %cst_27 : f32 to vector<256x128xf32>
        %54 = arith.maximumf %52, %53 : vector<256x128xf32>
        %55 = vector.broadcast %34 : vector<256x1xf32> to vector<256x128xf32>
        %56 = arith.mulf %55, %54 : vector<256x128xf32>
        %57 = arith.truncf %56 : vector<256x128xf32> to vector<256x128xbf16>
        %58 = arith.index_cast %33 : i32 to index
        %c0_28 = arith.constant 0 : index
        %59 = vector.load %arg14[%58, %c0_28] : memref<512x128xbf16, #tpu.memory_space<vmem>>, vector<256x128xbf16>
        tpu.vector_store %arg14[%58, %c0_28], %57 {strides = array<i32>} : memref<512x128xbf16, #tpu.memory_space<vmem>>, vector<256x128xbf16>,
      } else {
      }
      %c1_i32_17 = arith.constant 1 : i32
      %38 = arith.cmpi eq, %arg0, %c1_i32_17 : i32
      %39 = arith.extui %38 : i1 to i32
      %c0_i32_18 = arith.constant 0 : i32
      %40 = arith.cmpi ne, %39, %c0_i32_18 : i32
      scf.if %40 {
        %c0_21 = arith.constant 0 : index
        %c0_22 = arith.constant 0 : index
        %44 = vector.load %arg13[%c0_21, %c0_22] : memref<256x128xf32, #tpu.memory_space<vmem>>, vector<256x128xf32>
        %45 = vector.broadcast %34 : vector<256x1xf32> to vector<256x128xf32>
        %46 = arith.mulf %45, %44 : vector<256x128xf32>
        %47 = arith.truncf %46 : vector<256x128xf32> to vector<256x128xbf16>
        %c0_23 = arith.constant 0 : index
        %c0_24 = arith.constant 0 : index
        %48 = vector.load %arg8[%c0_23, %c0_24] : memref<128x128xbf16, #tpu.memory_space<vmem>>, vector<128x128xbf16>
        %cst = arith.constant dense<0.000000e+00> : vector<256x128xf32>
        %49 = tpu.matmul %47, %48, %cst {dimension_numbers = #tpu.dot_dimension_numbers<[1], [0], [0], [1], [0, 0, 1, 1], [], []>} : vector<256x128xbf16>, vector<128x128xbf16>, vector<256x128xf32> -> vector<256x128xf32>
        %c0_25 = arith.constant 0 : index
        %c0_26 = arith.constant 0 : index
        %50 = vector.load %arg9[%c0_25, %c0_26] : memref<1x128xf32, #tpu.memory_space<vmem>>, vector<1x128xf32>
        %51 = vector.broadcast %50 : vector<1x128xf32> to vector<256x128xf32>
        %52 = arith.addf %49, %51 : vector<256x128xf32>
        %cst_27 = arith.constant 0.000000e+00 : f32
        %53 = vector.broadcast %cst_27 : f32 to vector<256x128xf32>
        %54 = arith.maximumf %52, %53 : vector<256x128xf32>
        %55 = vector.broadcast %34 : vector<256x1xf32> to vector<256x128xf32>
        %56 = arith.mulf %55, %54 : vector<256x128xf32>
        %57 = arith.truncf %56 : vector<256x128xf32> to vector<256x128xbf16>
        %58 = arith.index_cast %33 : i32 to index
        %c0_28 = arith.constant 0 : index
        %59 = vector.load %arg14[%58, %c0_28] : memref<512x128xbf16, #tpu.memory_space<vmem>>, vector<256x128xbf16>
        tpu.vector_store %arg14[%58, %c0_28], %57 {strides = array<i32>} : memref<512x128xbf16, #tpu.memory_space<vmem>>, vector<256x128xbf16>,
        %cst_29 = arith.constant 1.000000e-01 : f32
        %60 = vector.broadcast %cst_29 : f32 to vector<256x128xf32>
        %61 = arith.mulf %60, %54 : vector<256x128xf32>
        %62 = arith.truncf %61 : vector<256x128xf32> to vector<256x128xbf16>
        %63 = arith.index_cast %1 : i32 to index
        %c0_30 = arith.constant 0 : index
        %64 = vector.load %arg15[%63, %c0_30] : memref<256x128xbf16, #tpu.memory_space<vmem>>, vector<256x128xbf16>
        tpu.vector_store %arg15[%63, %c0_30], %62 {strides = array<i32>} : memref<256x128xbf16, #tpu.memory_space<vmem>>, vector<256x128xbf16>,
        %c4_i32 = arith.constant 4 : i32
        %65 = arith.cmpi eq, %arg0, %c4_i32 : i32
        %66 = arith.extui %65 : i1 to i32
        %c0_i32_31 = arith.constant 0 : i32
        %67 = arith.cmpi ne, %66, %c0_i32_31 : i32
        scf.if %67 {
          %68 = arith.truncf %54 : vector<256x128xf32> to vector<256x128xbf16>
          %c0_32 = arith.constant 0 : index
          %c0_33 = arith.constant 0 : index
          %69 = vector.load %arg10[%c0_32, %c0_33] : memref<128x128xbf16, #tpu.memory_space<vmem>>, vector<128x128xbf16>
          %cst_34 = arith.constant dense<0.000000e+00> : vector<256x128xf32>
          %70 = tpu.matmul %68, %69, %cst_34 {dimension_numbers = #tpu.dot_dimension_numbers<[1], [0], [0], [1], [0, 0, 1, 1], [], []>} : vector<256x128xbf16>, vector<128x128xbf16>, vector<256x128xf32> -> vector<256x128xf32>
          %c0_35 = arith.constant 0 : index
          %c0_36 = arith.constant 0 : index
          %71 = vector.load %arg11[%c0_35, %c0_36] : memref<1x128xf32, #tpu.memory_space<vmem>>, vector<1x128xf32>
          %72 = vector.broadcast %71 : vector<1x128xf32> to vector<256x128xf32>
          %73 = arith.addf %70, %72 : vector<256x128xf32>
          %74 = tpu.iota {dimensions = array<i32: 1>} : vector<256x128xi32>
          %c10_i32 = arith.constant 10 : i32
          %75 = vector.broadcast %c10_i32 : i32 to vector<256x128xi32>
          %76 = arith.cmpi slt, %74, %75 : vector<256x128xi32>
          %cst_37 = arith.constant -1.000000e+30 : f32
          %77 = vector.broadcast %cst_37 : f32 to vector<256x128xf32>
          %78 = arith.select %76, %73, %77 : vector<256x128xi1>, vector<256x128xf32>
          %cst_38 = arith.constant dense<0xFF800000> : vector<256xf32>
          %79 = vector.multi_reduction <maximumf>, %78, %cst_38 [1] : vector<256x128xf32> to vector<256xf32>
          %80 = vector.shape_cast %79 : vector<256xf32> to vector<256x1xf32>
          %81 = vector.broadcast %80 : vector<256x1xf32> to vector<256x128xf32>
          %82 = arith.subf %78, %81 : vector<256x128xf32>
          %83 = math.exp %82 : vector<256x128xf32>
          %cst_39 = arith.constant dense<0.000000e+00> : vector<256xf32>
          %84 = vector.multi_reduction <add>, %83, %cst_39 [1] : vector<256x128xf32> to vector<256xf32>
          %85 = vector.shape_cast %84 : vector<256xf32> to vector<256x1xf32>
          %86 = math.log %85 : vector<256x1xf32>
          %87 = vector.broadcast %86 : vector<256x1xf32> to vector<256x128xf32>
          %88 = arith.subf %82, %87 : vector<256x128xf32>
          %c0_40 = arith.constant 0 : index
          %c0_41 = arith.constant 0 : index
          %89 = vector.load %arg12[%c0_40, %c0_41] : memref<256x128xf32, #tpu.memory_space<vmem>>, vector<256x128xf32>
          tpu.vector_store %arg12[%c0_40, %c0_41], %88 {strides = array<i32>} : memref<256x128xf32, #tpu.memory_space<vmem>>, vector<256x128xf32>,
        } else {
        }
      } else {
      }
      %c2_i32_19 = arith.constant 2 : i32
      %41 = arith.cmpi sge, %arg0, %c2_i32_19 : i32
      %42 = arith.extui %41 : i1 to i32
      %c0_i32_20 = arith.constant 0 : i32
      %43 = arith.cmpi ne, %42, %c0_i32_20 : i32
      scf.if %43 {
        %c0_21 = arith.constant 0 : index
        %c0_22 = arith.constant 0 : index
        %44 = vector.load %arg13[%c0_21, %c0_22] : memref<256x128xf32, #tpu.memory_space<vmem>>, vector<256x128xf32>
        %45 = vector.broadcast %34 : vector<256x1xf32> to vector<256x128xf32>
        %46 = arith.mulf %45, %44 : vector<256x128xf32>
        %cst = arith.constant 0.899999976 : f32
        %47 = vector.broadcast %cst : f32 to vector<256x128xf32>
        %48 = arith.mulf %47, %46 : vector<256x128xf32>
        %49 = arith.index_cast %1 : i32 to index
        %c0_23 = arith.constant 0 : index
        %50 = vector.load %arg15[%49, %c0_23] : memref<256x128xbf16, #tpu.memory_space<vmem>>, vector<256x128xbf16>
        %51 = arith.extf %50 : vector<256x128xbf16> to vector<256x128xf32>
        %52 = arith.addf %48, %51 : vector<256x128xf32>
        %53 = vector.broadcast %34 : vector<256x1xf32> to vector<256x128xf32>
        %54 = arith.mulf %53, %52 : vector<256x128xf32>
        %55 = arith.truncf %54 : vector<256x128xf32> to vector<256x128xbf16>
        %56 = arith.index_cast %33 : i32 to index
        %c0_24 = arith.constant 0 : index
        %57 = vector.load %arg14[%56, %c0_24] : memref<512x128xbf16, #tpu.memory_space<vmem>>, vector<256x128xbf16>
        tpu.vector_store %arg14[%56, %c0_24], %55 {strides = array<i32>} : memref<512x128xbf16, #tpu.memory_space<vmem>>, vector<256x128xbf16>,
        %c4_i32 = arith.constant 4 : i32
        %58 = arith.cmpi eq, %arg0, %c4_i32 : i32
        %59 = arith.extui %58 : i1 to i32
        %c0_i32_25 = arith.constant 0 : i32
        %60 = arith.cmpi ne, %59, %c0_i32_25 : i32
        scf.if %60 {
          %61 = arith.truncf %52 : vector<256x128xf32> to vector<256x128xbf16>
          %c0_26 = arith.constant 0 : index
          %c0_27 = arith.constant 0 : index
          %62 = vector.load %arg10[%c0_26, %c0_27] : memref<128x128xbf16, #tpu.memory_space<vmem>>, vector<128x128xbf16>
          %cst_28 = arith.constant dense<0.000000e+00> : vector<256x128xf32>
          %63 = tpu.matmul %61, %62, %cst_28 {dimension_numbers = #tpu.dot_dimension_numbers<[1], [0], [0], [1], [0, 0, 1, 1], [], []>} : vector<256x128xbf16>, vector<128x128xbf16>, vector<256x128xf32> -> vector<256x128xf32>
          %c0_29 = arith.constant 0 : index
          %c0_30 = arith.constant 0 : index
          %64 = vector.load %arg11[%c0_29, %c0_30] : memref<1x128xf32, #tpu.memory_space<vmem>>, vector<1x128xf32>
          %65 = vector.broadcast %64 : vector<1x128xf32> to vector<256x128xf32>
          %66 = arith.addf %63, %65 : vector<256x128xf32>
          %67 = tpu.iota {dimensions = array<i32: 1>} : vector<256x128xi32>
          %c10_i32 = arith.constant 10 : i32
          %68 = vector.broadcast %c10_i32 : i32 to vector<256x128xi32>
          %69 = arith.cmpi slt, %67, %68 : vector<256x128xi32>
          %cst_31 = arith.constant -1.000000e+30 : f32
          %70 = vector.broadcast %cst_31 : f32 to vector<256x128xf32>
          %71 = arith.select %69, %66, %70 : vector<256x128xi1>, vector<256x128xf32>
          %cst_32 = arith.constant dense<0xFF800000> : vector<256xf32>
          %72 = vector.multi_reduction <maximumf>, %71, %cst_32 [1] : vector<256x128xf32> to vector<256xf32>
          %73 = vector.shape_cast %72 : vector<256xf32> to vector<256x1xf32>
          %74 = vector.broadcast %73 : vector<256x1xf32> to vector<256x128xf32>
          %75 = arith.subf %71, %74 : vector<256x128xf32>
          %76 = math.exp %75 : vector<256x128xf32>
          %cst_33 = arith.constant dense<0.000000e+00> : vector<256xf32>
          %77 = vector.multi_reduction <add>, %76, %cst_33 [1] : vector<256x128xf32> to vector<256xf32>
          %78 = vector.shape_cast %77 : vector<256xf32> to vector<256x1xf32>
          %79 = math.log %78 : vector<256x1xf32>
          %80 = vector.broadcast %79 : vector<256x1xf32> to vector<256x128xf32>
          %81 = arith.subf %75, %80 : vector<256x128xf32>
          %c0_34 = arith.constant 0 : index
          %c0_35 = arith.constant 0 : index
          %82 = vector.load %arg12[%c0_34, %c0_35] : memref<256x128xf32, #tpu.memory_space<vmem>>, vector<256x128xf32>
          tpu.vector_store %arg12[%c0_34, %c0_35], %81 {strides = array<i32>} : memref<256x128xf32, #tpu.memory_space<vmem>>, vector<256x128xf32>,
        } else {
        }
      } else {
      }
    } else {
    }
    return
  }
  func.func @transform_0(%arg0: i32, %arg1: i32, %arg2: i32) -> (i32, i32) {
    %c0_i32 = arith.constant 0 : i32
    %c0_i32_0 = arith.constant 0 : i32
    %c0_i32_1 = arith.constant 0 : i32
    return %c0_i32, %c0_i32_0 : i32, i32
  }
  func.func @transform_1(%arg0: i32, %arg1: i32, %arg2: i32) -> (i32, i32) {
    %c0_i32 = arith.constant 0 : i32
    %c0_i32_0 = arith.constant 0 : i32
    return %arg1, %c0_i32 : i32, i32
  }
  func.func @transform_2(%arg0: i32, %arg1: i32, %arg2: i32) -> (i32, i32) {
    %c0_i32 = arith.constant 0 : i32
    %c0_i32_0 = arith.constant 0 : i32
    %c0_i32_1 = arith.constant 0 : i32
    return %c0_i32, %c0_i32_0 : i32, i32
  }
  func.func @transform_3(%arg0: i32, %arg1: i32, %arg2: i32) -> (i32, i32) {
    %c0_i32 = arith.constant 0 : i32
    %c0_i32_0 = arith.constant 0 : i32
    %c0_i32_1 = arith.constant 0 : i32
    return %c0_i32, %c0_i32_0 : i32, i32
  }
  func.func @transform_4(%arg0: i32, %arg1: i32, %arg2: i32) -> (i32, i32) {
    %c0_i32 = arith.constant 0 : i32
    %c0_i32_0 = arith.constant 0 : i32
    %c0_i32_1 = arith.constant 0 : i32
    return %c0_i32, %c0_i32_0 : i32, i32
  }
  func.func @transform_5(%arg0: i32, %arg1: i32, %arg2: i32) -> (i32, i32) {
    %c0_i32 = arith.constant 0 : i32
    %c0_i32_0 = arith.constant 0 : i32
    %c0_i32_1 = arith.constant 0 : i32
    return %c0_i32, %c0_i32_0 : i32, i32
  }
  func.func @transform_6(%arg0: i32, %arg1: i32, %arg2: i32) -> (i32, i32) {
    %c0_i32 = arith.constant 0 : i32
    %c0_i32_0 = arith.constant 0 : i32
    %c0_i32_1 = arith.constant 0 : i32
    return %c0_i32, %c0_i32_0 : i32, i32
  }
  func.func @transform_7(%arg0: i32, %arg1: i32, %arg2: i32) -> (i32, i32) {
    %c0_i32 = arith.constant 0 : i32
    %c0_i32_0 = arith.constant 0 : i32
    %c0_i32_1 = arith.constant 0 : i32
    return %c0_i32, %c0_i32_0 : i32, i32
  }
  func.func @transform_8(%arg0: i32, %arg1: i32, %arg2: i32) -> (i32, i32) {
    %c0_i32 = arith.constant 0 : i32
    %c0_i32_0 = arith.constant 0 : i32
    %c0_i32_1 = arith.constant 0 : i32
    return %c0_i32, %c0_i32_0 : i32, i32
  }
  func.func @transform_9(%arg0: i32, %arg1: i32, %arg2: i32) -> (i32, i32) {
    %c0_i32 = arith.constant 0 : i32
    %c0_i32_0 = arith.constant 0 : i32
    return %arg1, %c0_i32 : i32, i32
  }
}

</mosaic_0001>

<bundles_post_ra>
// kernel: tpu_custom_call.1
= control target key start
LH: loop header
LB: loop body
LE: loop exit
PB: predicated region body
PF: predicated region fallthrough
CT: control target
= control target key end

     0   :  { %14 = vsyncpa [#allocation6], 0  ;;  %s9000_s0 = inlined_call_operand.vmem [shape: s8[256,256], index: 0, kind: input, shape index: {}]   ;;  %s9001_s1 = inlined_call_operand.vmem [shape: f32[256,1], index: 1, kind: input, shape index: {}]   ;;  %s9002_s2 = inlined_call_operand.vmem [shape: bf16[256,128], index: 2, kind: input, shape index: {}]   ;;  %s9003_s3 = inlined_call_operand.hbm [shape: bf16[128,128], index: 3, kind: input, shape index: {}]   ;;  %s9004_s4 = inlined_call_operand.vmem [shape: f32[1,128], index: 4, kind: input, shape index: {}]   ;;  %s9005_s5 = inlined_call_operand.hbm [shape: bf16[128,128], index: 5, kind: input, shape index: {}]   ;;  %s9006_s6 = inlined_call_operand.vmem [shape: f32[1,128], index: 6, kind: input, shape index: {}]   ;;  %s9007_s7 = inlined_call_operand.hbm [shape: bf16[128,128], index: 7, kind: input, shape index: {}]   ;;  %s9008_s8 = inlined_call_operand.vmem [shape: f32[1,128], index: 8, kind: input, shape index: {}]   ;;  %s9009_s9 = inlined_call_operand.hbm [shape: f32[256,128], index: 9, kind: output, shape index: {}]  }
   0x1   :  { %15 = vsyncpa [#allocation9], 0 }
   0x2   :  { %16 = vsyncpa [#allocation7], 0  ;;  %s6909_s30 = smov 0   ;;  %s6911_s10 = smov 0  }
   0x3   :  { %s6913_s11 = smov 0  }
   0x4 LB: > { %s4889_s12 = sadd.s32 4294967295, %s6845_s11   ;;  %p4890_p0 = scmp.ge.s32.totalorder %s6845_s11, 1  ;;  %s6845_s11 = sphi %s6913_s11, %s22_s11   ;;  %s6841_s10 = sphi %s6911_s10, %s9116_s10   ;;  %s6837_s30 = sphi %s6909_s30, %s9115_s30  }
   0x5   : > { %p266_p1 = scmp.lt.s32.totalorder %s6845_s11, 6  ;;  %p6929_p2 = scmp.eq.s32.totalorder %s4889_s12, 0 }
   0x6   : > { %s6847_s15 = smov [#allocation8]   ;;  %s41_s18 = sadd.s32 1, %s6841_s10 }
   0x7   : > { %p6933_p3 = pnand %p4890_p0, %p266_p1  ;;  %s309_s16 = sshll.u32 %s6847_s15, 4  ;;  %s310_s16 = int_to_ptr.vmem [resolvable:$true] %s309_s16 }
   0x8   : > { %p6946_p6 = scmp.ge.s32.totalorder %s41_s18, 5  ;;  %s6848_s20 = smov [#allocation5]  }
   0x9   : > { %p6329_p4 = pneg %p6933_p3  ;;  %s293_s21 = sshll.u32 %s6848_s20, 4  ;;  %s294_s21 = int_to_ptr.vmem [resolvable:$true] %s293_s21 }
   0xa   : > { %s6720_s22 = scalar_lea.vmem %s310_s16, 1024  ;;  %p6728_p11 = scmp.lt.s32.totalorder %s310_s16, %s310_s16 }
   0xb   : > { %p6941_p5 = pnand %p6929_p2, %p6329_p4  ;;  %p6721_p8 = scmp.ne.s32.totalorder %s310_s16, %s6720_s22 }
   0xc   : > { %p6729_p12 = scmp.lt.s32.totalorder %s6720_s22, %s6720_s22 }
   0xd   : > { %p6711_p7 = pneg %p6941_p5 }
   0xe   : > { %p6730_p13 = por %p6729_p12, %p6728_p11 }
   0xf   : > { %p6723_p9 = pnand %p6721_p8, %p6711_p7 }
  0x11   : > { %p6724_p10 = pneg %p6723_p9 }
  0x13   : > { %p6731_p0 = pnand %p6730_p13, %p6724_p10 }
  0x15   : > { %6734 = shalt.err (!%p6731_p0)
}
  0x16   : > { %s6849_s23 = smov 64   ;;  %s6850_s24 = smov 4  }
  0x17   : > { %6335 = dma.hbm_to_vmem [thread:$0]  (!%p6941_p5), %s9005_s5, 1024, %s310_s16, [#allocation9], %s6849_s23, %s6849_s23, %s6850_s24  }
  0x18   : > { %s9118_s18 = smov (%p6946_p6, %s41_s18), 0  ;;  %s6746_s27 = scalar_lea.vmem %s294_s21, 1024 }
  0x19   : > { %p6747_p1 = scmp.ne.s32.totalorder %s294_s21, %s6746_s27  ;;  %p6754_p9 = scmp.lt.s32.totalorder %s294_s21, %s294_s21 }
  0x1a   : > { %p6755_p10 = scmp.lt.s32.totalorder %s6746_s27, %s6746_s27 }
  0x1b   : > { %p6749_p4 = pnand %p6747_p1, %p6711_p7 }
  0x1c   : > { %p6756_p11 = por %p6755_p10, %p6754_p9 }
  0x1d   : > { %p6750_p8 = pneg %p6749_p4 }
  0x1f   : > { %p6757_p12 = pnand %p6756_p11, %p6750_p8 }
  0x21   : > { %6760 = shalt.err (!%p6757_p12)
}
  0x22   : > { %6332 = dma.hbm_to_vmem [thread:$0]  (!%p6941_p5), %s9003_s3, 1024, %s294_s21, [#allocation6], %s6849_s23, %s6849_s23, %s6850_s24  }
  0x23   : > { %s6851_s15 = smov [#allocation10]  }
  0x24   : > { %s325_s16 = sshll.u32 %s6851_s15, 4  ;;  %s326_s16 = int_to_ptr.vmem [resolvable:$true] %s325_s16 }
  0x25   : > { %s6772_s19 = scalar_lea.vmem %s326_s16, 1024  ;;  %p6780_p1 = scmp.lt.s32.totalorder %s326_s16, %s326_s16 }
  0x26   : > { %p6773_p6 = scmp.ne.s32.totalorder %s326_s16, %s6772_s19  ;;  %p6781_p4 = scmp.lt.s32.totalorder %s6772_s19, %s6772_s19 }
  0x28   : > { %p6775_p13 = pnand %p6773_p6, %p6711_p7  ;;  %p6782_p8 = por %p6781_p4, %p6780_p1 }
  0x2a   : > { %p6776_p0 = pneg %p6775_p13 }
  0x2c   : > { %p6783_p9 = pnand %p6782_p8, %p6776_p0 }
  0x2e   : > { %6786 = shalt.err (!%p6783_p9)
}
  0x2f   : > { %6338 = dma.hbm_to_vmem [thread:$0]  (!%p6941_p5), %s9007_s7, 1024, %s326_s16, [#allocation9], %s6849_s23, %s6849_s23, %s6850_s24  }
  0x30   : > { %344 = sbr.rel (%p6933_p3) target bundleno = 2926 (0xb6e), region = 56 }
  0x35   : > { %6824 = dma.done.wait (%p6929_p2), [#allocation6], 1024  }
  0x36   : > { %6826 = vsyncadd (%p6929_p2), [#allocation6], 4294966272 }
  0x37   : > { %6828 = dma.done.wait (%p6929_p2), [#allocation9], 2048  }
  0x38   : > { %6830 = vsyncadd (%p6929_p2), [#allocation9], 4294965248  ;;  %v6852_v0 = vmov 0.0   ;;  %v7002_v1 = vld [vmem:[%s9000_s0] sm:$0xff]  ;;  %v7007_v2 = vld [vmem:[%s9000_s0 + $0x8] sm:$0xff]  ;;  %p4899_p2 = scmp.ne.s32.totalorder %s6837_s30, 0 }
  0x39   : > { %453 = vst [vmem:[#allocation2 + $0xb0] sm:$0xff] %v6852_v0  ;;  %454 = vst [vmem:[#allocation2] sm:$0xff] %v6852_v0  ;;  %v7012_v3 = vld [vmem:[%s9000_s0 + $0x10] sm:$0xff]  ;;  %v7017_v4 = vld [vmem:[%s9000_s0 + $0x18] sm:$0xff]  ;;  %v417_v7 = vunpack.c.l.s8.bf16 %v7002_v1  ;;  %v418_v8 = vunpack.c.l.s8.bf16 %v7007_v2  ;;  %v419_v9 = vunpack.c.h.s8.bf16 %v7002_v1  ;;  %v420_v10 = vunpack.c.h.s8.bf16 %v7007_v2 }
  0x3a   : > { %455 = vst [vmem:[#allocation2 + $0xd8] sm:$0xff] %v6852_v0  ;;  %456 = vst [vmem:[#allocation2 + $0x18] sm:$0xff] %v6852_v0  ;;  %v7022_v5 = vld [vmem:[%s9000_s0 + $0x20] sm:$0xff]  ;;  %v7027_v6 = vld [vmem:[%s9000_s0 + $0x28] sm:$0xff]  ;;  %v421_v14 = vunpack.c.l.s8.bf16 %v7012_v3  ;;  %v422_v15 = vunpack.c.l.s8.bf16 %v7017_v4  ;;  %v423_v16 = vunpack.c.h.s8.bf16 %v7012_v3  ;;  %v424_v17 = vunpack.c.h.s8.bf16 %v7017_v4 }
  0x3b   : > { %457 = vst [vmem:[#allocation2 + $0x50] sm:$0xff] %v6852_v0  ;;  %458 = vst [vmem:[#allocation2 + $0x68] sm:$0xff] %v6852_v0  ;;  %v7036_v11 = vld [vmem:[%s9000_s0 + $0x30] sm:$0xff]  ;;  %v7041_v12 = vld [vmem:[%s9000_s0 + $0x38] sm:$0xff]  ;;  %v425_v21 = vunpack.c.l.s8.bf16 %v7022_v5  ;;  %v426_v22 = vunpack.c.l.s8.bf16 %v7027_v6  ;;  %v427_v23 = vunpack.c.h.s8.bf16 %v7022_v5  ;;  %v428_v24 = vunpack.c.h.s8.bf16 %v7027_v6 }
  0x3c   : > { %459 = vst [vmem:[#allocation2 + $0x30] sm:$0xff] %v6852_v0  ;;  %460 = vst [vmem:[#allocation2 + $0x48] sm:$0xff] %v6852_v0  ;;  %v7046_v13 = vld [vmem:[%s9000_s0 + $0x40] sm:$0xff]  ;;  %v7055_v18 = vld [vmem:[%s9000_s0 + $0x48] sm:$0xff]  ;;  %v9015_v27 = vunpack.c.l.s8.bf16 %v7036_v11  ;;  %v9017_v28 = vunpack.c.l.s8.bf16 %v7041_v12  ;;  %v9010_v29 = vunpack.c.h.s8.bf16 %v7036_v11  ;;  %v9013_v30 = vunpack.c.h.s8.bf16 %v7041_v12 }
  0x3d   : > { %461 = vst [vmem:[#allocation2 + $0x80] sm:$0xff] %v6852_v0  ;;  %462 = vst [vmem:[#allocation2 + $0x88] sm:$0xff] %v6852_v0  ;;  %v7060_v19 = vld [vmem:[%s9000_s0 + $0x50] sm:$0xff]  ;;  %v7065_v20 = vld [vmem:[%s9000_s0 + $0x58] sm:$0xff]  ;;  %v433_v33 = vunpack.c.l.s8.bf16 %v7046_v13  ;;  %v434_v34 = vunpack.c.l.s8.bf16 %v7055_v18  ;;  %v435_v35 = vunpack.c.h.s8.bf16 %v7046_v13  ;;  %v436_v36 = vunpack.c.h.s8.bf16 %v7055_v18 }
  0x3e   : > { %463 = vst [vmem:[#allocation2 + $0xe8] sm:$0xff] %v6852_v0  ;;  %464 = vst [vmem:[#allocation2 + $0xb8] sm:$0xff] %v6852_v0  ;;  %v7074_v25 = vld [vmem:[%s9000_s0 + $0x60] sm:$0xff]  ;;  %v7079_v26 = vld [vmem:[%s9000_s0 + $0x68] sm:$0xff]  ;;  %v437_v37 = vunpack.c.l.s8.bf16 %v7060_v19  ;;  %v438_v38 = vunpack.c.l.s8.bf16 %v7065_v20  ;;  %v439_v39 = vunpack.c.h.s8.bf16 %v7060_v19  ;;  %v440_v40 = vunpack.c.h.s8.bf16 %v7065_v20 }
  0x3f   : > { %465 = vst [vmem:[#allocation2 + $0x60] sm:$0xff] %v6852_v0  ;;  %466 = vst [vmem:[#allocation2 + $0xf0] sm:$0xff] %v6852_v0  ;;  %v7088_v31 = vld [vmem:[%s9000_s0 + $0x70] sm:$0xff]  ;;  %v7093_v32 = vld [vmem:[%s9000_s0 + $0x78] sm:$0xff]  ;;  %v441_v41 = vunpack.c.l.s8.bf16 %v7074_v25  ;;  %v442_v42 = vunpack.c.l.s8.bf16 %v7079_v26  ;;  %v443_v43 = vunpack.c.h.s8.bf16 %v7074_v25  ;;  %v444_v44 = vunpack.c.h.s8.bf16 %v7079_v26 }
  0x40   : > { %467 = vst [vmem:[#allocation2 + $0x8] sm:$0xff] %v6852_v0  ;;  %468 = vst [vmem:[#allocation2 + $0x78] sm:$0xff] %v6852_v0  ;;  %v9014_v45 = vunpack.c.l.s8.bf16 %v7088_v31  ;;  %v9016_v46 = vunpack.c.l.s8.bf16 %v7093_v32  ;;  %v9011_v47 = vunpack.c.h.s8.bf16 %v7088_v31  ;;  %v9012_v48 = vunpack.c.h.s8.bf16 %v7093_v32 }
  0x41   : > { %469 = vst [vmem:[#allocation2 + $0x38] sm:$0xff] %v6852_v0  ;;  %470 = vst [vmem:[#allocation2 + $0x58] sm:$0xff] %v6852_v0 }
  0x42   : > { %471 = vst [vmem:[#allocation2 + $0x40] sm:$0xff] %v6852_v0  ;;  %472 = vst [vmem:[#allocation2 + $0xc8] sm:$0xff] %v6852_v0 }
  0x43   : > { %473 = vst [vmem:[#allocation2 + $0xe0] sm:$0xff] %v6852_v0  ;;  %474 = vst [vmem:[#allocation2 + $0x90] sm:$0xff] %v6852_v0 }
  0x44   : > { %475 = vst [vmem:[#allocation2 + $0x70] sm:$0xff] %v6852_v0  ;;  %476 = vst [vmem:[#allocation2 + $0xc0] sm:$0xff] %v6852_v0  ;;  %488 = sbr.rel (%p4899_p2) target bundleno = 366 (0x16e), region = 76 }
  0x45   : > { %477 = vst [vmem:[#allocation2 + $0xa8] sm:$0xff] %v6852_v0  ;;  %478 = vst [vmem:[#allocation2 + $0xd0] sm:$0xff] %v6852_v0 }
  0x46   : > { %479 = vst [vmem:[#allocation2 + $0x10] sm:$0xff] %v6852_v0  ;;  %480 = vst [vmem:[#allocation2 + $0x28] sm:$0xff] %v6852_v0 }
  0x47   : > { %481 = vst [vmem:[#allocation2 + $0xa0] sm:$0xff] %v6852_v0  ;;  %482 = vst [vmem:[#allocation2 + $0xf8] sm:$0xff] %v6852_v0 }
  0x48   : > { %483 = vst [vmem:[#allocation2 + $0x20] sm:$0xff] %v6852_v0  ;;  %484 = vst [vmem:[#allocation2 + $0x98] sm:$0xff] %v6852_v0 }
  0x49   : > { %v6383_v49 = vld [vmem:[%s9002_s2 + $0x78] sm:$0xff]   ;;  %685 = vmatprep.mubr.bf16.mxu0 %v418_v8  ;;  %749 = vmatprep.mubr.bf16.mxu1 %v434_v34  ;;  %v6385_v51 = vld [vmem:[%s9002_s2 + $0x70] sm:$0xff]   ;;  %v6387_v53 = vld [vmem:[%s9002_s2 + $0x68] sm:$0xff]  }
  0x4a   : > { %v6384_v50 = vld [vmem:[%s9002_s2 + $0x38] sm:$0xff]   ;;  %5705 = vmatprep.subr.bf16.mxu0 %v6383_v49  ;;  %6217 = vmatprep.subr.bf16.mxu1 %v6383_v49  ;;  %v6386_v52 = vld [vmem:[%s9002_s2 + $0x30] sm:$0xff]   ;;  %v6388_v54 = vld [vmem:[%s9002_s2 + $0x28] sm:$0xff]  }
  0x4b   : > { %5706 = vmatpush3.bf16.msra.mxu0 %v6384_v50  ;;  %6225 = vmatpush3.bf16.msra.mxu1 %v6384_v50  ;;  %v6389_v55 = vld [vmem:[%s9002_s2 + $0x60] sm:$0xff]   ;;  %v6391_v57 = vld [vmem:[%s9002_s2 + $0x58] sm:$0xff]   ;;  %v6393_v59 = vld [vmem:[%s9002_s2 + $0x50] sm:$0xff]  }
  0x4c   : > { %5707 = vmatprep.subr.bf16.mxu0 %v6385_v51  ;;  %6218 = vmatprep.subr.bf16.mxu1 %v6385_v51  ;;  %v6390_v56 = vld [vmem:[%s9002_s2 + $0x20] sm:$0xff]   ;;  %v6392_v58 = vld [vmem:[%s9002_s2 + $0x18] sm:$0xff]   ;;  %v6394_v60 = vld [vmem:[%s9002_s2 + $0x10] sm:$0xff]  }
  0x4d   : > { %v6395_v61 = vld [vmem:[%s9002_s2 + $0x48] sm:$0xff]   ;;  %v6397_v63 = vld [vmem:[%s9002_s2 + $0x40] sm:$0xff]   ;;  %v525_v51 = vld [vmem:[#allocation2 + $0xb0] sm:$0xff] }
  0x4e   : > { %v6396_v62 = vld [vmem:[%s9002_s2 + $0x8] sm:$0xff]   ;;  %v6398_v0 = vld [vmem:[%s9002_s2] sm:$0xff]  }
  0x4f   : > { %5708 = vmatpush3.bf16.msra.mxu0 %v6386_v52  ;;  %6226 = vmatpush3.bf16.msra.mxu1 %v6386_v52 }
  0x50   : > { %5709 = vmatprep.subr.bf16.mxu0 %v6387_v53  ;;  %6219 = vmatprep.subr.bf16.mxu1 %v6387_v53  ;;  %v541_v53 = vld [vmem:[#allocation2 + $0x38] sm:$0xff] }
  0x53   : > { %5710 = vmatpush3.bf16.msra.mxu0 %v6388_v54  ;;  %6227 = vmatpush3.bf16.msra.mxu1 %v6388_v54 }
  0x54   : > { %5711 = vmatprep.subr.bf16.mxu0 %v6389_v55  ;;  %6220 = vmatprep.subr.bf16.mxu1 %v6389_v55 }
  0x57   : > { %5712 = vmatpush3.bf16.msra.mxu0 %v6390_v56  ;;  %6228 = vmatpush3.bf16.msra.mxu1 %v6390_v56 }
  0x58   : > { %5713 = vmatprep.subr.bf16.mxu0 %v6391_v57  ;;  %6221 = vmatprep.subr.bf16.mxu1 %v6391_v57 }
  0x5b   : > { %5714 = vmatpush3.bf16.msra.mxu0 %v6392_v58  ;;  %6229 = vmatpush3.bf16.msra.mxu1 %v6392_v58 }
  0x5c   : > { %5715 = vmatprep.subr.bf16.mxu0 %v6393_v59  ;;  %6222 = vmatprep.subr.bf16.mxu1 %v6393_v59 }
  0x5f   : > { %5716 = vmatpush3.bf16.msra.mxu0 %v6394_v60  ;;  %6230 = vmatpush3.bf16.msra.mxu1 %v6394_v60 }
  0x60   : > { %5717 = vmatprep.subr.bf16.mxu0 %v6395_v61  ;;  %6223 = vmatprep.subr.bf16.mxu1 %v6395_v61  ;;  %v526_v61 = vld [vmem:[#allocation2] sm:$0xff] }
  0x63   : > { %5718 = vmatpush3.bf16.msra.mxu0 %v6396_v62  ;;  %6231 = vmatpush3.bf16.msra.mxu1 %v6396_v62 }
  0x64   : > { %5719 = vmatprep.subr.bf16.mxu0 %v6397_v63  ;;  %6224 = vmatprep.subr.bf16.mxu1 %v6397_v63  ;;  %v542_v63 = vld [vmem:[#allocation2 + $0x58] sm:$0xff] }
  0x67   : > { %5720 = vmatpush3.bf16.msra.mxu0 %v6398_v0  ;;  %6232 = vmatpush3.bf16.msra.mxu1 %v6398_v0 }
  0x6a   : > { %686 = vmatmul.mubr.bf16.vlgmr.msra.gmra.mxu0 %v417_v7  ;;  %750 = vmatmul.mubr.bf16.vlgmr.msra.gmra.mxu1 %v433_v33 }
  0x6b   : > { %693 = vmatprep.mubr.bf16.mxu0 %v420_v10  ;;  %757 = vmatprep.mubr.bf16.mxu1 %v436_v36 }
  0x72   : > { %694 = vmatmul.mubr.bf16.gmra.mxu0 %v419_v9  ;;  %758 = vmatmul.mubr.bf16.gmra.mxu1 %v435_v35 }
  0x73   : > { %701 = vmatprep.mubr.bf16.mxu0 %v422_v15  ;;  %765 = vmatprep.mubr.bf16.mxu1 %v438_v38 }
  0x7a   : > { %702 = vmatmul.mubr.bf16.gmra.mxu0 %v421_v14  ;;  %766 = vmatmul.mubr.bf16.gmra.mxu1 %v437_v37 }
  0x7b   : > { %709 = vmatprep.mubr.bf16.mxu0 %v424_v17  ;;  %773 = vmatprep.mubr.bf16.mxu1 %v440_v40 }
  0x82   : > { %710 = vmatmul.mubr.bf16.gmra.mxu0 %v423_v16  ;;  %774 = vmatmul.mubr.bf16.gmra.mxu1 %v439_v39 }
  0x83   : > { %717 = vmatprep.mubr.bf16.mxu0 %v426_v22  ;;  %781 = vmatprep.mubr.bf16.mxu1 %v442_v42 }
  0x8a   : > { %718 = vmatmul.mubr.bf16.gmra.mxu0 %v425_v21  ;;  %782 = vmatmul.mubr.bf16.gmra.mxu1 %v441_v41 }
  0x8b   : > { %725 = vmatprep.mubr.bf16.mxu0 %v428_v24  ;;  %789 = vmatprep.mubr.bf16.mxu1 %v444_v44 }
  0x92   : > { %726 = vmatmul.mubr.bf16.gmra.mxu0 %v427_v23  ;;  %790 = vmatmul.mubr.bf16.gmra.mxu1 %v443_v43 }
  0x93   : > { %733 = vmatprep.mubr.bf16.mxu0 %v9017_v28  ;;  %797 = vmatprep.mubr.bf16.mxu1 %v9016_v46  ;;  %v527_v46 = vld [vmem:[#allocation2 + $0xd8] sm:$0xff] }
  0x9a   : > { %734 = vmatmul.mubr.bf16.gmra.mxu0 %v9015_v27  ;;  %798 = vmatmul.mubr.bf16.gmra.mxu1 %v9014_v45 }
  0x9b   : > { %741 = vmatprep.mubr.bf16.mxu0 %v9013_v30  ;;  %805 = vmatprep.mubr.bf16.mxu1 %v9012_v48 }
  0xa2   : > { %742 = vmatmul.mubr.bf16.gmra.mxu0 %v9010_v29  ;;  %806 = vmatmul.mubr.bf16.gmra.mxu1 %v9011_v47 }
 0x12a   : > { %v5721_v49 = vpop.f32.mrf.mxu0  ;;  %v5769_v50 = vpop.f32.mrf.mxu1 }
 0x12c   : > { %v5722_v52 = vpop.f32.mrf.mxu0  ;;  %v5770_v54 = vpop.f32.mrf.mxu1 }
 0x12d   : > { %v5723_v55 = vadd.f32 %v5722_v52, %v5721_v49  ;;  %v5771_v56 = vadd.f32 %v5770_v54, %v5769_v50  ;;  %v543_v49 = vld [vmem:[#allocation2 + $0x40] sm:$0xff] }
 0x12e   : > { %v5724_v57 = vpop.f32.mrf.mxu0  ;;  %v5772_v58 = vpop.f32.mrf.mxu1 }
 0x12f   : > { %v814_v59 = vadd.f32 %v5723_v55, %v525_v51  ;;  %v830_v60 = vadd.f32 %v5771_v56, %v541_v53 }
 0x130   : > { %v5725_v62 = vpop.f32.mrf.mxu0  ;;  %v5773_v0 = vpop.f32.mrf.mxu1 }
 0x131   : > { %846 = vst [vmem:[#allocation2 + $0xb0] sm:$0xff] %v814_v59  ;;  %862 = vst [vmem:[#allocation2 + $0x38] sm:$0xff] %v830_v60  ;;  %v5726_v29 = vadd.f32 %v5725_v62, %v5724_v57  ;;  %v5774_v47 = vadd.f32 %v5773_v0, %v5772_v58  ;;  %v528_v59 = vld [vmem:[#allocation2 + $0x18] sm:$0xff]  ;;  %v544_v57 = vld [vmem:[#allocation2 + $0xc8] sm:$0xff] }
 0x132   : > { %v5727_v48 = vpop.f32.mrf.mxu0  ;;  %v5775_v30 = vpop.f32.mrf.mxu1 }
 0x133   : > { %v815_v45 = vadd.f32 %v5726_v29, %v526_v61  ;;  %v831_v27 = vadd.f32 %v5774_v47, %v542_v63 }
 0x134   : > { %v5728_v28 = vpop.f32.mrf.mxu0  ;;  %v5776_v50 = vpop.f32.mrf.mxu1 }
 0x135   : > { %847 = vst [vmem:[#allocation2] sm:$0xff] %v815_v45  ;;  %863 = vst [vmem:[#allocation2 + $0x58] sm:$0xff] %v831_v27  ;;  %v5729_v51 = vadd.f32 %v5728_v28, %v5727_v48  ;;  %v5777_v52 = vadd.f32 %v5776_v50, %v5775_v30  ;;  %v529_v45 = vld [vmem:[#allocation2 + $0x50] sm:$0xff]  ;;  %v545_v28 = vld [vmem:[#allocation2 + $0xe0] sm:$0xff] }
 0x136   : > { %v5730_v53 = vpop.f32.mrf.mxu0  ;;  %v5778_v54 = vpop.f32.mrf.mxu1 }
 0x137   : > { %v816_v55 = vadd.f32 %v5729_v51, %v527_v46  ;;  %v832_v56 = vadd.f32 %v5777_v52, %v543_v49 }
 0x138   : > { %v5731_v60 = vpop.f32.mrf.mxu0  ;;  %v5779_v58 = vpop.f32.mrf.mxu1 }
 0x139   : > { %848 = vst [vmem:[#allocation2 + $0xd8] sm:$0xff] %v816_v55  ;;  %864 = vst [vmem:[#allocation2 + $0x40] sm:$0xff] %v832_v56  ;;  %v5732_v29 = vadd.f32 %v5731_v60, %v5730_v53  ;;  %v5780_v47 = vadd.f32 %v5779_v58, %v5778_v54  ;;  %v530_v55 = vld [vmem:[#allocation2 + $0x68] sm:$0xff]  ;;  %v546_v53 = vld [vmem:[#allocation2 + $0x90] sm:$0xff] }
 0x13a   : > { %v5733_v61 = vpop.f32.mrf.mxu0  ;;  %v5781_v62 = vpop.f32.mrf.mxu1 }
 0x13b   : > { %v817_v63 = vadd.f32 %v5732_v29, %v528_v59  ;;  %v833_v0 = vadd.f32 %v5780_v47, %v544_v57 }
 0x13c   : > { %v5734_v27 = vpop.f32.mrf.mxu0  ;;  %v5782_v30 = vpop.f32.mrf.mxu1 }
 0x13d   : > { %849 = vst [vmem:[#allocation2 + $0x18] sm:$0xff] %v817_v63  ;;  %865 = vst [vmem:[#allocation2 + $0xc8] sm:$0xff] %v833_v0  ;;  %v5735_v46 = vadd.f32 %v5734_v27, %v5733_v61  ;;  %v5783_v48 = vadd.f32 %v5782_v30, %v5781_v62  ;;  %v531_v63 = vld [vmem:[#allocation2 + $0x30] sm:$0xff] }
 0x13e   : > { %v5736_v49 = vpop.f32.mrf.mxu0  ;;  %v5784_v50 = vpop.f32.mrf.mxu1  ;;  %v547_v61 = vld [vmem:[#allocation2 + $0x70] sm:$0xff] }
 0x13f   : > { %v818_v51 = vadd.f32 %v5735_v46, %v529_v45  ;;  %v834_v52 = vadd.f32 %v5783_v48, %v545_v28 }
 0x140   : > { %v5737_v56 = vpop.f32.mrf.mxu0  ;;  %v5785_v54 = vpop.f32.mrf.mxu1 }
 0x141   : > { %850 = vst [vmem:[#allocation2 + $0x50] sm:$0xff] %v818_v51  ;;  %866 = vst [vmem:[#allocation2 + $0xe0] sm:$0xff] %v834_v52  ;;  %v5738_v59 = vadd.f32 %v5737_v56, %v5736_v49  ;;  %v5786_v60 = vadd.f32 %v5785_v54, %v5784_v50  ;;  %v532_v51 = vld [vmem:[#allocation2 + $0x48] sm:$0xff]  ;;  %v548_v49 = vld [vmem:[#allocation2 + $0xc0] sm:$0xff] }
 0x142   : > { %v5739_v57 = vpop.f32.mrf.mxu0  ;;  %v5787_v58 = vpop.f32.mrf.mxu1 }
 0x143   : > { %v819_v29 = vadd.f32 %v5738_v59, %v530_v55  ;;  %v835_v47 = vadd.f32 %v5786_v60, %v546_v53 }
 0x144   : > { %v5740_v0 = vpop.f32.mrf.mxu0  ;;  %v5788_v62 = vpop.f32.mrf.mxu1 }
 0x145   : > { %851 = vst [vmem:[#allocation2 + $0x68] sm:$0xff] %v819_v29  ;;  %867 = vst [vmem:[#allocation2 + $0x90] sm:$0xff] %v835_v47  ;;  %v5741_v45 = vadd.f32 %v5740_v0, %v5739_v57  ;;  %v5789_v27 = vadd.f32 %v5788_v62, %v5787_v58  ;;  %v533_v29 = vld [vmem:[#allocation2 + $0x80] sm:$0xff]  ;;  %v549_v57 = vld [vmem:[#allocation2 + $0xa8] sm:$0xff] }
 0x146   : > { %v5742_v28 = vpop.f32.mrf.mxu0  ;;  %v5790_v30 = vpop.f32.mrf.mxu1 }
 0x147   : > { %v820_v46 = vadd.f32 %v5741_v45, %v531_v63  ;;  %v836_v48 = vadd.f32 %v5789_v27, %v547_v61 }
 0x148   : > { %v5743_v52 = vpop.f32.mrf.mxu0  ;;  %v5791_v50 = vpop.f32.mrf.mxu1 }
 0x149   : > { %852 = vst [vmem:[#allocation2 + $0x30] sm:$0xff] %v820_v46  ;;  %868 = vst [vmem:[#allocation2 + $0x70] sm:$0xff] %v836_v48  ;;  %v5744_v55 = vadd.f32 %v5743_v52, %v5742_v28  ;;  %v5792_v56 = vadd.f32 %v5791_v50, %v5790_v30  ;;  %v534_v46 = vld [vmem:[#allocation2 + $0x88] sm:$0xff]  ;;  %v550_v28 = vld [vmem:[#allocation2 + $0xd0] sm:$0xff] }
 0x14a   : > { %v5745_v53 = vpop.f32.mrf.mxu0  ;;  %v5793_v54 = vpop.f32.mrf.mxu1 }
 0x14b   : > { %v821_v59 = vadd.f32 %v5744_v55, %v532_v51  ;;  %v837_v60 = vadd.f32 %v5792_v56, %v548_v49 }
 0x14c   : > { %v5746_v47 = vpop.f32.mrf.mxu0  ;;  %v5794_v58 = vpop.f32.mrf.mxu1 }
 0x14d   : > { %853 = vst [vmem:[#allocation2 + $0x48] sm:$0xff] %v821_v59  ;;  %869 = vst [vmem:[#allocation2 + $0xc0] sm:$0xff] %v837_v60  ;;  %v5747_v63 = vadd.f32 %v5746_v47, %v5745_v53  ;;  %v5795_v0 = vadd.f32 %v5794_v58, %v5793_v54  ;;  %v535_v59 = vld [vmem:[#allocation2 + $0xe8] sm:$0xff]  ;;  %v551_v53 = vld [vmem:[#allocation2 + $0x10] sm:$0xff] }
 0x14e   : > { %v5748_v61 = vpop.f32.mrf.mxu0  ;;  %v5796_v62 = vpop.f32.mrf.mxu1 }
 0x14f   : > { %v822_v45 = vadd.f32 %v5747_v63, %v533_v29  ;;  %v838_v27 = vadd.f32 %v5795_v0, %v549_v57 }
 0x150   : > { %v5749_v48 = vpop.f32.mrf.mxu0  ;;  %v5797_v30 = vpop.f32.mrf.mxu1 }
 0x151   : > { %854 = vst [vmem:[#allocation2 + $0x80] sm:$0xff] %v822_v45  ;;  %870 = vst [vmem:[#allocation2 + $0xa8] sm:$0xff] %v838_v27  ;;  %v5750_v51 = vadd.f32 %v5749_v48, %v5748_v61  ;;  %v5798_v52 = vadd.f32 %v5797_v30, %v5796_v62  ;;  %v536_v45 = vld [vmem:[#allocation2 + $0xb8] sm:$0xff]  ;;  %v552_v61 = vld [vmem:[#allocation2 + $0x28] sm:$0xff] }
 0x152   : > { %v5751_v49 = vpop.f32.mrf.mxu0  ;;  %v5799_v50 = vpop.f32.mrf.mxu1 }
 0x153   : > { %v823_v55 = vadd.f32 %v5750_v51, %v534_v46  ;;  %v839_v56 = vadd.f32 %v5798_v52, %v550_v28 }
 0x154   : > { %v5752_v60 = vpop.f32.mrf.mxu0  ;;  %v5800_v54 = vpop.f32.mrf.mxu1 }
 0x155   : > { %855 = vst [vmem:[#allocation2 + $0x88] sm:$0xff] %v823_v55  ;;  %871 = vst [vmem:[#allocation2 + $0xd0] sm:$0xff] %v839_v56  ;;  %v5753_v29 = vadd.f32 %v5752_v60, %v5751_v49  ;;  %v5801_v47 = vadd.f32 %v5800_v54, %v5799_v50  ;;  %v537_v55 = vld [vmem:[#allocation2 + $0x60] sm:$0xff] }
 0x156   : > { %v5754_v57 = vpop.f32.mrf.mxu0  ;;  %v5802_v58 = vpop.f32.mrf.mxu1  ;;  %v553_v49 = vld [vmem:[#allocation2 + $0xa0] sm:$0xff] }
 0x157   : > { %v824_v63 = vadd.f32 %v5753_v29, %v535_v59  ;;  %v840_v0 = vadd.f32 %v5801_v47, %v551_v53 }
 0x158   : > { %v5755_v27 = vpop.f32.mrf.mxu0  ;;  %v5803_v62 = vpop.f32.mrf.mxu1 }
 0x159   : > { %856 = vst [vmem:[#allocation2 + $0xe8] sm:$0xff] %v824_v63  ;;  %872 = vst [vmem:[#allocation2 + $0x10] sm:$0xff] %v840_v0  ;;  %v5756_v46 = vadd.f32 %v5755_v27, %v5754_v57  ;;  %v5804_v48 = vadd.f32 %v5803_v62, %v5802_v58  ;;  %v538_v63 = vld [vmem:[#allocation2 + $0xf0] sm:$0xff]  ;;  %v554_v57 = vld [vmem:[#allocation2 + $0xf8] sm:$0xff] }
 0x15a   : > { %v5757_v28 = vpop.f32.mrf.mxu0  ;;  %v5805_v30 = vpop.f32.mrf.mxu1 }
 0x15b   : > { %v825_v51 = vadd.f32 %v5756_v46, %v536_v45  ;;  %v841_v52 = vadd.f32 %v5804_v48, %v552_v61 }
 0x15c   : > { %v5758_v56 = vpop.f32.mrf.mxu0  ;;  %v5806_v50 = vpop.f32.mrf.mxu1 }
 0x15d   : > { %857 = vst [vmem:[#allocation2 + $0xb8] sm:$0xff] %v825_v51  ;;  %873 = vst [vmem:[#allocation2 + $0x28] sm:$0xff] %v841_v52  ;;  %v5759_v59 = vadd.f32 %v5758_v56, %v5757_v28  ;;  %v5807_v60 = vadd.f32 %v5806_v50, %v5805_v30  ;;  %v539_v51 = vld [vmem:[#allocation2 + $0x8] sm:$0xff]  ;;  %v555_v28 = vld [vmem:[#allocation2 + $0x20] sm:$0xff] }
 0x15e   : > { %v5760_v53 = vpop.f32.mrf.mxu0  ;;  %v5808_v54 = vpop.f32.mrf.mxu1 }
 0x15f   : > { %v826_v29 = vadd.f32 %v5759_v59, %v537_v55  ;;  %v842_v47 = vadd.f32 %v5807_v60, %v553_v49 }
 0x160   : > { %v5761_v0 = vpop.f32.mrf.mxu0  ;;  %v5809_v58 = vpop.f32.mrf.mxu1 }
 0x161   : > { %858 = vst [vmem:[#allocation2 + $0x60] sm:$0xff] %v826_v29  ;;  %874 = vst [vmem:[#allocation2 + $0xa0] sm:$0xff] %v842_v47  ;;  %v5762_v45 = vadd.f32 %v5761_v0, %v5760_v53  ;;  %v5810_v27 = vadd.f32 %v5809_v58, %v5808_v54  ;;  %v540_v29 = vld [vmem:[#allocation2 + $0x78] sm:$0xff] }
 0x162   : > { %v5763_v61 = vpop.f32.mrf.mxu0  ;;  %v5811_v62 = vpop.f32.mrf.mxu1  ;;  %v556_v53 = vld [vmem:[#allocation2 + $0x98] sm:$0xff] }
 0x163   : > { %v827_v46 = vadd.f32 %v5762_v45, %v538_v63  ;;  %v843_v48 = vadd.f32 %v5810_v27, %v554_v57 }
 0x164   : > { %v5764_v52 = vpop.f32.mrf.mxu0  ;;  %v5812_v30 = vpop.f32.mrf.mxu1 }
 0x165   : > { %859 = vst [vmem:[#allocation2 + $0xf0] sm:$0xff] %v827_v46  ;;  %875 = vst [vmem:[#allocation2 + $0xf8] sm:$0xff] %v843_v48  ;;  %v5765_v55 = vadd.f32 %v5764_v52, %v5763_v61  ;;  %v5813_v56 = vadd.f32 %v5812_v30, %v5811_v62 }
 0x166   : > { %v5766_v49 = vpop.f32.mrf.mxu0  ;;  %v5814_v50 = vpop.f32.mrf.mxu1 }
 0x167   : > { %v828_v59 = vadd.f32 %v5765_v55, %v539_v51  ;;  %v844_v60 = vadd.f32 %v5813_v56, %v555_v28 }
 0x168   : > { %v5767_v47 = vpop.f32.mrf.mxu0  ;;  %v5815_v54 = vpop.f32.mrf.mxu1 }
 0x169   : > { %860 = vst [vmem:[#allocation2 + $0x8] sm:$0xff] %v828_v59  ;;  %876 = vst [vmem:[#allocation2 + $0x20] sm:$0xff] %v844_v60  ;;  %v5768_v63 = vadd.f32 %v5767_v47, %v5766_v49  ;;  %v5816_v0 = vadd.f32 %v5815_v54, %v5814_v50 }
 0x16b   : > { %v829_v57 = vadd.f32 %v5768_v63, %v540_v29  ;;  %v845_v58 = vadd.f32 %v5816_v0, %v556_v53 }
 0x16d   : > { %861 = vst [vmem:[#allocation2 + $0x78] sm:$0xff] %v829_v57  ;;  %877 = vst [vmem:[#allocation2 + $0x98] sm:$0xff] %v845_v58 }
 0x16e PF: > { %p4916_p3 = scmp.eq.s32.totalorder %s6837_s30, 0 }
 0x16f   : > { %s882_s13 = sadd.s32 (!%p4916_p3), 1, %s6837_s30 }
 0x170   : > { %881 = sbr.rel (%p4916_p3) target bundleno = 674 (0x2a2), region = 80  ;;  %p883_p5 = scmp.lt.s32.totalorder (!%p4916_p3), %s882_s13, 0 }
 0x171   : > { %s884_s14 = ssub.s32 (!%p4916_p3), 0, %s882_s13 }
 0x172   : > { %s4917_s17 = smin.u32 (!%p4916_p3), %s884_s14, %s882_s13 }
 0x173   : > { %s886_s22 = sand.u32 (!%p4916_p3), 1, %s4917_s17  }
 0x174   : > { %s887_s23 = ssub.s32 (!%p4916_p3), 0, %s886_s22 }
 0x175   : > { %1093 = vmatprep.mubr.bf16.mxu0 %v418_v8  ;;  %1157 = vmatprep.mubr.bf16.mxu1 %v434_v34  ;;  %s9120_s23 = smov (!%p883_p5, %s887_s23), %s886_s22  ;;  %v9043_v1 = vunpack.c.l.s8.bf16 %v7041_v12  ;;  %v9044_v2 = vunpack.c.l.s8.bf16 %v7093_v32  ;;  %v9045_v3 = vunpack.c.l.s8.bf16 %v7036_v11  ;;  %v9046_v4 = vunpack.c.l.s8.bf16 %v7088_v31  ;;  %v950_v25 = vld [vmem:[#allocation2 + $0x58] sm:$0xff]  ;;  %v952_v53 = vld [vmem:[#allocation2 + $0xc8] sm:$0xff] }
 0x176   : > { %p4919_p7 = scmp.lt.s32.totalorder %s9120_s23, 0  ;;  %s893_s24 = sadd.s32 2, %s9120_s23  ;;  %v9047_v6 = vunpack.c.h.s8.bf16 %v7041_v12  ;;  %v9048_v5 = vunpack.c.h.s8.bf16 %v7093_v32  ;;  %v936_v29 = vld [vmem:[#allocation2 + $0x18] sm:$0xff] }
 0x178   : > { %s9122_s24 = smov (!%p4919_p7, %s893_s24), %s9120_s23 }
 0x179   : > { %s4920_s25 = sshll.u32 %s9122_s24, 8 }
 0x17a   : > { %s897_s26 = sshra.s32 %s4920_s25, 3 }
 0x17b   : > { %s4921_s27 = sshll.u32 %s897_s26, 2 }
 0x17c   : > { %s7232_s28 = scalar_lea.vmem [#allocation3], %s4921_s27 }
 0x17d   : > { %v6399_v8 = vld [vmem:[%s7232_s28 + $0x78] sm:$0xff]   ;;  %v6401_v45 = vld [vmem:[%s7232_s28 + $0x70] sm:$0xff]   ;;  %v6403_v61 = vld [vmem:[%s7232_s28 + $0x68] sm:$0xff]  }
 0x17e   : > { %v6400_v34 = vld [vmem:[%s7232_s28 + $0x38] sm:$0xff]   ;;  %5817 = vmatprep.subr.bf16.mxu0 %v6399_v8  ;;  %6233 = vmatprep.subr.bf16.mxu1 %v6399_v8  ;;  %v6402_v27 = vld [vmem:[%s7232_s28 + $0x30] sm:$0xff]   ;;  %v6404_v62 = vld [vmem:[%s7232_s28 + $0x28] sm:$0xff]  }
 0x17f   : > { %5818 = vmatpush3.bf16.msra.mxu0 %v6400_v34  ;;  %6241 = vmatpush3.bf16.msra.mxu1 %v6400_v34  ;;  %v6405_v46 = vld [vmem:[%s7232_s28 + $0x60] sm:$0xff]   ;;  %v6407_v51 = vld [vmem:[%s7232_s28 + $0x58] sm:$0xff]   ;;  %v6409_v28 = vld [vmem:[%s7232_s28 + $0x50] sm:$0xff]  }
 0x180   : > { %5819 = vmatprep.subr.bf16.mxu0 %v6401_v45  ;;  %6234 = vmatprep.subr.bf16.mxu1 %v6401_v45  ;;  %v6406_v48 = vld [vmem:[%s7232_s28 + $0x20] sm:$0xff]   ;;  %v6408_v52 = vld [vmem:[%s7232_s28 + $0x18] sm:$0xff]   ;;  %v6410_v30 = vld [vmem:[%s7232_s28 + $0x10] sm:$0xff]  }
 0x181   : > { %v6411_v55 = vld [vmem:[%s7232_s28 + $0x48] sm:$0xff]   ;;  %v6413_v49 = vld [vmem:[%s7232_s28 + $0x40] sm:$0xff]   ;;  %v937_v45 = vld [vmem:[#allocation2 + $0x50] sm:$0xff] }
 0x182   : > { %v6412_v56 = vld [vmem:[%s7232_s28 + $0x8] sm:$0xff]   ;;  %v6414_v50 = vld [vmem:[%s7232_s28] sm:$0xff]  }
 0x183   : > { %5820 = vmatpush3.bf16.msra.mxu0 %v6402_v27  ;;  %6242 = vmatpush3.bf16.msra.mxu1 %v6402_v27 }
 0x184   : > { %5821 = vmatprep.subr.bf16.mxu0 %v6403_v61  ;;  %6235 = vmatprep.subr.bf16.mxu1 %v6403_v61  ;;  %v953_v61 = vld [vmem:[#allocation2 + $0xe0] sm:$0xff] }
 0x187   : > { %5822 = vmatpush3.bf16.msra.mxu0 %v6404_v62  ;;  %6243 = vmatpush3.bf16.msra.mxu1 %v6404_v62 }
 0x188   : > { %5823 = vmatprep.subr.bf16.mxu0 %v6405_v46  ;;  %6236 = vmatprep.subr.bf16.mxu1 %v6405_v46 }
 0x18b   : > { %5824 = vmatpush3.bf16.msra.mxu0 %v6406_v48  ;;  %6244 = vmatpush3.bf16.msra.mxu1 %v6406_v48 }
 0x18c   : > { %5825 = vmatprep.subr.bf16.mxu0 %v6407_v51  ;;  %6237 = vmatprep.subr.bf16.mxu1 %v6407_v51 }
 0x18f   : > { %5826 = vmatpush3.bf16.msra.mxu0 %v6408_v52  ;;  %6245 = vmatpush3.bf16.msra.mxu1 %v6408_v52 }
 0x190   : > { %5827 = vmatprep.subr.bf16.mxu0 %v6409_v28  ;;  %6238 = vmatprep.subr.bf16.mxu1 %v6409_v28 }
 0x193   : > { %5828 = vmatpush3.bf16.msra.mxu0 %v6410_v30  ;;  %6246 = vmatpush3.bf16.msra.mxu1 %v6410_v30 }
 0x194   : > { %5829 = vmatprep.subr.bf16.mxu0 %v6411_v55  ;;  %6239 = vmatprep.subr.bf16.mxu1 %v6411_v55  ;;  %v938_v55 = vld [vmem:[#allocation2 + $0x68] sm:$0xff] }
 0x197   : > { %5830 = vmatpush3.bf16.msra.mxu0 %v6412_v56  ;;  %6247 = vmatpush3.bf16.msra.mxu1 %v6412_v56 }
 0x198   : > { %5831 = vmatprep.subr.bf16.mxu0 %v6413_v49  ;;  %6240 = vmatprep.subr.bf16.mxu1 %v6413_v49  ;;  %v954_v49 = vld [vmem:[#allocation2 + $0x90] sm:$0xff] }
 0x19b   : > { %5832 = vmatpush3.bf16.msra.mxu0 %v6414_v50  ;;  %6248 = vmatpush3.bf16.msra.mxu1 %v6414_v50 }
 0x19e   : > { %1094 = vmatmul.mubr.bf16.vlgmr.msra.gmra.mxu0 %v417_v7  ;;  %1158 = vmatmul.mubr.bf16.vlgmr.msra.gmra.mxu1 %v433_v33  ;;  %v9049_v7 = vunpack.c.h.s8.bf16 %v7036_v11 }
 0x19f   : > { %1101 = vmatprep.mubr.bf16.mxu0 %v420_v10  ;;  %1165 = vmatprep.mubr.bf16.mxu1 %v436_v36 }
 0x1a6   : > { %1102 = vmatmul.mubr.bf16.gmra.mxu0 %v419_v9  ;;  %1166 = vmatmul.mubr.bf16.gmra.mxu1 %v435_v35  ;;  %v9050_v9 = vunpack.c.h.s8.bf16 %v7088_v31 }
 0x1a7   : > { %1109 = vmatprep.mubr.bf16.mxu0 %v422_v15  ;;  %1173 = vmatprep.mubr.bf16.mxu1 %v438_v38 }
 0x1ae   : > { %1110 = vmatmul.mubr.bf16.gmra.mxu0 %v421_v14  ;;  %1174 = vmatmul.mubr.bf16.gmra.mxu1 %v437_v37  ;;  %v933_v14 = vld [vmem:[#allocation2 + $0xb0] sm:$0xff]  ;;  %v935_v37 = vld [vmem:[#allocation2 + $0xd8] sm:$0xff] }
 0x1af   : > { %1117 = vmatprep.mubr.bf16.mxu0 %v424_v17  ;;  %1181 = vmatprep.mubr.bf16.mxu1 %v440_v40 }
 0x1b6   : > { %1118 = vmatmul.mubr.bf16.gmra.mxu0 %v423_v16  ;;  %1182 = vmatmul.mubr.bf16.gmra.mxu1 %v439_v39  ;;  %v949_v16 = vld [vmem:[#allocation2 + $0x38] sm:$0xff]  ;;  %v951_v39 = vld [vmem:[#allocation2 + $0x40] sm:$0xff] }
 0x1b7   : > { %1125 = vmatprep.mubr.bf16.mxu0 %v426_v22  ;;  %1189 = vmatprep.mubr.bf16.mxu1 %v442_v42 }
 0x1be   : > { %1126 = vmatmul.mubr.bf16.gmra.mxu0 %v425_v21  ;;  %1190 = vmatmul.mubr.bf16.gmra.mxu1 %v441_v41 }
 0x1bf   : > { %1133 = vmatprep.mubr.bf16.mxu0 %v428_v24  ;;  %1197 = vmatprep.mubr.bf16.mxu1 %v444_v44 }
 0x1c6   : > { %1134 = vmatmul.mubr.bf16.gmra.mxu0 %v427_v23  ;;  %1198 = vmatmul.mubr.bf16.gmra.mxu1 %v443_v43  ;;  %v934_v23 = vld [vmem:[#allocation2] sm:$0xff] }
 0x1c7   : > { %1141 = vmatprep.mubr.bf16.mxu0 %v9043_v1  ;;  %1205 = vmatprep.mubr.bf16.mxu1 %v9044_v2 }
 0x1ce   : > { %1142 = vmatmul.mubr.bf16.gmra.mxu0 %v9045_v3  ;;  %1206 = vmatmul.mubr.bf16.gmra.mxu1 %v9046_v4 }
 0x1cf   : > { %1149 = vmatprep.mubr.bf16.mxu0 %v9047_v6  ;;  %1213 = vmatprep.mubr.bf16.mxu1 %v9048_v5 }
 0x1d6   : > { %1150 = vmatmul.mubr.bf16.gmra.mxu0 %v9049_v7  ;;  %1214 = vmatmul.mubr.bf16.gmra.mxu1 %v9050_v9  ;;  %v939_v7 = vld [vmem:[#allocation2 + $0x30] sm:$0xff] }
 0x25e   : > { %v5833_v10 = vpop.f32.mrf.mxu0  ;;  %v5881_v13 = vpop.f32.mrf.mxu1 }
 0x260   : > { %v5834_v15 = vpop.f32.mrf.mxu0  ;;  %v5882_v17 = vpop.f32.mrf.mxu1 }
 0x261   : > { %v5835_v18 = vadd.f32 %v5834_v15, %v5833_v10  ;;  %v5883_v19 = vadd.f32 %v5882_v17, %v5881_v13  ;;  %v955_v10 = vld [vmem:[#allocation2 + $0x70] sm:$0xff] }
 0x262   : > { %v5836_v20 = vpop.f32.mrf.mxu0  ;;  %v5884_v12 = vpop.f32.mrf.mxu1 }
 0x263   : > { %v1222_v21 = vadd.f32 %v5835_v18, %v933_v14  ;;  %v1238_v22 = vadd.f32 %v5883_v19, %v949_v16 }
 0x264   : > { %v5837_v24 = vpop.f32.mrf.mxu0  ;;  %v5885_v11 = vpop.f32.mrf.mxu1 }
 0x265   : > { %1254 = vst [vmem:[#allocation2 + $0xb0] sm:$0xff] %v1222_v21  ;;  %1270 = vst [vmem:[#allocation2 + $0x38] sm:$0xff] %v1238_v22  ;;  %v5838_v26 = vadd.f32 %v5837_v24, %v5836_v20  ;;  %v5886_v31 = vadd.f32 %v5885_v11, %v5884_v12  ;;  %v940_v20 = vld [vmem:[#allocation2 + $0x48] sm:$0xff]  ;;  %v956_v21 = vld [vmem:[#allocation2 + $0xc0] sm:$0xff] }
 0x266   : > { %v5839_v32 = vpop.f32.mrf.mxu0  ;;  %v5887_v33 = vpop.f32.mrf.mxu1 }
 0x267   : > { %v1223_v35 = vadd.f32 %v5838_v26, %v934_v23  ;;  %v1239_v36 = vadd.f32 %v5886_v31, %v950_v25 }
 0x268   : > { %v5840_v38 = vpop.f32.mrf.mxu0  ;;  %v5888_v40 = vpop.f32.mrf.mxu1 }
 0x269   : > { %1255 = vst [vmem:[#allocation2] sm:$0xff] %v1223_v35  ;;  %1271 = vst [vmem:[#allocation2 + $0x58] sm:$0xff] %v1239_v36  ;;  %v5841_v41 = vadd.f32 %v5840_v38, %v5839_v32  ;;  %v5889_v42 = vadd.f32 %v5888_v40, %v5887_v33  ;;  %v941_v32 = vld [vmem:[#allocation2 + $0x80] sm:$0xff]  ;;  %v957_v35 = vld [vmem:[#allocation2 + $0xa8] sm:$0xff] }
 0x26a   : > { %v5842_v43 = vpop.f32.mrf.mxu0  ;;  %v5890_v44 = vpop.f32.mrf.mxu1 }
 0x26b   : > { %v1224_v59 = vadd.f32 %v5841_v41, %v935_v37  ;;  %v1240_v60 = vadd.f32 %v5889_v42, %v951_v39 }
 0x26c   : > { %v5843_v47 = vpop.f32.mrf.mxu0  ;;  %v5891_v54 = vpop.f32.mrf.mxu1 }
 0x26d   : > { %1256 = vst [vmem:[#allocation2 + $0xd8] sm:$0xff] %v1224_v59  ;;  %1272 = vst [vmem:[#allocation2 + $0x40] sm:$0xff] %v1240_v60  ;;  %v5844_v63 = vadd.f32 %v5843_v47, %v5842_v43  ;;  %v5892_v0 = vadd.f32 %v5891_v54, %v5890_v44  ;;  %v942_v43 = vld [vmem:[#allocation2 + $0x88] sm:$0xff]  ;;  %v958_v59 = vld [vmem:[#allocation2 + $0xd0] sm:$0xff] }
 0x26e   : > { %v5845_v57 = vpop.f32.mrf.mxu0  ;;  %v5893_v58 = vpop.f32.mrf.mxu1 }
 0x26f   : > { %v1225_v8 = vadd.f32 %v5844_v63, %v936_v29  ;;  %v1241_v34 = vadd.f32 %v5892_v0, %v952_v53 }
 0x270   : > { %v5846_v27 = vpop.f32.mrf.mxu0  ;;  %v5894_v62 = vpop.f32.mrf.mxu1 }
 0x271   : > { %1257 = vst [vmem:[#allocation2 + $0x18] sm:$0xff] %v1225_v8  ;;  %1273 = vst [vmem:[#allocation2 + $0xc8] sm:$0xff] %v1241_v34  ;;  %v5847_v46 = vadd.f32 %v5846_v27, %v5845_v57  ;;  %v5895_v48 = vadd.f32 %v5894_v62, %v5893_v58  ;;  %v943_v57 = vld [vmem:[#allocation2 + $0xe8] sm:$0xff]  ;;  %v959_v8 = vld [vmem:[#allocation2 + $0x10] sm:$0xff] }
 0x272   : > { %v5848_v51 = vpop.f32.mrf.mxu0  ;;  %v5896_v52 = vpop.f32.mrf.mxu1 }
 0x273   : > { %v1226_v28 = vadd.f32 %v5847_v46, %v937_v45  ;;  %v1242_v30 = vadd.f32 %v5895_v48, %v953_v61 }
 0x274   : > { %v5849_v56 = vpop.f32.mrf.mxu0  ;;  %v5897_v50 = vpop.f32.mrf.mxu1 }
 0x275   : > { %1258 = vst [vmem:[#allocation2 + $0x50] sm:$0xff] %v1226_v28  ;;  %1274 = vst [vmem:[#allocation2 + $0xe0] sm:$0xff] %v1242_v30  ;;  %v5850_v1 = vadd.f32 %v5849_v56, %v5848_v51  ;;  %v5898_v2 = vadd.f32 %v5897_v50, %v5896_v52  ;;  %v944_v51 = vld [vmem:[#allocation2 + $0xb8] sm:$0xff]  ;;  %v960_v28 = vld [vmem:[#allocation2 + $0x28] sm:$0xff] }
 0x276   : > { %v5851_v3 = vpop.f32.mrf.mxu0  ;;  %v5899_v4 = vpop.f32.mrf.mxu1 }
 0x277   : > { %v1227_v6 = vadd.f32 %v5850_v1, %v938_v55  ;;  %v1243_v5 = vadd.f32 %v5898_v2, %v954_v49 }
 0x278   : > { %v5852_v9 = vpop.f32.mrf.mxu0  ;;  %v5900_v13 = vpop.f32.mrf.mxu1 }
 0x279   : > { %1259 = vst [vmem:[#allocation2 + $0x68] sm:$0xff] %v1227_v6  ;;  %1275 = vst [vmem:[#allocation2 + $0x90] sm:$0xff] %v1243_v5  ;;  %v5853_v14 = vadd.f32 %v5852_v9, %v5851_v3  ;;  %v5901_v15 = vadd.f32 %v5900_v13, %v5899_v4  ;;  %v945_v3 = vld [vmem:[#allocation2 + $0x60] sm:$0xff] }
 0x27a   : > { %v5854_v16 = vpop.f32.mrf.mxu0  ;;  %v5902_v17 = vpop.f32.mrf.mxu1  ;;  %v961_v6 = vld [vmem:[#allocation2 + $0xa0] sm:$0xff] }
 0x27b   : > { %v1228_v18 = vadd.f32 %v5853_v14, %v939_v7  ;;  %v1244_v19 = vadd.f32 %v5901_v15, %v955_v10 }
 0x27c   : > { %v5855_v12 = vpop.f32.mrf.mxu0  ;;  %v5903_v22 = vpop.f32.mrf.mxu1 }
 0x27d   : > { %1260 = vst [vmem:[#allocation2 + $0x30] sm:$0xff] %v1228_v18  ;;  %1276 = vst [vmem:[#allocation2 + $0x70] sm:$0xff] %v1244_v19  ;;  %v5856_v23 = vadd.f32 %v5855_v12, %v5854_v16  ;;  %v5904_v24 = vadd.f32 %v5903_v22, %v5902_v17  ;;  %v946_v16 = vld [vmem:[#allocation2 + $0xf0] sm:$0xff]  ;;  %v962_v18 = vld [vmem:[#allocation2 + $0xf8] sm:$0xff] }
 0x27e   : > { %v5857_v25 = vpop.f32.mrf.mxu0  ;;  %v5905_v11 = vpop.f32.mrf.mxu1 }
 0x27f   : > { %v1229_v26 = vadd.f32 %v5856_v23, %v940_v20  ;;  %v1245_v31 = vadd.f32 %v5904_v24, %v956_v21 }
 0x280   : > { %v5858_v33 = vpop.f32.mrf.mxu0  ;;  %v5906_v36 = vpop.f32.mrf.mxu1 }
 0x281   : > { %1261 = vst [vmem:[#allocation2 + $0x48] sm:$0xff] %v1229_v26  ;;  %1277 = vst [vmem:[#allocation2 + $0xc0] sm:$0xff] %v1245_v31  ;;  %v5859_v37 = vadd.f32 %v5858_v33, %v5857_v25  ;;  %v5907_v38 = vadd.f32 %v5906_v36, %v5905_v11  ;;  %v947_v25 = vld [vmem:[#allocation2 + $0x8] sm:$0xff]  ;;  %v963_v26 = vld [vmem:[#allocation2 + $0x20] sm:$0xff] }
 0x282   : > { %v5860_v39 = vpop.f32.mrf.mxu0  ;;  %v5908_v40 = vpop.f32.mrf.mxu1 }
 0x283   : > { %v1230_v41 = vadd.f32 %v5859_v37, %v941_v32  ;;  %v1246_v42 = vadd.f32 %v5907_v38, %v957_v35 }
 0x284   : > { %v5861_v44 = vpop.f32.mrf.mxu0  ;;  %v5909_v60 = vpop.f32.mrf.mxu1 }
 0x285   : > { %1262 = vst [vmem:[#allocation2 + $0x80] sm:$0xff] %v1230_v41  ;;  %1278 = vst [vmem:[#allocation2 + $0xa8] sm:$0xff] %v1246_v42  ;;  %v5862_v29 = vadd.f32 %v5861_v44, %v5860_v39  ;;  %v5910_v47 = vadd.f32 %v5909_v60, %v5908_v40  ;;  %v948_v39 = vld [vmem:[#allocation2 + $0x78] sm:$0xff] }
 0x286   : > { %v5863_v53 = vpop.f32.mrf.mxu0  ;;  %v5911_v54 = vpop.f32.mrf.mxu1  ;;  %v964_v41 = vld [vmem:[#allocation2 + $0x98] sm:$0xff] }
 0x287   : > { %v1231_v63 = vadd.f32 %v5862_v29, %v942_v43  ;;  %v1247_v0 = vadd.f32 %v5910_v47, %v958_v59 }
 0x288   : > { %v5864_v58 = vpop.f32.mrf.mxu0  ;;  %v5912_v34 = vpop.f32.mrf.mxu1 }
 0x289   : > { %1263 = vst [vmem:[#allocation2 + $0x88] sm:$0xff] %v1231_v63  ;;  %1279 = vst [vmem:[#allocation2 + $0xd0] sm:$0xff] %v1247_v0  ;;  %v5865_v45 = vadd.f32 %v5864_v58, %v5863_v53  ;;  %v5913_v27 = vadd.f32 %v5912_v34, %v5911_v54 }
 0x28a   : > { %v5866_v61 = vpop.f32.mrf.mxu0  ;;  %v5914_v62 = vpop.f32.mrf.mxu1 }
 0x28b   : > { %v1232_v46 = vadd.f32 %v5865_v45, %v943_v57  ;;  %v1248_v48 = vadd.f32 %v5913_v27, %v959_v8 }
 0x28c   : > { %v5867_v52 = vpop.f32.mrf.mxu0  ;;  %v5915_v30 = vpop.f32.mrf.mxu1 }
 0x28d   : > { %1264 = vst [vmem:[#allocation2 + $0xe8] sm:$0xff] %v1232_v46  ;;  %1280 = vst [vmem:[#allocation2 + $0x10] sm:$0xff] %v1248_v48  ;;  %v5868_v55 = vadd.f32 %v5867_v52, %v5866_v61  ;;  %v5916_v56 = vadd.f32 %v5915_v30, %v5914_v62 }
 0x28e   : > { %v5869_v49 = vpop.f32.mrf.mxu0  ;;  %v5917_v50 = vpop.f32.mrf.mxu1 }
 0x28f   : > { %v1233_v1 = vadd.f32 %v5868_v55, %v944_v51  ;;  %v1249_v2 = vadd.f32 %v5916_v56, %v960_v28 }
 0x290   : > { %v5870_v4 = vpop.f32.mrf.mxu0  ;;  %v5918_v5 = vpop.f32.mrf.mxu1 }
 0x291   : > { %1265 = vst [vmem:[#allocation2 + $0xb8] sm:$0xff] %v1233_v1  ;;  %1281 = vst [vmem:[#allocation2 + $0x28] sm:$0xff] %v1249_v2  ;;  %v5871_v7 = vadd.f32 %v5870_v4, %v5869_v49  ;;  %v5919_v9 = vadd.f32 %v5918_v5, %v5917_v50 }
 0x292   : > { %v5872_v10 = vpop.f32.mrf.mxu0  ;;  %v5920_v13 = vpop.f32.mrf.mxu1 }
 0x293   : > { %v1234_v14 = vadd.f32 %v5871_v7, %v945_v3  ;;  %v1250_v15 = vadd.f32 %v5919_v9, %v961_v6 }
 0x294   : > { %v5873_v17 = vpop.f32.mrf.mxu0  ;;  %v5921_v19 = vpop.f32.mrf.mxu1 }
 0x295   : > { %1266 = vst [vmem:[#allocation2 + $0x60] sm:$0xff] %v1234_v14  ;;  %1282 = vst [vmem:[#allocation2 + $0xa0] sm:$0xff] %v1250_v15  ;;  %v5874_v20 = vadd.f32 %v5873_v17, %v5872_v10  ;;  %v5922_v12 = vadd.f32 %v5921_v19, %v5920_v13 }
 0x296   : > { %v5875_v21 = vpop.f32.mrf.mxu0  ;;  %v5923_v22 = vpop.f32.mrf.mxu1 }
 0x297   : > { %v1235_v23 = vadd.f32 %v5874_v20, %v946_v16  ;;  %v1251_v24 = vadd.f32 %v5922_v12, %v962_v18 }
 0x298   : > { %v5876_v11 = vpop.f32.mrf.mxu0  ;;  %v5924_v31 = vpop.f32.mrf.mxu1 }
 0x299   : > { %1267 = vst [vmem:[#allocation2 + $0xf0] sm:$0xff] %v1235_v23  ;;  %1283 = vst [vmem:[#allocation2 + $0xf8] sm:$0xff] %v1251_v24  ;;  %v5877_v32 = vadd.f32 %v5876_v11, %v5875_v21  ;;  %v5925_v33 = vadd.f32 %v5924_v31, %v5923_v22 }
 0x29a   : > { %v5878_v35 = vpop.f32.mrf.mxu0  ;;  %v5926_v36 = vpop.f32.mrf.mxu1 }
 0x29b   : > { %v1236_v37 = vadd.f32 %v5877_v32, %v947_v25  ;;  %v1252_v38 = vadd.f32 %v5925_v33, %v963_v26 }
 0x29c   : > { %v5879_v40 = vpop.f32.mrf.mxu0  ;;  %v5927_v42 = vpop.f32.mrf.mxu1 }
 0x29d   : > { %1268 = vst [vmem:[#allocation2 + $0x8] sm:$0xff] %v1236_v37  ;;  %1284 = vst [vmem:[#allocation2 + $0x20] sm:$0xff] %v1252_v38  ;;  %v5880_v43 = vadd.f32 %v5879_v40, %v5878_v35  ;;  %v5928_v44 = vadd.f32 %v5927_v42, %v5926_v36 }
 0x29f   : > { %v1237_v59 = vadd.f32 %v5880_v43, %v948_v39  ;;  %v1253_v60 = vadd.f32 %v5928_v44, %v964_v41 }
 0x2a1   : > { %1269 = vst [vmem:[#allocation2 + $0x78] sm:$0xff] %v1237_v59  ;;  %1285 = vst [vmem:[#allocation2 + $0x98] sm:$0xff] %v1253_v60 }
 0x2a2 PF: > { %p1289_p10 = scmp.lt.s32.totalorder %s6837_s30, 0  ;;  %s1290_s29 = ssub.s32 0, %s6837_s30  ;;  %v7315_v29 = vld [vmem:[%s9001_s1] sm:$0xff]  ;;  %v7320_v47 = vld [vmem:[%s9001_s1 + $0x8] sm:$0xff]  ;;  %v7325_v53 = vld [vmem:[%s9001_s1 + $0x10] sm:$0xff] }
 0x2a3   : > { %s4938_s14 = smin.u32 %s6837_s30, %s1290_s29  ;;  %v7331_v54 = vld [vmem:[%s9001_s1 + $0x18] sm:$0xff]  ;;  %v7336_v63 = vld [vmem:[%s9001_s1 + $0x20] sm:$0xff]  ;;  %v7341_v0 = vld [vmem:[%s9001_s1 + $0x28] sm:$0xff] }
 0x2a4   : > { %s1292_s27 = sand.u32 1, %s4938_s14   ;;  %v7346_v57 = vld [vmem:[%s9001_s1 + $0x30] sm:$0xff]  ;;  %v7351_v58 = vld [vmem:[%s9001_s1 + $0x38] sm:$0xff]  ;;  %v7356_v8 = vld [vmem:[%s9001_s1 + $0x40] sm:$0xff] }
 0x2a5   : > { %9051 = vst [vmem:[#allocation15_spill] sm:$0xff] %v7346_v57  ;;  %9052 = vst [vmem:[#allocation16_spill] sm:$0xff] %v7351_v58  ;;  %s1293_s21 = ssub.s32 0, %s1292_s27  ;;  %v7361_v34 = vld [vmem:[%s9001_s1 + $0x48] sm:$0xff]  ;;  %v7366_v45 = vld [vmem:[%s9001_s1 + $0x50] sm:$0xff] }
 0x2a6   : > { %9053 = vst [vmem:[#allocation17_spill] sm:$0xff] %v7356_v8  ;;  %9054 = vst [vmem:[#allocation18_spill] sm:$0xff] %v7361_v34  ;;  %v7371_v27 = vld [vmem:[%s9001_s1 + $0x58] sm:$0xff]  ;;  %s9124_s21 = smov (!%p1289_p10, %s1293_s21), %s1292_s27  ;;  %v7378_v61 = vld [vmem:[%s9001_s1 + $0x60] sm:$0xff] }
 0x2a7   : > { %9055 = vst [vmem:[#allocation19_spill] sm:$0xff] %v7366_v45  ;;  %9056 = vst [vmem:[#allocation20_spill] sm:$0xff] %v7371_v27  ;;  %v7383_v62 = vld [vmem:[%s9001_s1 + $0x68] sm:$0xff]  ;;  %v7388_v46 = vld [vmem:[%s9001_s1 + $0x70] sm:$0xff]  ;;  %p4940_p11 = scmp.lt.s32.totalorder %s9124_s21, 0  ;;  %s1299_s22 = sadd.s32 2, %s9124_s21 }
 0x2a8   : > { %9057 = vst [vmem:[#allocation21_spill] sm:$0xff] %v7378_v61  ;;  %9058 = vst [vmem:[#allocation22_spill] sm:$0xff] %v7383_v62  ;;  %v7393_v48 = vld [vmem:[%s9001_s1 + $0x78] sm:$0xff]  ;;  %v7398_v51 = vld [vmem:[%s9001_s1 + $0x80] sm:$0xff] }
 0x2a9   : > { %9059 = vst [vmem:[#allocation23_spill] sm:$0xff] %v7388_v46  ;;  %9060 = vst [vmem:[#allocation24_spill] sm:$0xff] %v7393_v48  ;;  %v7403_v52 = vld [vmem:[%s9001_s1 + $0x88] sm:$0xff]  ;;  %v7408_v28 = vld [vmem:[%s9001_s1 + $0x90] sm:$0xff]  ;;  %s9126_s22 = smov (!%p4940_p11, %s1299_s22), %s9124_s21 }
 0x2aa   : > { %v7413_v30 = vld [vmem:[%s9001_s1 + $0x98] sm:$0xff]  ;;  %v7418_v55 = vld [vmem:[%s9001_s1 + $0xa0] sm:$0xff]  ;;  %v7423_v56 = vld [vmem:[%s9001_s1 + $0xa8] sm:$0xff]  ;;  %s7465_s20 = sshll.u32 %s9126_s22, 8 }
 0x2ab   : > { %9061 = vst [vmem:[#allocation25_spill] sm:$0xff] %v7418_v55  ;;  %v7428_v49 = vld [vmem:[%s9001_s1 + $0xb0] sm:$0xff]  ;;  %v7433_v50 = vld [vmem:[%s9001_s1 + $0xb8] sm:$0xff]  ;;  %v7438_v1 = vld [vmem:[%s9001_s1 + $0xc0] sm:$0xff]  ;;  %s2002_s24 = sshra.s32 (!%p4899_p2), %s7465_s20, 3 }
 0x2ac   : > { %9062 = vst [vmem:[#allocation26_spill] sm:$0xff] %v7428_v49  ;;  %9063 = vst [vmem:[#allocation27_spill] sm:$0xff] %v7433_v50  ;;  %v7443_v2 = vld [vmem:[%s9001_s1 + $0xc8] sm:$0xff]  ;;  %v7448_v3 = vld [vmem:[%s9001_s1 + $0xd0] sm:$0xff]  ;;  %1337 = sbr.rel (%p4899_p2) target bundleno = 1087 (0x43f), region = 88  ;;  %s4984_s25 = sshll.u32 (!%p4899_p2), %s2002_s24, 2 }
 0x2ad   : > { %9064 = vst [vmem:[#allocation28_spill] sm:$0xff] %v7438_v1  ;;  %9065 = vst [vmem:[#allocation29_spill] sm:$0xff] %v7443_v2  ;;  %v7453_v4 = vld [vmem:[%s9001_s1 + $0xd8] sm:$0xff]  ;;  %v7458_v6 = vld [vmem:[%s9001_s1 + $0xe0] sm:$0xff]  ;;  %s7625_s26 = scalar_lea.vmem (!%p4899_p2), [#allocation3], %s4984_s25 }
 0x2ae   : > { %9066 = vst [vmem:[#allocation30_spill] sm:$0xff] %v7448_v3  ;;  %9067 = vst [vmem:[#allocation31_spill] sm:$0xff] %v7453_v4  ;;  %v7463_v5 = vld [vmem:[%s9001_s1 + $0xe8] sm:$0xff]  ;;  %v7470_v7 = vld [vmem:[%s9001_s1 + $0xf0] sm:$0xff] }
 0x2af   : > { %9068 = vst [vmem:[#allocation32_spill] sm:$0xff] %v7458_v6  ;;  %9069 = vst [vmem:[#allocation33_spill] sm:$0xff] %v7463_v5  ;;  %v7475_v9 = vld [vmem:[%s9001_s1 + $0xf8] sm:$0xff] }
 0x2b0   : > { %9070 = vst [vmem:[#allocation34_spill] sm:$0xff] %v7470_v7  ;;  %9071 = vst [vmem:[#allocation35_spill] sm:$0xff] %v7475_v9 }
 0x2b1   : > { %v6417_v10 = vld [vmem:[#allocation5 + $0x38] sm:$0xff]   ;;  %v6853_v13 = vmov 0   ;;  %v6418_v14 = vld [vmem:[#allocation5 + $0x30] sm:$0xff]   ;;  %v6419_v15 = vld [vmem:[#allocation5 + $0x28] sm:$0xff]  }
 0x2b2   : > { %6416 = vset.pattern.permute.xlu1 %v6853_v13  ;;  %6415 = vset.pattern.permute.xlu0 %v6853_v13  ;;  %v6420_v16 = vld [vmem:[#allocation5 + $0x20] sm:$0xff]   ;;  %v6421_v17 = vld [vmem:[#allocation5 + $0x18] sm:$0xff]   ;;  %v6422_v18 = vld [vmem:[#allocation5 + $0x10] sm:$0xff]  }
 0x2b3   : > { %1452 = vperm.xlu1 %6416, %v7398_v51   ;;  %1372 = vperm.xlu0 %6415, %v7315_v29   ;;  %v6423_v19 = vld [vmem:[#allocation5 + $0x8] sm:$0xff]   ;;  %v6424_v20 = vld [vmem:[#allocation5] sm:$0xff]   ;;  %v1354_v22 = vld [vmem:[#allocation2 + $0x38] sm:$0xff] }
 0x2b4   : > { %6025 = vmatprep.subr.bf16.mxu0 %v6417_v10  ;;  %6249 = vmatprep.subr.bf16.mxu1 %v6417_v10  ;;  %v1338_v23 = vld [vmem:[#allocation2 + $0xb0] sm:$0xff]  ;;  %v1355_v24 = vld [vmem:[#allocation2 + $0x58] sm:$0xff]  ;;  %v1339_v25 = vld [vmem:[#allocation2] sm:$0xff] }
 0x2b5   : > { %6026 = vmatpush3.bf16.msra.mxu0 %v6417_v10  ;;  %6257 = vmatpush3.bf16.msra.mxu1 %v6417_v10  ;;  %v1341_v36 = vld [vmem:[#allocation2 + $0x18] sm:$0xff]  ;;  %v1357_v44 = vld [vmem:[#allocation2 + $0xc8] sm:$0xff]  ;;  %v1356_v59 = vld [vmem:[#allocation2 + $0x40] sm:$0xff] }
 0x2b6   : > { %6027 = vmatprep.subr.bf16.mxu0 %v6418_v14  ;;  %6250 = vmatprep.subr.bf16.mxu1 %v6418_v14  ;;  %v1340_v37 = vld [vmem:[#allocation2 + $0xd8] sm:$0xff] }
 0x2b7   : > { %1457 = vperm.xlu1 %6416, %v7403_v52   ;;  %1377 = vperm.xlu0 %6415, %v7320_v47  }
 0x2b9   : > { %6028 = vmatpush3.bf16.msra.mxu0 %v6418_v14  ;;  %6258 = vmatpush3.bf16.msra.mxu1 %v6418_v14 }
 0x2ba   : > { %6029 = vmatprep.subr.bf16.mxu0 %v6419_v15  ;;  %6251 = vmatprep.subr.bf16.mxu1 %v6419_v15 }
 0x2bb   : > { %1387 = vperm.xlu1 %6416, %v7331_v54   ;;  %1382 = vperm.xlu0 %6415, %v7325_v53  }
 0x2bd   : > { %6030 = vmatpush3.bf16.msra.mxu0 %v6419_v15  ;;  %6259 = vmatpush3.bf16.msra.mxu1 %v6419_v15 }
 0x2be   : > { %6031 = vmatprep.subr.bf16.mxu0 %v6420_v16  ;;  %6252 = vmatprep.subr.bf16.mxu1 %v6420_v16 }
 0x2bf   : > { %1467 = vperm.xlu1 %6416, %v7413_v30   ;;  %1462 = vperm.xlu0 %6415, %v7408_v28  }
 0x2c1   : > { %6032 = vmatpush3.bf16.msra.mxu0 %v6420_v16  ;;  %6260 = vmatpush3.bf16.msra.mxu1 %v6420_v16  ;;  %v1343_v16 = vld [vmem:[#allocation2 + $0x68] sm:$0xff] }
 0x2c2   : > { %6033 = vmatprep.subr.bf16.mxu0 %v6421_v17  ;;  %6253 = vmatprep.subr.bf16.mxu1 %v6421_v17 }
 0x2c3   : > { %1397 = vperm.xlu1 %6416, %v7341_v0   ;;  %1392 = vperm.xlu0 %6415, %v7336_v63  }
 0x2c5   : > { %6034 = vmatpush3.bf16.msra.mxu0 %v6421_v17  ;;  %6261 = vmatpush3.bf16.msra.mxu1 %v6421_v17  ;;  %v1342_v17 = vld [vmem:[#allocation2 + $0x50] sm:$0xff] }
 0x2c6   : > { %6035 = vmatprep.subr.bf16.mxu0 %v6422_v18  ;;  %6254 = vmatprep.subr.bf16.mxu1 %v6422_v18 }
 0x2c7   : > { %1477 = vperm.xlu1 %6416, %v7423_v56   ;;  %1472 = vperm.xlu0 %6415, %v7418_v55  }
 0x2c9   : > { %6036 = vmatpush3.bf16.msra.mxu0 %v6422_v18  ;;  %6262 = vmatpush3.bf16.msra.mxu1 %v6422_v18 }
 0x2ca   : > { %6037 = vmatprep.subr.bf16.mxu0 %v6423_v19  ;;  %6255 = vmatprep.subr.bf16.mxu1 %v6423_v19 }
 0x2cb   : > { %1407 = vperm.xlu1 %6416, %v7351_v58   ;;  %1402 = vperm.xlu0 %6415, %v7346_v57  }
 0x2cd   : > { %6038 = vmatpush3.bf16.msra.mxu0 %v6423_v19  ;;  %6263 = vmatpush3.bf16.msra.mxu1 %v6423_v19 }
 0x2ce   : > { %6039 = vmatprep.subr.bf16.mxu0 %v6424_v20  ;;  %6256 = vmatprep.subr.bf16.mxu1 %v6424_v20 }
 0x2cf   : > { %1487 = vperm.xlu1 %6416, %v7433_v50   ;;  %1482 = vperm.xlu0 %6415, %v7428_v49  }
 0x2d1   : > { %6040 = vmatpush3.bf16.msra.mxu0 %v6424_v20  ;;  %6264 = vmatpush3.bf16.msra.mxu1 %v6424_v20 }
 0x2d3   : > { %1417 = vperm.xlu1 %6416, %v7361_v34   ;;  %1412 = vperm.xlu0 %6415, %v7356_v8  }
 0x2d7   : > { %1497 = vperm.xlu1 %6416, %v7443_v2   ;;  %1492 = vperm.xlu0 %6415, %v7438_v1  }
 0x2db   : > { %1427 = vperm.xlu1 %6416, %v7371_v27   ;;  %1422 = vperm.xlu0 %6415, %v7366_v45  }
 0x2df   : > { %1507 = vperm.xlu1 %6416, %v7453_v4   ;;  %1502 = vperm.xlu0 %6415, %v7448_v3  }
 0x2e3   : > { %1437 = vperm.xlu1 %6416, %v7383_v62   ;;  %1432 = vperm.xlu0 %6415, %v7378_v61  }
 0x2e7   : > { %1517 = vperm.xlu1 %6416, %v7463_v5   ;;  %1512 = vperm.xlu0 %6415, %v7458_v6  }
 0x2eb   : > { %1447 = vperm.xlu1 %6416, %v7393_v48   ;;  %1442 = vperm.xlu0 %6415, %v7388_v46  }
 0x2ef   : > { %1527 = vperm.xlu1 %6416, %v7475_v9   ;;  %1522 = vperm.xlu0 %6415, %v7470_v7  }
 0x32e   : > { %v7511_v12 = vpop.permute.xlu1 %1452  ;;  %v7513_v21 = vpop.permute.xlu0 %1372 }
 0x32f   : > { %v1546_v31 = vmul.f32 %v7511_v12, %v1354_v22  ;;  %v1530_v32 = vmul.f32 %v7513_v21, %v1338_v23 }
 0x332   : > { %v7515_v11 = vpop.permute.xlu1 %1457  ;;  %v7517_v26 = vpop.permute.xlu0 %1377 }
 0x333   : > { %v1547_v33 = vmul.f32 %v7515_v11, %v1355_v24  ;;  %v1531_v35 = vmul.f32 %v7517_v26, %v1339_v25  ;;  %v1359_v24 = vld [vmem:[#allocation2 + $0x90] sm:$0xff]  ;;  %v1358_v25 = vld [vmem:[#allocation2 + $0xe0] sm:$0xff] }
 0x335   : > { %v1562_v38 = vpack.c.bf16 %v1531_v35, %v1530_v32  ;;  %v1570_v39 = vpack.c.bf16 %v1547_v33, %v1546_v31 }
 0x336   : > { %v7523_v40 = vpop.permute.xlu1 %1387  ;;  %v7525_v41 = vpop.permute.xlu0 %1382 }
 0x337   : > { %v1533_v42 = vmul.f32 %v7523_v40, %v1341_v36  ;;  %v1532_v43 = vmul.f32 %v7525_v41, %v1340_v37  ;;  %6041 = vmatprep.mubr.bf16.mxu0 %v1562_v38  ;;  %6057 = vmatprep.mubr.bf16.mxu1 %v1570_v39  ;;  %v1345_v37 = vld [vmem:[#allocation2 + $0x48] sm:$0xff]  ;;  %v1344_v38 = vld [vmem:[#allocation2 + $0x30] sm:$0xff] }
 0x339   : > { %v1563_v60 = vpack.c.bf16 %v1533_v42, %v1532_v43 }
 0x33a   : > { %v7529_v10 = vpop.permute.xlu1 %1467  ;;  %v7531_v13 = vpop.permute.xlu0 %1462 }
 0x33b   : > { %v1549_v14 = vmul.f32 %v7529_v10, %v1357_v44  ;;  %v1548_v15 = vmul.f32 %v7531_v13, %v1356_v59  ;;  %6042 = vmatmul.mubr.bf16.vlgmr.msra.gmra.mxu0 %v1563_v60  ;;  %v1361_v60 = vld [vmem:[#allocation2 + $0xc0] sm:$0xff] }
 0x33d   : > { %v1571_v18 = vpack.c.bf16 %v1549_v14, %v1548_v15  ;;  %v1360_v14 = vld [vmem:[#allocation2 + $0x70] sm:$0xff] }
 0x33e   : > { %v7535_v19 = vpop.permute.xlu1 %1397  ;;  %v7537_v20 = vpop.permute.xlu0 %1392 }
 0x33f   : > { %v1535_v22 = vmul.f32 %v7535_v19, %v1343_v16  ;;  %v1534_v23 = vmul.f32 %v7537_v20, %v1342_v17  ;;  %6058 = vmatmul.mubr.bf16.vlgmr.msra.gmra.mxu1 %v1571_v18 }
 0x341   : > { %v1564_v31 = vpack.c.bf16 %v1535_v22, %v1534_v23  ;;  %v1347_v23 = vld [vmem:[#allocation2 + $0x88] sm:$0xff] }
 0x342   : > { %v7541_v32 = vpop.permute.xlu1 %1477  ;;  %v7543_v33 = vpop.permute.xlu0 %1472 }
 0x343   : > { %v1551_v35 = vmul.f32 %v7541_v32, %v1359_v24  ;;  %v1550_v36 = vmul.f32 %v7543_v33, %v1358_v25  ;;  %6045 = vmatprep.mubr.bf16.mxu0 %v1564_v31  ;;  %v1346_v24 = vld [vmem:[#allocation2 + $0x80] sm:$0xff] }
 0x345   : > { %v1572_v39 = vpack.c.bf16 %v1551_v35, %v1550_v36 }
 0x346   : > { %v7547_v42 = vpop.permute.xlu1 %1407  ;;  %v7549_v43 = vpop.permute.xlu0 %1402 }
 0x347   : > { %v1537_v44 = vmul.f32 %v7547_v42, %v1345_v37  ;;  %v1536_v59 = vmul.f32 %v7549_v43, %v1344_v38  ;;  %6061 = vmatprep.mubr.bf16.mxu1 %v1572_v39  ;;  %v1363_v38 = vld [vmem:[#allocation2 + $0xd0] sm:$0xff]  ;;  %v1362_v39 = vld [vmem:[#allocation2 + $0xa8] sm:$0xff] }
 0x349   : > { %v1565_v15 = vpack.c.bf16 %v1537_v44, %v1536_v59 }
 0x34a   : > { %v7553_v16 = vpop.permute.xlu1 %1487  ;;  %v7555_v17 = vpop.permute.xlu0 %1482 }
 0x34b   : > { %v1553_v18 = vmul.f32 %v7553_v16, %v1361_v60  ;;  %v1552_v22 = vmul.f32 %v7555_v17, %v1360_v14  ;;  %6046 = vmatmul.mubr.bf16.gmra.mxu0 %v1565_v15 }
 0x34d   : > { %v1573_v25 = vpack.c.bf16 %v1553_v18, %v1552_v22  ;;  %v1349_v18 = vld [vmem:[#allocation2 + $0xb8] sm:$0xff]  ;;  %v1348_v22 = vld [vmem:[#allocation2 + $0xe8] sm:$0xff] }
 0x34e   : > { %v7559_v31 = vpop.permute.xlu1 %1417  ;;  %v7561_v35 = vpop.permute.xlu0 %1412 }
 0x34f   : > { %v1539_v36 = vmul.f32 %v7559_v31, %v1347_v23  ;;  %v1538_v37 = vmul.f32 %v7561_v35, %v1346_v24  ;;  %6062 = vmatmul.mubr.bf16.gmra.mxu1 %v1573_v25 }
 0x351   : > { %v1566_v44 = vpack.c.bf16 %v1539_v36, %v1538_v37  ;;  %v1365_v36 = vld [vmem:[#allocation2 + $0x28] sm:$0xff]  ;;  %v1364_v37 = vld [vmem:[#allocation2 + $0x10] sm:$0xff] }
 0x352   : > { %v7565_v59 = vpop.permute.xlu1 %1497  ;;  %v7567_v60 = vpop.permute.xlu0 %1492 }
 0x353   : > { %v1555_v14 = vmul.f32 %v7565_v59, %v1363_v38  ;;  %v1554_v15 = vmul.f32 %v7567_v60, %v1362_v39  ;;  %6049 = vmatprep.mubr.bf16.mxu0 %v1566_v44 }
 0x355   : > { %v1574_v7 = vpack.c.bf16 %v1555_v14, %v1554_v15  ;;  %v1351_v14 = vld [vmem:[#allocation2 + $0xf0] sm:$0xff]  ;;  %v1350_v15 = vld [vmem:[#allocation2 + $0x60] sm:$0xff] }
 0x356   : > { %v7571_v9 = vpop.permute.xlu1 %1427  ;;  %v7573_v23 = vpop.permute.xlu0 %1422 }
 0x357   : > { %v1541_v24 = vmul.f32 %v7571_v9, %v1349_v18  ;;  %v1540_v25 = vmul.f32 %v7573_v23, %v1348_v22  ;;  %6065 = vmatprep.mubr.bf16.mxu1 %v1574_v7 }
 0x359   : > { %v1567_v46 = vpack.c.bf16 %v1541_v24, %v1540_v25  ;;  %v1367_v24 = vld [vmem:[#allocation2 + $0xf8] sm:$0xff]  ;;  %v1366_v25 = vld [vmem:[#allocation2 + $0xa0] sm:$0xff] }
 0x35a   : > { %v7577_v48 = vpop.permute.xlu1 %1507  ;;  %v7579_v38 = vpop.permute.xlu0 %1502 }
 0x35b   : > { %v1557_v39 = vmul.f32 %v7577_v48, %v1365_v36  ;;  %v1556_v44 = vmul.f32 %v7579_v38, %v1364_v37  ;;  %6050 = vmatmul.mubr.bf16.gmra.mxu0 %v1567_v46 }
 0x35d   : > { %v1575_v6 = vpack.c.bf16 %v1557_v39, %v1556_v44  ;;  %v1353_v39 = vld [vmem:[#allocation2 + $0x78] sm:$0xff]  ;;  %v1352_v44 = vld [vmem:[#allocation2 + $0x8] sm:$0xff] }
 0x35e   : > { %v7583_v5 = vpop.permute.xlu1 %1437  ;;  %v7585_v18 = vpop.permute.xlu0 %1432 }
 0x35f   : > { %v1543_v7 = vmul.f32 %v7583_v5, %v1351_v14  ;;  %v1542_v22 = vmul.f32 %v7585_v18, %v1350_v15  ;;  %6066 = vmatmul.mubr.bf16.gmra.mxu1 %v1575_v6 }
 0x361   : > { %v1568_v61 = vpack.c.bf16 %v1543_v7, %v1542_v22  ;;  %v1369_v7 = vld [vmem:[#allocation2 + $0x98] sm:$0xff]  ;;  %v1368_v22 = vld [vmem:[#allocation2 + $0x20] sm:$0xff] }
 0x362   : > { %v7589_v62 = vpop.permute.xlu1 %1517  ;;  %v7591_v36 = vpop.permute.xlu0 %1512 }
 0x363   : > { %v1559_v46 = vmul.f32 %v7589_v62, %v1367_v24  ;;  %v1558_v37 = vmul.f32 %v7591_v36, %v1366_v25  ;;  %6053 = vmatprep.mubr.bf16.mxu0 %v1568_v61 }
 0x365   : > { %v1576_v3 = vpack.c.bf16 %v1559_v46, %v1558_v37 }
 0x366   : > { %v7595_v4 = vpop.permute.xlu1 %1447  ;;  %v7597_v14 = vpop.permute.xlu0 %1442 }
 0x367   : > { %v1545_v6 = vmul.f32 %v7595_v4, %v1353_v39  ;;  %v1544_v15 = vmul.f32 %v7597_v14, %v1352_v44  ;;  %6069 = vmatprep.mubr.bf16.mxu1 %v1576_v3  ;;  %v7610_v39 = vld [vmem:[%s9004_s4] ss:$0 sm:$0xff] }
 0x369   : > { %v1569_v45 = vpack.c.bf16 %v1545_v6, %v1544_v15 }
 0x36a   : > { %v7601_v24 = vpop.permute.xlu1 %1527  ;;  %v7603_v25 = vpop.permute.xlu0 %1522 }
 0x36b   : > { %v1561_v61 = vmul.f32 %v7601_v24, %v1369_v7  ;;  %v1560_v46 = vmul.f32 %v7603_v25, %v1368_v22  ;;  %6054 = vmatmul.mubr.bf16.gmra.mxu0 %v1569_v45 }
 0x36d   : > { %v1577_v37 = vpack.c.bf16 %v1561_v61, %v1560_v46 }
 0x36f   : > { %6070 = vmatmul.mubr.bf16.gmra.mxu1 %v1577_v37 }
 0x3fb   : > { %v6043_v3 = vpop.f32.mrf.mxu0 }
 0x3fc   : > { %v1692_v44 = vadd.f32 %v6043_v3, %v7610_v39 }
 0x3fd   : > { %v1683_v6 = vpop.f32.mrf.mxu0 }
 0x3fe   : > { %v1684_v15 = vadd.f32 %v7610_v39, %v1683_v6  ;;  %v1812_v27 = vmax.f32 %v1692_v44, 0.0 }
 0x3ff   : > { %v6044_v1 = vpop.f32.mrf.mxu0  ;;  %v6059_v7 = vpop.f32.mrf.mxu1 }
 0x400   : > { %v1695_v22 = vadd.f32 %v6044_v1, %v7610_v39  ;;  %v1756_v45 = vadd.f32 %v6059_v7, %v7610_v39  ;;  %v1810_v61 = vmax.f32 %v1684_v15, 0.0  ;;  %v1844_v3 = vmul.f32 %v1812_v27, %v7525_v41 }
 0x401   : > { %v1686_v46 = vpop.f32.mrf.mxu0  ;;  %v1747_v37 = vpop.f32.mrf.mxu1 }
 0x402   : > { %v1813_v2 = vmax.f32 %v1695_v22, 0.0  ;;  %v1687_v8 = vadd.f32 %v7610_v39, %v1686_v46  ;;  %v1748_v34 = vadd.f32 %v7610_v39, %v1747_v37  ;;  %v1828_v49 = vmax.f32 %v1756_v45, 0.0 }
 0x403   : > { %v6060_v6 = vpop.f32.mrf.mxu1  ;;  %v1842_v7 = vmul.f32 %v1810_v61, %v7513_v21 }
 0x404   : > { %v1845_v44 = vmul.f32 %v1813_v2, %v7523_v40  ;;  %v1811_v50 = vmax.f32 %v1687_v8, 0.0  ;;  %v1759_v1 = vadd.f32 %v6060_v6, %v7610_v39  ;;  %v1826_v15 = vmax.f32 %v1748_v34, 0.0 }
 0x405   : > { %v1750_v57 = vpop.f32.mrf.mxu1  ;;  %v1860_v8 = vmul.f32 %v1828_v49, %v7531_v13 }
 0x406   : > { %v5254_v58 = vpack.c.bf16 %v1845_v44, %v1844_v3  ;;  %v1843_v22 = vmul.f32 %v1811_v50, %v7517_v26  ;;  %v1829_v55 = vmax.f32 %v1759_v1, 0.0  ;;  %v1751_v46 = vadd.f32 %v7610_v39, %v1750_v57 }
 0x407   : > { %v1858_v21 = vmul.f32 %v1826_v15, %v7511_v12 }
 0x408   : > { %5630 = vst [vmem:[%s7625_s26 + $0x8] sm:$0xff] %v5254_v58   ;;  %v5249_v27 = vpack.c.bf16 %v1843_v22, %v1842_v7  ;;  %v1861_v2 = vmul.f32 %v1829_v55, %v7529_v10  ;;  %v1827_v34 = vmax.f32 %v1751_v46, 0.0 }
 0x40a   : > { %5250 = vst [vmem:[%s7625_s26] sm:$0xff] %v5249_v27   ;;  %v5294_v50 = vpack.c.bf16 %v1861_v2, %v1860_v8  ;;  %v1859_v26 = vmul.f32 %v1827_v34, %v7515_v11 }
 0x40b   : > { %v6047_v57 = vpop.f32.mrf.mxu0 }
 0x40c   : > { %5638 = vst [vmem:[%s7625_s26 + $0x48] sm:$0xff] %v5294_v50   ;;  %v5289_v40 = vpack.c.bf16 %v1859_v26, %v1858_v21  ;;  %v1708_v41 = vadd.f32 %v6047_v57, %v7610_v39 }
 0x40d   : > { %v1699_v45 = vpop.f32.mrf.mxu0 }
 0x40e   : > { %5637 = vst [vmem:[%s7625_s26 + $0x40] sm:$0xff] %v5289_v40   ;;  %v1700_v58 = vadd.f32 %v7610_v39, %v1699_v45  ;;  %v1816_v49 = vmax.f32 %v1708_v41, 0.0 }
 0x40f   : > { %v6048_v13 = vpop.f32.mrf.mxu0  ;;  %v6063_v61 = vpop.f32.mrf.mxu1 }
 0x410   : > { %v1711_v55 = vadd.f32 %v6048_v13, %v7610_v39  ;;  %v1772_v10 = vadd.f32 %v6063_v61, %v7610_v39  ;;  %v1814_v12 = vmax.f32 %v1700_v58, 0.0  ;;  %v1848_v44 = vmul.f32 %v1816_v49, %v7549_v43 }
 0x411   : > { %v1702_v37 = vpop.f32.mrf.mxu0  ;;  %v1763_v3 = vpop.f32.mrf.mxu1 }
 0x412   : > { %v1817_v11 = vmax.f32 %v1711_v55, 0.0  ;;  %v1703_v6 = vadd.f32 %v7610_v39, %v1702_v37  ;;  %v1764_v1 = vadd.f32 %v7610_v39, %v1763_v3  ;;  %v1832_v22 = vmax.f32 %v1772_v10, 0.0 }
 0x413   : > { %v6064_v7 = vpop.f32.mrf.mxu1  ;;  %v1846_v27 = vmul.f32 %v1814_v12, %v7537_v20 }
 0x414   : > { %v1849_v15 = vmul.f32 %v1817_v11, %v7547_v42  ;;  %v1815_v46 = vmax.f32 %v1703_v6, 0.0  ;;  %v1775_v8 = vadd.f32 %v6064_v7, %v7610_v39  ;;  %v1830_v2 = vmax.f32 %v1764_v1, 0.0 }
 0x415   : > { %v1766_v34 = vpop.f32.mrf.mxu1  ;;  %v1864_v42 = vmul.f32 %v1832_v22, %v7555_v17 }
 0x416   : > { %v5264_v21 = vpack.c.bf16 %v1849_v15, %v1848_v44  ;;  %v1847_v50 = vmul.f32 %v1815_v46, %v7535_v19  ;;  %v1833_v26 = vmax.f32 %v1775_v8, 0.0  ;;  %v1767_v43 = vadd.f32 %v7610_v39, %v1766_v34 }
 0x417   : > { %v1862_v20 = vmul.f32 %v1830_v2, %v7543_v33 }
 0x418   : > { %5632 = vst [vmem:[%s7625_s26 + $0x18] sm:$0xff] %v5264_v21   ;;  %v5259_v57 = vpack.c.bf16 %v1847_v50, %v1846_v27  ;;  %v1865_v40 = vmul.f32 %v1833_v26, %v7553_v16  ;;  %v1831_v41 = vmax.f32 %v1767_v43, 0.0 }
 0x41a   : > { %5631 = vst [vmem:[%s7625_s26 + $0x10] sm:$0xff] %v5259_v57   ;;  %v5304_v45 = vpack.c.bf16 %v1865_v40, %v1864_v42  ;;  %v1863_v58 = vmul.f32 %v1831_v41, %v7541_v32 }
 0x41b   : > { %v6051_v49 = vpop.f32.mrf.mxu0 }
 0x41c   : > { %5640 = vst [vmem:[%s7625_s26 + $0x58] sm:$0xff] %v5304_v45   ;;  %v5299_v19 = vpack.c.bf16 %v1863_v58, %v1862_v20  ;;  %v1724_v13 = vadd.f32 %v6051_v49, %v7610_v39 }
 0x41d   : > { %v1715_v61 = vpop.f32.mrf.mxu0 }
 0x41e   : > { %5639 = vst [vmem:[%s7625_s26 + $0x50] sm:$0xff] %v5299_v19   ;;  %v1716_v55 = vadd.f32 %v7610_v39, %v1715_v61  ;;  %v1820_v17 = vmax.f32 %v1724_v13, 0.0 }
 0x41f   : > { %v6052_v10 = vpop.f32.mrf.mxu0  ;;  %v6067_v12 = vpop.f32.mrf.mxu1 }
 0x420   : > { %v1727_v16 = vadd.f32 %v6052_v10, %v7610_v39  ;;  %v1788_v37 = vadd.f32 %v6067_v12, %v7610_v39  ;;  %v1818_v33 = vmax.f32 %v1716_v55, 0.0  ;;  %v1852_v44 = vmul.f32 %v1820_v17, %v7573_v23 }
 0x421   : > { %v1718_v3 = vpop.f32.mrf.mxu0  ;;  %v1779_v11 = vpop.f32.mrf.mxu1 }
 0x422   : > { %v1821_v32 = vmax.f32 %v1727_v16, 0.0  ;;  %v1719_v6 = vadd.f32 %v7610_v39, %v1718_v3  ;;  %v1780_v1 = vadd.f32 %v7610_v39, %v1779_v11  ;;  %v1836_v22 = vmax.f32 %v1788_v37, 0.0 }
 0x423   : > { %v6068_v7 = vpop.f32.mrf.mxu1  ;;  %v1850_v27 = vmul.f32 %v1818_v33, %v7561_v35 }
 0x424   : > { %v1853_v15 = vmul.f32 %v1821_v32, %v7571_v9  ;;  %v1819_v46 = vmax.f32 %v1719_v6, 0.0  ;;  %v1791_v8 = vadd.f32 %v6068_v7, %v7610_v39  ;;  %v1834_v2 = vmax.f32 %v1780_v1, 0.0 }
 0x425   : > { %v1782_v34 = vpop.f32.mrf.mxu1  ;;  %v1868_v9 = vmul.f32 %v1836_v22, %v7579_v38 }
 0x426   : > { %v5274_v21 = vpack.c.bf16 %v1853_v15, %v1852_v44  ;;  %v1851_v50 = vmul.f32 %v1819_v46, %v7559_v31  ;;  %v1837_v26 = vmax.f32 %v1791_v8, 0.0  ;;  %v1783_v23 = vadd.f32 %v7610_v39, %v1782_v34 }
 0x427   : > { %v1866_v35 = vmul.f32 %v1834_v2, %v7567_v60 }
 0x428   : > { %5634 = vst [vmem:[%s7625_s26 + $0x28] sm:$0xff] %v5274_v21   ;;  %v5269_v43 = vpack.c.bf16 %v1851_v50, %v1850_v27  ;;  %v1869_v42 = vmul.f32 %v1837_v26, %v7577_v48  ;;  %v1835_v57 = vmax.f32 %v1783_v23, 0.0 }
 0x42a   : > { %5633 = vst [vmem:[%s7625_s26 + $0x20] sm:$0xff] %v5269_v43   ;;  %v5314_v40 = vpack.c.bf16 %v1869_v42, %v1868_v9  ;;  %v1867_v41 = vmul.f32 %v1835_v57, %v7565_v59 }
 0x42b   : > { %v6055_v20 = vpop.f32.mrf.mxu0 }
 0x42c   : > { %5642 = vst [vmem:[%s7625_s26 + $0x68] sm:$0xff] %v5314_v40   ;;  %v5309_v31 = vpack.c.bf16 %v1867_v41, %v1866_v35  ;;  %v1740_v45 = vadd.f32 %v6055_v20, %v7610_v39 }
 0x42d   : > { %v1731_v58 = vpop.f32.mrf.mxu0 }
 0x42e   : > { %5641 = vst [vmem:[%s7625_s26 + $0x60] sm:$0xff] %v5309_v31   ;;  %v1732_v49 = vadd.f32 %v7610_v39, %v1731_v58  ;;  %v1824_v38 = vmax.f32 %v1740_v45, 0.0 }
 0x42f   : > { %v6056_v19 = vpop.f32.mrf.mxu0  ;;  %v6071_v13 = vpop.f32.mrf.mxu1 }
 0x430   : > { %v1743_v48 = vadd.f32 %v6056_v19, %v7610_v39  ;;  %v1804_v61 = vadd.f32 %v6071_v13, %v7610_v39  ;;  %v1822_v60 = vmax.f32 %v1732_v49, 0.0  ;;  %v1856_v12 = vmul.f32 %v1824_v38, %v7597_v14 }
 0x431   : > { %v1734_v55 = vpop.f32.mrf.mxu0  ;;  %v1795_v17 = vpop.f32.mrf.mxu1 }
 0x432   : > { %v1825_v59 = vmax.f32 %v1743_v48, 0.0  ;;  %v1735_v10 = vadd.f32 %v7610_v39, %v1734_v55  ;;  %v1796_v16 = vadd.f32 %v7610_v39, %v1795_v17  ;;  %v1840_v3 = vmax.f32 %v1804_v61, 0.0 }
 0x433   : > { %v6072_v37 = vpop.f32.mrf.mxu1  ;;  %v1854_v6 = vmul.f32 %v1822_v60, %v7585_v18 }
 0x434   : > { %v1857_v33 = vmul.f32 %v1825_v59, %v7595_v4  ;;  %v1823_v11 = vmax.f32 %v1735_v10, 0.0  ;;  %v1807_v32 = vadd.f32 %v6072_v37, %v7610_v39  ;;  %v1838_v44 = vmax.f32 %v1796_v16, 0.0 }
 0x435   : > { %v1798_v1 = vpop.f32.mrf.mxu1  ;;  %v1872_v4 = vmul.f32 %v1840_v3, %v7603_v25 }
 0x436   : > { %v5284_v7 = vpack.c.bf16 %v1857_v33, %v1856_v12  ;;  %v1855_v15 = vmul.f32 %v1823_v11, %v7583_v5  ;;  %v1841_v14 = vmax.f32 %v1807_v32, 0.0  ;;  %v1799_v22 = vadd.f32 %v7610_v39, %v1798_v1 }
 0x437   : > { %v1870_v18 = vmul.f32 %v1838_v44, %v7591_v36 }
 0x438   : > { %5636 = vst [vmem:[%s7625_s26 + $0x38] sm:$0xff] %v5284_v7   ;;  %v5279_v46 = vpack.c.bf16 %v1855_v15, %v1854_v6  ;;  %v1873_v8 = vmul.f32 %v1841_v14, %v7601_v24  ;;  %v1839_v27 = vmax.f32 %v1799_v22, 0.0 }
 0x43a   : > { %5635 = vst [vmem:[%s7625_s26 + $0x30] sm:$0xff] %v5279_v46   ;;  %v5324_v2 = vpack.c.bf16 %v1873_v8, %v1872_v4  ;;  %v1871_v34 = vmul.f32 %v1839_v27, %v7589_v62 }
 0x43c   : > { %5644 = vst [vmem:[%s7625_s26 + $0x78] sm:$0xff] %v5324_v2   ;;  %v5319_v21 = vpack.c.bf16 %v1871_v34, %v1870_v18 }
 0x43e   : > { %5643 = vst [vmem:[%s7625_s26 + $0x70] sm:$0xff] %v5319_v21  }
 0x43f PF: > { %p4985_p12 = scmp.ne.s32.totalorder %s6837_s30, 1 }
 0x440   : > { %s2706_s21 = sshra.s32 (!%p4985_p12), %s7465_s20, 3  ;;  %p5060_p6 = scmp.ne.s32.totalorder (!%p4985_p12), %s6837_s30, 4 }
 0x441   : > { %2041 = sbr.rel (%p4985_p12) target bundleno = 2099 (0x833), region = 92  ;;  %s5027_s29 = sshll.u32 (!%p4985_p12), %s2706_s21, 2 }
 0x442   : > { %s7864_s16 = scalar_lea.vmem (!%p4985_p12), [#allocation3], %s5027_s29 }
 0x446   : > { %v6427_v5 = vld [vmem:[#allocation8 + $0x38] sm:$0xff]   ;;  %v6854_v39 = vmov 0   ;;  %v6428_v25 = vld [vmem:[#allocation8 + $0x30] sm:$0xff]   ;;  %v6429_v62 = vld [vmem:[#allocation8 + $0x28] sm:$0xff]  }
 0x447   : > { %6426 = vset.pattern.permute.xlu1 %v6854_v39  ;;  %6425 = vset.pattern.permute.xlu0 %v6854_v39  ;;  %v6430_v36 = vld [vmem:[#allocation8 + $0x20] sm:$0xff]   ;;  %v6431_v24 = vld [vmem:[#allocation8 + $0x18] sm:$0xff]   ;;  %v6432_v50 = vld [vmem:[#allocation8 + $0x10] sm:$0xff]  }
 0x448   : > { %2156 = vperm.xlu1 %6426, %v7398_v51   ;;  %2076 = vperm.xlu0 %6425, %v7315_v29   ;;  %v6433_v26 = vld [vmem:[#allocation8 + $0x8] sm:$0xff]   ;;  %v9072_v23 = vld [vmem:[#allocation25_spill] sm:$0xff]  ;;  %v6434_v9 = vld [vmem:[#allocation8] sm:$0xff]  }
 0x449   : > { %6073 = vmatprep.subr.bf16.mxu0 %v6427_v5  ;;  %6265 = vmatprep.subr.bf16.mxu1 %v6427_v5  ;;  %v9073_v43 = vld [vmem:[#allocation16_spill] sm:$0xff]  ;;  %v9074_v42 = vld [vmem:[#allocation15_spill] sm:$0xff]  ;;  %v9076_v35 = vld [vmem:[#allocation26_spill] sm:$0xff] }
 0x44a   : > { %6074 = vmatpush3.bf16.msra.mxu0 %v6427_v5  ;;  %6273 = vmatpush3.bf16.msra.mxu1 %v6427_v5  ;;  %v9075_v57 = vld [vmem:[#allocation27_spill] sm:$0xff]  ;;  %v9077_v40 = vld [vmem:[#allocation18_spill] sm:$0xff]  ;;  %v9078_v41 = vld [vmem:[#allocation17_spill] sm:$0xff] }
 0x44b   : > { %6075 = vmatprep.subr.bf16.mxu0 %v6428_v25  ;;  %6266 = vmatprep.subr.bf16.mxu1 %v6428_v25  ;;  %v9079_v20 = vld [vmem:[#allocation29_spill] sm:$0xff]  ;;  %v9080_v31 = vld [vmem:[#allocation28_spill] sm:$0xff]  ;;  %v9082_v58 = vld [vmem:[#allocation19_spill] sm:$0xff] }
 0x44c   : > { %2161 = vperm.xlu1 %6426, %v7403_v52   ;;  %2081 = vperm.xlu0 %6425, %v7320_v47   ;;  %v9081_v45 = vld [vmem:[#allocation20_spill] sm:$0xff]  ;;  %v9083_v49 = vld [vmem:[#allocation31_spill] sm:$0xff]  ;;  %v9084_v38 = vld [vmem:[#allocation30_spill] sm:$0xff] }
 0x44d   : > { %v9085_v19 = vld [vmem:[#allocation22_spill] sm:$0xff]  ;;  %v9086_v13 = vld [vmem:[#allocation21_spill] sm:$0xff]  ;;  %v9088_v61 = vld [vmem:[#allocation32_spill] sm:$0xff] }
 0x44e   : > { %6076 = vmatpush3.bf16.msra.mxu0 %v6428_v25  ;;  %6274 = vmatpush3.bf16.msra.mxu1 %v6428_v25  ;;  %v9087_v48 = vld [vmem:[#allocation33_spill] sm:$0xff]  ;;  %v9089_v60 = vld [vmem:[#allocation24_spill] sm:$0xff]  ;;  %v9090_v55 = vld [vmem:[#allocation23_spill] sm:$0xff] }
 0x44f   : > { %6077 = vmatprep.subr.bf16.mxu0 %v6429_v62  ;;  %6267 = vmatprep.subr.bf16.mxu1 %v6429_v62  ;;  %v9091_v17 = vld [vmem:[#allocation35_spill] sm:$0xff]  ;;  %v9092_v59 = vld [vmem:[#allocation34_spill] sm:$0xff]  ;;  %v2042_v37 = vld [vmem:[#allocation2 + $0xb0] sm:$0xff] }
 0x450   : > { %2091 = vperm.xlu1 %6426, %v7331_v54   ;;  %2086 = vperm.xlu0 %6425, %v7325_v53   ;;  %v2058_v16 = vld [vmem:[#allocation2 + $0x38] sm:$0xff]  ;;  %v2043_v3 = vld [vmem:[#allocation2] sm:$0xff]  ;;  %v2061_v2 = vld [vmem:[#allocation2 + $0xc8] sm:$0xff] }
 0x451   : > { %v2059_v33 = vld [vmem:[#allocation2 + $0x58] sm:$0xff]  ;;  %v2060_v34 = vld [vmem:[#allocation2 + $0x40] sm:$0xff] }
 0x452   : > { %6078 = vmatpush3.bf16.msra.mxu0 %v6429_v62  ;;  %6275 = vmatpush3.bf16.msra.mxu1 %v6429_v62  ;;  %v2045_v15 = vld [vmem:[#allocation2 + $0x18] sm:$0xff] }
 0x453   : > { %6079 = vmatprep.subr.bf16.mxu0 %v6430_v36  ;;  %6268 = vmatprep.subr.bf16.mxu1 %v6430_v36  ;;  %v2044_v14 = vld [vmem:[#allocation2 + $0xd8] sm:$0xff] }
 0x454   : > { %2171 = vperm.xlu1 %6426, %v7413_v30   ;;  %2166 = vperm.xlu0 %6425, %v7408_v28  }
 0x456   : > { %6080 = vmatpush3.bf16.msra.mxu0 %v6430_v36  ;;  %6276 = vmatpush3.bf16.msra.mxu1 %v6430_v36  ;;  %v2047_v36 = vld [vmem:[#allocation2 + $0x68] sm:$0xff] }
 0x457   : > { %6081 = vmatprep.subr.bf16.mxu0 %v6431_v24  ;;  %6269 = vmatprep.subr.bf16.mxu1 %v6431_v24 }
 0x458   : > { %2101 = vperm.xlu1 %6426, %v7341_v0   ;;  %2096 = vperm.xlu0 %6425, %v7336_v63  }
 0x45a   : > { %6082 = vmatpush3.bf16.msra.mxu0 %v6431_v24  ;;  %6277 = vmatpush3.bf16.msra.mxu1 %v6431_v24  ;;  %v2046_v24 = vld [vmem:[#allocation2 + $0x50] sm:$0xff] }
 0x45b   : > { %6083 = vmatprep.subr.bf16.mxu0 %v6432_v50  ;;  %6270 = vmatprep.subr.bf16.mxu1 %v6432_v50 }
 0x45c   : > { %2181 = vperm.xlu1 %6426, %v7423_v56   ;;  %2176 = vperm.xlu0 %6425, %v9072_v23  }
 0x45e   : > { %6084 = vmatpush3.bf16.msra.mxu0 %v6432_v50  ;;  %6278 = vmatpush3.bf16.msra.mxu1 %v6432_v50 }
 0x45f   : > { %6085 = vmatprep.subr.bf16.mxu0 %v6433_v26  ;;  %6271 = vmatprep.subr.bf16.mxu1 %v6433_v26 }
 0x460   : > { %2111 = vperm.xlu1 %6426, %v9073_v43   ;;  %2106 = vperm.xlu0 %6425, %v9074_v42   ;;  %v2063_v42 = vld [vmem:[#allocation2 + $0x90] sm:$0xff] }
 0x462   : > { %6086 = vmatpush3.bf16.msra.mxu0 %v6433_v26  ;;  %6279 = vmatpush3.bf16.msra.mxu1 %v6433_v26 }
 0x463   : > { %6087 = vmatprep.subr.bf16.mxu0 %v6434_v9  ;;  %6272 = vmatprep.subr.bf16.mxu1 %v6434_v9 }
 0x464   : > { %2191 = vperm.xlu1 %6426, %v9075_v57   ;;  %2186 = vperm.xlu0 %6425, %v9076_v35   ;;  %v2062_v57 = vld [vmem:[#allocation2 + $0xe0] sm:$0xff] }
 0x466   : > { %6088 = vmatpush3.bf16.msra.mxu0 %v6434_v9  ;;  %6280 = vmatpush3.bf16.msra.mxu1 %v6434_v9 }
 0x468   : > { %2121 = vperm.xlu1 %6426, %v9077_v40   ;;  %2116 = vperm.xlu0 %6425, %v9078_v41  }
 0x46c   : > { %2201 = vperm.xlu1 %6426, %v9079_v20   ;;  %2196 = vperm.xlu0 %6425, %v9080_v31  }
 0x470   : > { %2131 = vperm.xlu1 %6426, %v9081_v45   ;;  %2126 = vperm.xlu0 %6425, %v9082_v58   ;;  %v2049_v45 = vld [vmem:[#allocation2 + $0x48] sm:$0xff]  ;;  %v2048_v58 = vld [vmem:[#allocation2 + $0x30] sm:$0xff] }
 0x474   : > { %2211 = vperm.xlu1 %6426, %v9083_v49   ;;  %2206 = vperm.xlu0 %6425, %v9084_v38  }
 0x478   : > { %2141 = vperm.xlu1 %6426, %v9085_v19   ;;  %2136 = vperm.xlu0 %6425, %v9086_v13  }
 0x47c   : > { %2221 = vperm.xlu1 %6426, %v9087_v48   ;;  %2216 = vperm.xlu0 %6425, %v9088_v61   ;;  %v2065_v61 = vld [vmem:[#allocation2 + $0xc0] sm:$0xff] }
 0x480   : > { %2151 = vperm.xlu1 %6426, %v9089_v60   ;;  %2146 = vperm.xlu0 %6425, %v9090_v55   ;;  %v2064_v60 = vld [vmem:[#allocation2 + $0x70] sm:$0xff] }
 0x484   : > { %2231 = vperm.xlu1 %6426, %v9091_v17   ;;  %2226 = vperm.xlu0 %6425, %v9092_v59  }
 0x4c3   : > { %v7728_v10 = vpop.permute.xlu1 %2156  ;;  %v7730_v12 = vpop.permute.xlu0 %2076 }
 0x4c4   : > { %v2250_v6 = vmul.f32 %v7728_v10, %v2058_v16  ;;  %v2234_v44 = vmul.f32 %v7730_v12, %v2042_v37 }
 0x4c7   : > { %v7732_v11 = vpop.permute.xlu1 %2161  ;;  %v7734_v32 = vpop.permute.xlu0 %2081 }
 0x4c8   : > { %v2251_v1 = vmul.f32 %v7732_v11, %v2059_v33  ;;  %v2235_v7 = vmul.f32 %v7734_v32, %v2043_v3  ;;  %v2051_v33 = vld [vmem:[#allocation2 + $0x88] sm:$0xff]  ;;  %v2050_v3 = vld [vmem:[#allocation2 + $0x80] sm:$0xff] }
 0x4ca   : > { %v2266_v22 = vpack.c.bf16 %v2235_v7, %v2234_v44  ;;  %v2274_v4 = vpack.c.bf16 %v2251_v1, %v2250_v6 }
 0x4cb   : > { %v7740_v46 = vpop.permute.xlu1 %2091  ;;  %v7742_v8 = vpop.permute.xlu0 %2086 }
 0x4cc   : > { %v2237_v27 = vmul.f32 %v7740_v46, %v2045_v15  ;;  %v2236_v18 = vmul.f32 %v7742_v8, %v2044_v14  ;;  %6089 = vmatprep.mubr.bf16.mxu0 %v2266_v22  ;;  %6105 = vmatprep.mubr.bf16.mxu1 %v2274_v4  ;;  %v2067_v14 = vld [vmem:[#allocation2 + $0xd0] sm:$0xff]  ;;  %v2066_v22 = vld [vmem:[#allocation2 + $0xa8] sm:$0xff] }
 0x4ce   : > { %v2267_v21 = vpack.c.bf16 %v2237_v27, %v2236_v18 }
 0x4cf   : > { %v7746_v5 = vpop.permute.xlu1 %2171  ;;  %v7748_v39 = vpop.permute.xlu0 %2166 }
 0x4d0   : > { %v2253_v25 = vmul.f32 %v7746_v5, %v2061_v2  ;;  %v2252_v62 = vmul.f32 %v7748_v39, %v2060_v34  ;;  %6090 = vmatmul.mubr.bf16.vlgmr.msra.gmra.mxu0 %v2267_v21  ;;  %v2053_v21 = vld [vmem:[#allocation2 + $0xb8] sm:$0xff] }
 0x4d2   : > { %v2275_v50 = vpack.c.bf16 %v2253_v25, %v2252_v62  ;;  %v2052_v25 = vld [vmem:[#allocation2 + $0xe8] sm:$0xff] }
 0x4d3   : > { %v7752_v26 = vpop.permute.xlu1 %2101  ;;  %v7754_v23 = vpop.permute.xlu0 %2096 }
 0x4d4   : > { %v2239_v9 = vmul.f32 %v7752_v26, %v2047_v36  ;;  %v2238_v43 = vmul.f32 %v7754_v23, %v2046_v24  ;;  %6106 = vmatmul.mubr.bf16.vlgmr.msra.gmra.mxu1 %v2275_v50 }
 0x4d6   : > { %v2268_v35 = vpack.c.bf16 %v2239_v9, %v2238_v43  ;;  %v2069_v43 = vld [vmem:[#allocation2 + $0x28] sm:$0xff] }
 0x4d7   : > { %v7758_v40 = vpop.permute.xlu1 %2181  ;;  %v7760_v41 = vpop.permute.xlu0 %2176 }
 0x4d8   : > { %v2255_v20 = vmul.f32 %v7758_v40, %v2063_v42  ;;  %v2254_v31 = vmul.f32 %v7760_v41, %v2062_v57  ;;  %6093 = vmatprep.mubr.bf16.mxu0 %v2268_v35  ;;  %v2068_v42 = vld [vmem:[#allocation2 + $0x10] sm:$0xff] }
 0x4da   : > { %v2276_v49 = vpack.c.bf16 %v2255_v20, %v2254_v31 }
 0x4db   : > { %v7764_v38 = vpop.permute.xlu1 %2111  ;;  %v7766_v19 = vpop.permute.xlu0 %2106 }
 0x4dc   : > { %v2241_v13 = vmul.f32 %v7764_v38, %v2049_v45  ;;  %v2240_v48 = vmul.f32 %v7766_v19, %v2048_v58  ;;  %6109 = vmatprep.mubr.bf16.mxu1 %v2276_v49  ;;  %v2055_v58 = vld [vmem:[#allocation2 + $0xf0] sm:$0xff]  ;;  %v2054_v49 = vld [vmem:[#allocation2 + $0x60] sm:$0xff] }
 0x4de   : > { %v2269_v55 = vpack.c.bf16 %v2241_v13, %v2240_v48 }
 0x4df   : > { %v7770_v17 = vpop.permute.xlu1 %2191  ;;  %v7772_v59 = vpop.permute.xlu0 %2186 }
 0x4e0   : > { %v2257_v16 = vmul.f32 %v7770_v17, %v2065_v61  ;;  %v2256_v37 = vmul.f32 %v7772_v59, %v2064_v60  ;;  %6094 = vmatmul.mubr.bf16.gmra.mxu0 %v2269_v55 }
 0x4e2   : > { %v2277_v6 = vpack.c.bf16 %v2257_v16, %v2256_v37  ;;  %v2071_v16 = vld [vmem:[#allocation2 + $0xf8] sm:$0xff]  ;;  %v2070_v37 = vld [vmem:[#allocation2 + $0xa0] sm:$0xff] }
 0x4e3   : > { %v7776_v44 = vpop.permute.xlu1 %2121  ;;  %v7778_v1 = vpop.permute.xlu0 %2116 }
 0x4e4   : > { %v2243_v7 = vmul.f32 %v7776_v44, %v2051_v33  ;;  %v2242_v15 = vmul.f32 %v7778_v1, %v2050_v3  ;;  %6110 = vmatmul.mubr.bf16.gmra.mxu1 %v2277_v6 }
 0x4e6   : > { %v2270_v4 = vpack.c.bf16 %v2243_v7, %v2242_v15 }
 0x4e7   : > { %v7782_v27 = vpop.permute.xlu1 %2201  ;;  %v7784_v18 = vpop.permute.xlu0 %2196 }
 0x4e8   : > { %v2259_v2 = vmul.f32 %v7782_v27, %v2067_v14  ;;  %v2258_v34 = vmul.f32 %v7784_v18, %v2066_v22  ;;  %6097 = vmatprep.mubr.bf16.mxu0 %v2270_v4  ;;  %v2057_v14 = vld [vmem:[#allocation2 + $0x78] sm:$0xff]  ;;  %v2056_v22 = vld [vmem:[#allocation2 + $0x8] sm:$0xff] }
 0x4ea   : > { %v2278_v62 = vpack.c.bf16 %v2259_v2, %v2258_v34 }
 0x4eb   : > { %v7788_v36 = vpop.permute.xlu1 %2131  ;;  %v7790_v24 = vpop.permute.xlu0 %2126 }
 0x4ec   : > { %v2245_v50 = vmul.f32 %v7788_v36, %v2053_v21  ;;  %v2244_v9 = vmul.f32 %v7790_v24, %v2052_v25  ;;  %6113 = vmatprep.mubr.bf16.mxu1 %v2278_v62  ;;  %v2073_v62 = vld [vmem:[#allocation2 + $0x98] sm:$0xff] }
 0x4ee   : > { %v2271_v57 = vpack.c.bf16 %v2245_v50, %v2244_v9  ;;  %v2072_v50 = vld [vmem:[#allocation2 + $0x20] sm:$0xff] }
 0x4ef   : > { %v7794_v35 = vpop.permute.xlu1 %2211  ;;  %v7796_v20 = vpop.permute.xlu0 %2206 }
 0x4f0   : > { %v2261_v31 = vmul.f32 %v7794_v35, %v2069_v43  ;;  %v2260_v45 = vmul.f32 %v7796_v20, %v2068_v42  ;;  %6098 = vmatmul.mubr.bf16.gmra.mxu0 %v2271_v57 }
 0x4f2   : > { %v2279_v13 = vpack.c.bf16 %v2261_v31, %v2260_v45 }
 0x4f3   : > { %v7800_v48 = vpop.permute.xlu1 %2141  ;;  %v7802_v61 = vpop.permute.xlu0 %2136 }
 0x4f4   : > { %v2247_v60 = vmul.f32 %v7800_v48, %v2055_v58  ;;  %v2246_v55 = vmul.f32 %v7802_v61, %v2054_v49  ;;  %6114 = vmatmul.mubr.bf16.gmra.mxu1 %v2279_v13  ;;  %v7827_v58 = vld [vmem:[%s9006_s6] ss:$0 sm:$0xff] }
 0x4f6   : > { %v2272_v33 = vpack.c.bf16 %v2247_v60, %v2246_v55 }
 0x4f7   : > { %v7806_v3 = vpop.permute.xlu1 %2221  ;;  %v7808_v6 = vpop.permute.xlu0 %2216 }
 0x4f8   : > { %v2263_v7 = vmul.f32 %v7806_v3, %v2071_v16  ;;  %v2262_v15 = vmul.f32 %v7808_v6, %v2070_v37  ;;  %6101 = vmatprep.mubr.bf16.mxu0 %v2272_v33 }
 0x4fa   : > { %v2280_v4 = vpack.c.bf16 %v2263_v7, %v2262_v15 }
 0x4fb   : > { %v7812_v2 = vpop.permute.xlu1 %2151  ;;  %v7814_v34 = vpop.permute.xlu0 %2146 }
 0x4fc   : > { %v2249_v21 = vmul.f32 %v7812_v2, %v2057_v14  ;;  %v2248_v25 = vmul.f32 %v7814_v34, %v2056_v22  ;;  %6117 = vmatprep.mubr.bf16.mxu1 %v2280_v4 }
 0x4fe   : > { %v2273_v9 = vpack.c.bf16 %v2249_v21, %v2248_v25 }
 0x4ff   : > { %v7818_v43 = vpop.permute.xlu1 %2231  ;;  %v7820_v42 = vpop.permute.xlu0 %2226 }
 0x500   : > { %v2265_v57 = vmul.f32 %v7818_v43, %v2073_v62  ;;  %v2264_v31 = vmul.f32 %v7820_v42, %v2072_v50  ;;  %6102 = vmatmul.mubr.bf16.gmra.mxu0 %v2273_v9 }
 0x502   : > { %v2281_v45 = vpack.c.bf16 %v2265_v57, %v2264_v31 }
 0x504   : > { %6118 = vmatmul.mubr.bf16.gmra.mxu1 %v2281_v45 }
 0x590   : > { %v6091_v49 = vpop.f32.mrf.mxu0 }
 0x591   : > { %v2396_v13 = vadd.f32 %v6091_v49, %v7827_v58 }
 0x592   : > { %v2387_v60 = vpop.f32.mrf.mxu0 }
 0x593   : > { %v2388_v55 = vadd.f32 %v7827_v58, %v2387_v60  ;;  %v7831_v16 = vmax.f32 %v2396_v13, 0.0 }
 0x594   : > { %v6092_v37 = vpop.f32.mrf.mxu0  ;;  %v6107_v33 = vpop.f32.mrf.mxu1 }
 0x595   : > { %v2399_v7 = vadd.f32 %v6092_v37, %v7827_v58  ;;  %v7835_v15 = vmax.f32 %v2388_v55, 0.0  ;;  %v2460_v14 = vadd.f32 %v6107_v33, %v7827_v58  ;;  %v2548_v62 = vmul.f32 %v7831_v16, %v7742_v8 }
 0x596   : > { %v2390_v22 = vpop.f32.mrf.mxu0  ;;  %v2451_v4 = vpop.f32.mrf.mxu1  ;;  %v2744_v50 = vmul.f32 0.1, %v7831_v16 }
 0x597   : > { %v7838_v21 = vmax.f32 %v2399_v7, 0.0  ;;  %v2391_v25 = vadd.f32 %v7827_v58, %v2390_v22  ;;  %v7844_v9 = vmax.f32 %v2460_v14, 0.0  ;;  %v2452_v57 = vadd.f32 %v7827_v58, %v2451_v4 }
 0x598   : > { %v6108_v31 = vpop.f32.mrf.mxu1  ;;  %v2546_v55 = vmul.f32 %v7835_v15, %v7730_v12  ;;  %v2742_v8 = vmul.f32 0.1, %v7835_v15 }
 0x599   : > { %v2549_v45 = vmul.f32 %v7838_v21, %v7740_v46  ;;  %v2745_v49 = vmul.f32 0.1, %v7838_v21  ;;  %v7850_v13 = vmax.f32 %v2391_v25, 0.0  ;;  %v2463_v60 = vadd.f32 %v6108_v31, %v7827_v58 }
 0x59a   : > { %v7856_v37 = vmax.f32 %v2452_v57, 0.0  ;;  %v2454_v33 = vpop.f32.mrf.mxu1  ;;  %v2564_v12 = vmul.f32 %v7844_v9, %v7748_v39 }
 0x59b   : > { %v5334_v7 = vpack.c.bf16 %v2549_v45, %v2548_v62  ;;  %v5414_v14 = vpack.c.bf16 %v2745_v49, %v2744_v50  ;;  %v2547_v22 = vmul.f32 %v7850_v13, %v7734_v32  ;;  %v2743_v46 = vmul.f32 0.1, %v7850_v13 }
 0x59c   : > { %v7861_v4 = vmax.f32 %v2463_v60, 0.0  ;;  %v2455_v25 = vadd.f32 %v7827_v58, %v2454_v33  ;;  %v2760_v32 = vmul.f32 0.1, %v7844_v9  ;;  %v2562_v49 = vmul.f32 %v7856_v37, %v7728_v10 }
 0x59d   : > { %5645 = vst [vmem:[%s7864_s16 + $0x8] sm:$0xff] %v5334_v7   ;;  %5660 = vst [vmem:[#allocation4 + $0x48] sm:$0xff] %v5414_v14   ;;  %v5329_v62 = vpack.c.bf16 %v2547_v22, %v2546_v55  ;;  %v5409_v50 = vpack.c.bf16 %v2743_v46, %v2742_v8  ;;  %v2758_v39 = vmul.f32 0.1, %v7856_v37 }
 0x59e   : > { %v2565_v57 = vmul.f32 %v7861_v4, %v7746_v5  ;;  %v2761_v31 = vmul.f32 0.1, %v7861_v4  ;;  %v7873_v45 = vmax.f32 %v2455_v25, 0.0 }
 0x59f   : > { %5330 = vst [vmem:[%s7864_s16] sm:$0xff] %v5329_v62   ;;  %5410 = vst [vmem:[#allocation4] sm:$0xff] %v5409_v50  }
 0x5a0   : > { %v5374_v60 = vpack.c.bf16 %v2565_v57, %v2564_v12  ;;  %v5454_v55 = vpack.c.bf16 %v2761_v31, %v2760_v32  ;;  %v2563_v8 = vmul.f32 %v7873_v45, %v7732_v11  ;;  %v2759_v33 = vmul.f32 0.1, %v7873_v45  ;;  %v6095_v5 = vpop.f32.mrf.mxu0 }
 0x5a1   : > { %v2412_v7 = vadd.f32 %v6095_v5, %v7827_v58 }
 0x5a2   : > { %5653 = vst [vmem:[%s7864_s16 + $0x48] sm:$0xff] %v5374_v60   ;;  %5668 = vst [vmem:[#allocation4 + $0x60] sm:$0xff] %v5454_v55   ;;  %v5369_v14 = vpack.c.bf16 %v2563_v8, %v2562_v49  ;;  %v5449_v22 = vpack.c.bf16 %v2759_v33, %v2758_v39  ;;  %v2403_v46 = vpop.f32.mrf.mxu0 }
 0x5a3   : > { %v2404_v25 = vadd.f32 %v7827_v58, %v2403_v46  ;;  %v7886_v10 = vmax.f32 %v2412_v7, 0.0 }
 0x5a4   : > { %5652 = vst [vmem:[%s7864_s16 + $0x40] sm:$0xff] %v5369_v14   ;;  %5667 = vst [vmem:[#allocation4 + $0x70] sm:$0xff] %v5449_v22   ;;  %v6096_v12 = vpop.f32.mrf.mxu0  ;;  %v6111_v62 = vpop.f32.mrf.mxu1 }
 0x5a5   : > { %v2415_v11 = vadd.f32 %v6096_v12, %v7827_v58  ;;  %v7889_v50 = vmax.f32 %v2404_v25, 0.0  ;;  %v2476_v32 = vadd.f32 %v6111_v62, %v7827_v58  ;;  %v2552_v39 = vmul.f32 %v7886_v10, %v7766_v19 }
 0x5a6   : > { %v2406_v57 = vpop.f32.mrf.mxu0  ;;  %v2467_v31 = vpop.f32.mrf.mxu1  ;;  %v2748_v55 = vmul.f32 0.1, %v7886_v10 }
 0x5a7   : > { %v7892_v60 = vmax.f32 %v2415_v11, 0.0  ;;  %v2407_v49 = vadd.f32 %v7827_v58, %v2406_v57  ;;  %v7898_v8 = vmax.f32 %v2476_v32, 0.0  ;;  %v2468_v33 = vadd.f32 %v7827_v58, %v2467_v31 }
 0x5a8   : > { %v6112_v5 = vpop.f32.mrf.mxu1  ;;  %v2550_v19 = vmul.f32 %v7889_v50, %v7754_v23  ;;  %v2746_v25 = vmul.f32 0.1, %v7889_v50 }
 0x5a9   : > { %v2553_v7 = vmul.f32 %v7892_v60, %v7764_v38  ;;  %v2749_v14 = vmul.f32 0.1, %v7892_v60  ;;  %v7904_v22 = vmax.f32 %v2407_v49, 0.0  ;;  %v2479_v46 = vadd.f32 %v6112_v5, %v7827_v58 }
 0x5aa   : > { %v7910_v12 = vmax.f32 %v2468_v33, 0.0  ;;  %v2470_v62 = vpop.f32.mrf.mxu1  ;;  %v2568_v23 = vmul.f32 %v7898_v8, %v7772_v59 }
 0x5ab   : > { %v5344_v11 = vpack.c.bf16 %v2553_v7, %v2552_v39  ;;  %v5424_v32 = vpack.c.bf16 %v2749_v14, %v2748_v55  ;;  %v2551_v38 = vmul.f32 %v7904_v22, %v7752_v26  ;;  %v2747_v57 = vmul.f32 0.1, %v7904_v22 }
 0x5ac   : > { %v7915_v31 = vmax.f32 %v2479_v46, 0.0  ;;  %v2471_v49 = vadd.f32 %v7827_v58, %v2470_v62  ;;  %v2764_v39 = vmul.f32 0.1, %v7898_v8  ;;  %v2566_v14 = vmul.f32 %v7910_v12, %v7760_v41 }
 0x5ad   : > { %5647 = vst [vmem:[%s7864_s16 + $0x18] sm:$0xff] %v5344_v11   ;;  %5662 = vst [vmem:[#allocation4 + $0x78] sm:$0xff] %v5424_v32   ;;  %v5339_v33 = vpack.c.bf16 %v2551_v38, %v2550_v19  ;;  %v5419_v5 = vpack.c.bf16 %v2747_v57, %v2746_v25  ;;  %v2762_v59 = vmul.f32 0.1, %v7910_v12 }
 0x5ae   : > { %v2569_v55 = vmul.f32 %v7915_v31, %v7770_v17  ;;  %v2765_v26 = vmul.f32 0.1, %v7915_v31  ;;  %v7925_v7 = vmax.f32 %v2471_v49, 0.0 }
 0x5af   : > { %5646 = vst [vmem:[%s7864_s16 + $0x10] sm:$0xff] %v5339_v33   ;;  %5661 = vst [vmem:[#allocation4 + $0x68] sm:$0xff] %v5419_v5  }
 0x5b0   : > { %v5384_v46 = vpack.c.bf16 %v2569_v55, %v2568_v23  ;;  %v5464_v19 = vpack.c.bf16 %v2765_v26, %v2764_v39  ;;  %v2567_v25 = vmul.f32 %v7925_v7, %v7758_v40  ;;  %v2763_v62 = vmul.f32 0.1, %v7925_v7  ;;  %v6099_v17 = vpop.f32.mrf.mxu0 }
 0x5b1   : > { %v2428_v11 = vadd.f32 %v6099_v17, %v7827_v58 }
 0x5b2   : > { %5655 = vst [vmem:[%s7864_s16 + $0x58] sm:$0xff] %v5384_v46   ;;  %5670 = vst [vmem:[#allocation4 + $0x20] sm:$0xff] %v5464_v19   ;;  %v5379_v32 = vpack.c.bf16 %v2567_v25, %v2566_v14  ;;  %v5459_v38 = vpack.c.bf16 %v2763_v62, %v2762_v59  ;;  %v2419_v57 = vpop.f32.mrf.mxu0 }
 0x5b3   : > { %v2420_v49 = vadd.f32 %v7827_v58, %v2419_v57  ;;  %v7938_v41 = vmax.f32 %v2428_v11, 0.0 }
 0x5b4   : > { %5654 = vst [vmem:[%s7864_s16 + $0x50] sm:$0xff] %v5379_v32   ;;  %5669 = vst [vmem:[#allocation4 + $0x18] sm:$0xff] %v5459_v38   ;;  %v6100_v23 = vpop.f32.mrf.mxu0  ;;  %v6115_v33 = vpop.f32.mrf.mxu1 }
 0x5b5   : > { %v2431_v40 = vadd.f32 %v6100_v23, %v7827_v58  ;;  %v7941_v5 = vmax.f32 %v2420_v49, 0.0  ;;  %v2492_v39 = vadd.f32 %v6115_v33, %v7827_v58  ;;  %v2556_v59 = vmul.f32 %v7938_v41, %v7790_v24 }
 0x5b6   : > { %v2422_v55 = vpop.f32.mrf.mxu0  ;;  %v2483_v26 = vpop.f32.mrf.mxu1  ;;  %v2752_v19 = vmul.f32 0.1, %v7938_v41 }
 0x5b7   : > { %v7944_v46 = vmax.f32 %v2431_v40, 0.0  ;;  %v2423_v14 = vadd.f32 %v7827_v58, %v2422_v55  ;;  %v7950_v25 = vmax.f32 %v2492_v39, 0.0  ;;  %v2484_v62 = vadd.f32 %v7827_v58, %v2483_v26 }
 0x5b8   : > { %v6116_v17 = vpop.f32.mrf.mxu1  ;;  %v2554_v24 = vmul.f32 %v7941_v5, %v7778_v1  ;;  %v2750_v49 = vmul.f32 0.1, %v7941_v5 }
 0x5b9   : > { %v2557_v11 = vmul.f32 %v7944_v46, %v7788_v36  ;;  %v2753_v32 = vmul.f32 0.1, %v7944_v46  ;;  %v7956_v38 = vmax.f32 %v2423_v14, 0.0  ;;  %v2495_v57 = vadd.f32 %v6116_v17, %v7827_v58 }
 0x5ba   : > { %v7962_v23 = vmax.f32 %v2484_v62, 0.0  ;;  %v2486_v33 = vpop.f32.mrf.mxu1  ;;  %v2572_v1 = vmul.f32 %v7950_v25, %v7796_v20 }
 0x5bb   : > { %v5354_v40 = vpack.c.bf16 %v2557_v11, %v2556_v59  ;;  %v5434_v39 = vpack.c.bf16 %v2753_v32, %v2752_v19  ;;  %v2555_v36 = vmul.f32 %v7956_v38, %v7776_v44  ;;  %v2751_v55 = vmul.f32 0.1, %v7956_v38 }
 0x5bc   : > { %v7967_v26 = vmax.f32 %v2495_v57, 0.0  ;;  %v2487_v14 = vadd.f32 %v7827_v58, %v2486_v33  ;;  %v2768_v59 = vmul.f32 0.1, %v7950_v25  ;;  %v2570_v32 = vmul.f32 %v7962_v23, %v7784_v18 }
 0x5bd   : > { %5649 = vst [vmem:[%s7864_s16 + $0x28] sm:$0xff] %v5354_v40   ;;  %5664 = vst [vmem:[#allocation4 + $0x50] sm:$0xff] %v5434_v39   ;;  %v5349_v62 = vpack.c.bf16 %v2555_v36, %v2554_v24  ;;  %v5429_v17 = vpack.c.bf16 %v2751_v55, %v2750_v49  ;;  %v2766_v20 = vmul.f32 0.1, %v7962_v23 }
 0x5be   : > { %v2573_v19 = vmul.f32 %v7967_v26, %v7794_v35  ;;  %v2769_v44 = vmul.f32 0.1, %v7967_v26  ;;  %v7977_v11 = vmax.f32 %v2487_v14, 0.0 }
 0x5bf   : > { %5648 = vst [vmem:[%s7864_s16 + $0x20] sm:$0xff] %v5349_v62   ;;  %5663 = vst [vmem:[#allocation4 + $0x8] sm:$0xff] %v5429_v17  }
 0x5c0   : > { %v5394_v57 = vpack.c.bf16 %v2573_v19, %v2572_v1  ;;  %v5474_v24 = vpack.c.bf16 %v2769_v44, %v2768_v59  ;;  %v2571_v49 = vmul.f32 %v7977_v11, %v7782_v27  ;;  %v2767_v33 = vmul.f32 0.1, %v7977_v11  ;;  %v6103_v35 = vpop.f32.mrf.mxu0 }
 0x5c1   : > { %v2444_v40 = vadd.f32 %v6103_v35, %v7827_v58 }
 0x5c2   : > { %5657 = vst [vmem:[%s7864_s16 + $0x68] sm:$0xff] %v5394_v57   ;;  %5672 = vst [vmem:[#allocation4 + $0x30] sm:$0xff] %v5474_v24   ;;  %v5389_v39 = vpack.c.bf16 %v2571_v49, %v2570_v32  ;;  %v5469_v36 = vpack.c.bf16 %v2767_v33, %v2766_v20  ;;  %v2435_v55 = vpop.f32.mrf.mxu0 }
 0x5c3   : > { %v2436_v14 = vadd.f32 %v7827_v58, %v2435_v55  ;;  %v7990_v18 = vmax.f32 %v2444_v40, 0.0 }
 0x5c4   : > { %5656 = vst [vmem:[%s7864_s16 + $0x60] sm:$0xff] %v5389_v39   ;;  %5671 = vst [vmem:[#allocation4 + $0x10] sm:$0xff] %v5469_v36   ;;  %v6104_v1 = vpop.f32.mrf.mxu0  ;;  %v6119_v62 = vpop.f32.mrf.mxu1 }
 0x5c5   : > { %v2447_v27 = vadd.f32 %v6104_v1, %v7827_v58  ;;  %v7993_v17 = vmax.f32 %v2436_v14, 0.0  ;;  %v2508_v59 = vadd.f32 %v6119_v62, %v7827_v58  ;;  %v2560_v20 = vmul.f32 %v7990_v18, %v7814_v34 }
 0x5c6   : > { %v2438_v19 = vpop.f32.mrf.mxu0  ;;  %v2499_v44 = vpop.f32.mrf.mxu1  ;;  %v2756_v24 = vmul.f32 0.1, %v7990_v18 }
 0x5c7   : > { %v7996_v57 = vmax.f32 %v2447_v27, 0.0  ;;  %v2439_v32 = vadd.f32 %v7827_v58, %v2438_v19  ;;  %v8002_v49 = vmax.f32 %v2508_v59, 0.0  ;;  %v2500_v33 = vadd.f32 %v7827_v58, %v2499_v44 }
 0x5c8   : > { %v6120_v35 = vpop.f32.mrf.mxu1  ;;  %v2558_v34 = vmul.f32 %v7993_v17, %v7802_v61  ;;  %v2754_v14 = vmul.f32 0.1, %v7993_v17 }
 0x5c9   : > { %v2561_v40 = vmul.f32 %v7996_v57, %v7812_v2  ;;  %v2757_v39 = vmul.f32 0.1, %v7996_v57  ;;  %v8008_v36 = vmax.f32 %v2439_v32, 0.0  ;;  %v2511_v55 = vadd.f32 %v6120_v35, %v7827_v58 }
 0x5ca   : > { %v8014_v1 = vmax.f32 %v2500_v33, 0.0  ;;  %v2502_v62 = vpop.f32.mrf.mxu1  ;;  %v2576_v61 = vmul.f32 %v8002_v49, %v7820_v42 }
 0x5cb   : > { %v5364_v27 = vpack.c.bf16 %v2561_v40, %v2560_v20  ;;  %v5444_v59 = vpack.c.bf16 %v2757_v39, %v2756_v24  ;;  %v2559_v2 = vmul.f32 %v8008_v36, %v7800_v48  ;;  %v2755_v19 = vmul.f32 0.1, %v8008_v36 }
 0x5cc   : > { %v8019_v44 = vmax.f32 %v2511_v55, 0.0  ;;  %v2503_v32 = vadd.f32 %v7827_v58, %v2502_v62  ;;  %v2772_v20 = vmul.f32 0.1, %v8002_v49  ;;  %v2574_v58 = vmul.f32 %v8014_v1, %v7808_v6 }
 0x5cd   : > { %5651 = vst [vmem:[%s7864_s16 + $0x38] sm:$0xff] %v5364_v27   ;;  %5666 = vst [vmem:[#allocation4 + $0x38] sm:$0xff] %v5444_v59   ;;  %v5359_v33 = vpack.c.bf16 %v2559_v2, %v2558_v34  ;;  %v5439_v35 = vpack.c.bf16 %v2755_v19, %v2754_v14  ;;  %v2770_v39 = vmul.f32 0.1, %v8014_v1 }
 0x5ce   : > { %v2577_v48 = vmul.f32 %v8019_v44, %v7818_v43  ;;  %v2773_v24 = vmul.f32 0.1, %v8019_v44  ;;  %v8029_v40 = vmax.f32 %v2503_v32, 0.0 }
 0x5cf   : > { %5650 = vst [vmem:[%s7864_s16 + $0x30] sm:$0xff] %v5359_v33   ;;  %5665 = vst [vmem:[#allocation4 + $0x40] sm:$0xff] %v5439_v35  }
 0x5d0   : > { %v5404_v42 = vpack.c.bf16 %v2577_v48, %v2576_v61  ;;  %v5484_v55 = vpack.c.bf16 %v2773_v24, %v2772_v20  ;;  %v2575_v34 = vmul.f32 %v8029_v40, %v7806_v3  ;;  %v2771_v14 = vmul.f32 0.1, %v8029_v40  ;;  %2941 = sbr.rel (%p5060_p6) target bundleno = 2099 (0x833), region = 96 }
 0x5d2   : > { %5659 = vst [vmem:[%s7864_s16 + $0x78] sm:$0xff] %v5404_v42   ;;  %5674 = vst [vmem:[#allocation4 + $0x58] sm:$0xff] %v5484_v55   ;;  %v5399_v43 = vpack.c.bf16 %v2575_v34, %v2574_v58  ;;  %v5479_v62 = vpack.c.bf16 %v2771_v14, %v2770_v39 }
 0x5d4   : > { %5658 = vst [vmem:[%s7864_s16 + $0x70] sm:$0xff] %v5399_v43   ;;  %5673 = vst [vmem:[#allocation4 + $0x28] sm:$0xff] %v5479_v62  }
 0x5d5   : > { %v6435_v27 = vld [vmem:[#allocation10 + $0x38] sm:$0xff]   ;;  %v6436_v6 = vld [vmem:[#allocation10 + $0x30] sm:$0xff]   ;;  %v2942_v59 = vpack.c.bf16 %v7850_v13, %v7835_v15  ;;  %v2950_v2 = vpack.c.bf16 %v7873_v45, %v7856_v37  ;;  %v6437_v3 = vld [vmem:[#allocation10 + $0x28] sm:$0xff]   ;;  %v2943_v32 = vpack.c.bf16 %v7838_v21, %v7831_v16  ;;  %v2951_v61 = vpack.c.bf16 %v7861_v4, %v7844_v9 }
 0x5d6   : > { %6121 = vmatprep.subr.bf16.mxu0 %v6435_v27  ;;  %6281 = vmatprep.subr.bf16.mxu1 %v6435_v27  ;;  %v6438_v19 = vld [vmem:[#allocation10 + $0x20] sm:$0xff]   ;;  %v6439_v15 = vld [vmem:[#allocation10 + $0x18] sm:$0xff]   ;;  %v6440_v13 = vld [vmem:[#allocation10 + $0x10] sm:$0xff]   ;;  %v2944_v33 = vpack.c.bf16 %v7904_v22, %v7889_v50  ;;  %v2952_v35 = vpack.c.bf16 %v7925_v7, %v7910_v12  ;;  %v2945_v20 = vpack.c.bf16 %v7892_v60, %v7886_v10  ;;  %v3190_v12 = vlaneseq }
 0x5d7   : > { %6122 = vmatpush3.bf16.msra.mxu0 %v6435_v27  ;;  %6289 = vmatpush3.bf16.msra.mxu1 %v6435_v27  ;;  %v6441_v37 = vld [vmem:[#allocation10 + $0x8] sm:$0xff]   ;;  %v6442_v45 = vld [vmem:[#allocation10] sm:$0xff]   ;;  %v2953_v16 = vpack.c.bf16 %v7915_v31, %v7898_v8  ;;  %v2946_v21 = vpack.c.bf16 %v7956_v38, %v7941_v5  ;;  %v2954_v9 = vpack.c.bf16 %v7977_v11, %v7962_v23 }
 0x5d8   : > { %6123 = vmatprep.subr.bf16.mxu0 %v6436_v6  ;;  %6282 = vmatprep.subr.bf16.mxu1 %v6436_v6  ;;  %v2947_v4 = vpack.c.bf16 %v7944_v46, %v7938_v41  ;;  %v2955_v50 = vpack.c.bf16 %v7967_v26, %v7950_v25  ;;  %v2948_v10 = vpack.c.bf16 %v8008_v36, %v7993_v17  ;;  %v8073_v31 = vand.u32 127, %v3190_v12  ;;  %v8078_v7 = vld [vmem:[%s9008_s8] ss:$0 sm:$0xff] }
 0x5d9   : > { %6137 = vmatprep.mubr.bf16.mxu0 %v2942_v59  ;;  %6153 = vmatprep.mubr.bf16.mxu1 %v2950_v2  ;;  %v2956_v60 = vpack.c.bf16 %v8029_v40, %v8014_v1  ;;  %v2949_v8 = vpack.c.bf16 %v7996_v57, %v7990_v18  ;;  %v2957_v22 = vpack.c.bf16 %v8019_v44, %v8002_v49 }
 0x5da   : > { %vm3192_vm0 = vcmp.lt.s32.totalorder %v8073_v31, 10 }
 0x5db   : > { %6124 = vmatpush3.bf16.msra.mxu0 %v6436_v6  ;;  %6290 = vmatpush3.bf16.msra.mxu1 %v6436_v6 }
 0x5dc   : > { %6125 = vmatprep.subr.bf16.mxu0 %v6437_v3  ;;  %6283 = vmatprep.subr.bf16.mxu1 %v6437_v3 }
 0x5df   : > { %6126 = vmatpush3.bf16.msra.mxu0 %v6437_v3  ;;  %6291 = vmatpush3.bf16.msra.mxu1 %v6437_v3 }
 0x5e0   : > { %6127 = vmatprep.subr.bf16.mxu0 %v6438_v19  ;;  %6284 = vmatprep.subr.bf16.mxu1 %v6438_v19 }
 0x5e3   : > { %6128 = vmatpush3.bf16.msra.mxu0 %v6438_v19  ;;  %6292 = vmatpush3.bf16.msra.mxu1 %v6438_v19 }
 0x5e4   : > { %6129 = vmatprep.subr.bf16.mxu0 %v6439_v15  ;;  %6285 = vmatprep.subr.bf16.mxu1 %v6439_v15 }
 0x5e7   : > { %6130 = vmatpush3.bf16.msra.mxu0 %v6439_v15  ;;  %6293 = vmatpush3.bf16.msra.mxu1 %v6439_v15 }
 0x5e8   : > { %6131 = vmatprep.subr.bf16.mxu0 %v6440_v13  ;;  %6286 = vmatprep.subr.bf16.mxu1 %v6440_v13 }
 0x5eb   : > { %6132 = vmatpush3.bf16.msra.mxu0 %v6440_v13  ;;  %6294 = vmatpush3.bf16.msra.mxu1 %v6440_v13 }
 0x5ec   : > { %6133 = vmatprep.subr.bf16.mxu0 %v6441_v37  ;;  %6287 = vmatprep.subr.bf16.mxu1 %v6441_v37 }
 0x5ef   : > { %6134 = vmatpush3.bf16.msra.mxu0 %v6441_v37  ;;  %6295 = vmatpush3.bf16.msra.mxu1 %v6441_v37 }
 0x5f0   : > { %6135 = vmatprep.subr.bf16.mxu0 %v6442_v45  ;;  %6288 = vmatprep.subr.bf16.mxu1 %v6442_v45 }
 0x5f3   : > { %6136 = vmatpush3.bf16.msra.mxu0 %v6442_v45  ;;  %6296 = vmatpush3.bf16.msra.mxu1 %v6442_v45 }
 0x5f6   : > { %6138 = vmatmul.mubr.bf16.vlgmr.msra.gmra.mxu0 %v2943_v32  ;;  %6154 = vmatmul.mubr.bf16.vlgmr.msra.gmra.mxu1 %v2951_v61 }
 0x5f7   : > { %6141 = vmatprep.mubr.bf16.mxu0 %v2944_v33  ;;  %6157 = vmatprep.mubr.bf16.mxu1 %v2952_v35 }
 0x5fe   : > { %6142 = vmatmul.mubr.bf16.gmra.mxu0 %v2945_v20  ;;  %6158 = vmatmul.mubr.bf16.gmra.mxu1 %v2953_v16 }
 0x5ff   : > { %6145 = vmatprep.mubr.bf16.mxu0 %v2946_v21  ;;  %6161 = vmatprep.mubr.bf16.mxu1 %v2954_v9 }
 0x606   : > { %6146 = vmatmul.mubr.bf16.gmra.mxu0 %v2947_v4  ;;  %6162 = vmatmul.mubr.bf16.gmra.mxu1 %v2955_v50 }
 0x607   : > { %6149 = vmatprep.mubr.bf16.mxu0 %v2948_v10  ;;  %6165 = vmatprep.mubr.bf16.mxu1 %v2956_v60 }
 0x60e   : > { %6150 = vmatmul.mubr.bf16.gmra.mxu0 %v2949_v8  ;;  %6166 = vmatmul.mubr.bf16.gmra.mxu1 %v2957_v22 }
 0x6b6   : > { %v6139_v41 = vpop.f32.mrf.mxu0  ;;  %v6155_v5 = vpop.f32.mrf.mxu1 }
 0x6b7   : > { %v3072_v46 = vadd.f32 %v6139_v41, %v8078_v7  ;;  %v3136_v25 = vadd.f32 %v6155_v5, %v8078_v7 }
 0x6b8   : > { %v3063_v38 = vpop.f32.mrf.mxu0  ;;  %v3127_v23 = vpop.f32.mrf.mxu1 }
 0x6b9   : > { %v3064_v26 = vadd.f32 %v8078_v7, %v3063_v38  ;;  %v8086_v11 = vsel %vm3192_vm0, %v3136_v25, -1e+30  ;;  %v8090_v18 = vsel %vm3192_vm0, %v3072_v46, -1e+30  ;;  %v3128_v44 = vadd.f32 %v8078_v7, %v3127_v23 }
 0x6ba   : > { %3261 = vmax.xlane.f32.xlu0 %v8086_v11  ;;  %v6156_v17 = vpop.f32.mrf.mxu1  ;;  %3229 = vmax.xlane.f32.xlu1 %v8090_v18  ;;  %v6140_v57 = vpop.f32.mrf.mxu0 }
 0x6bb   : > { %v3075_v49 = vadd.f32 %v6140_v57, %v8078_v7  ;;  %v3139_v48 = vadd.f32 %v6156_v17, %v8078_v7  ;;  %v8103_v40 = vsel %vm3192_vm0, %v3064_v26, -1e+30  ;;  %v8115_v43 = vsel %vm3192_vm0, %v3128_v44, -1e+30 }
 0x6bc   : > { %v3066_v36 = vpop.f32.mrf.mxu0  ;;  %v3130_v1 = vpop.f32.mrf.mxu1 }
 0x6bd   : > { %v8099_v24 = vsel %vm3192_vm0, %v3075_v49, -1e+30  ;;  %v3067_v55 = vadd.f32 %v8078_v7, %v3066_v36  ;;  %v3131_v34 = vadd.f32 %v8078_v7, %v3130_v1  ;;  %v8111_v14 = vsel %vm3192_vm0, %v3139_v48, -1e+30 }
 0x6be   : > { %3231 = vmax.xlane.f32.xlu1 %v8099_v24  ;;  %3225 = vmax.xlane.f32.xlu0 %v8103_v40  ;;  %v6143_v58 = vpop.f32.mrf.mxu0  ;;  %v6159_v39 = vpop.f32.mrf.mxu1 }
 0x6bf   : > { %v3088_v6 = vadd.f32 %v6143_v58, %v8078_v7  ;;  %v8123_v2 = vsel %vm3192_vm0, %v3131_v34, -1e+30  ;;  %v8127_v3 = vsel %vm3192_vm0, %v3067_v55, -1e+30  ;;  %v3152_v15 = vadd.f32 %v6159_v39, %v8078_v7 }
 0x6c0   : > { %v3079_v42 = vpop.f32.mrf.mxu0  ;;  %v3143_v27 = vpop.f32.mrf.mxu1 }
 0x6c1   : > { %v8139_v45 = vsel %vm3192_vm0, %v3088_v6, -1e+30  ;;  %v8149_v35 = vsel %vm3192_vm0, %v3152_v15, -1e+30  ;;  %v3080_v16 = vadd.f32 %v8078_v7, %v3079_v42  ;;  %v3144_v50 = vadd.f32 %v8078_v7, %v3143_v27 }
 0x6c2   : > { %3263 = vmax.xlane.f32.xlu1 %v8111_v14  ;;  %3257 = vmax.xlane.f32.xlu0 %v8115_v43  ;;  %v6144_v62 = vpop.f32.mrf.mxu0  ;;  %v6160_v19 = vpop.f32.mrf.mxu1 }
 0x6c3   : > { %v3091_v59 = vadd.f32 %v6144_v62, %v8078_v7  ;;  %v3155_v13 = vadd.f32 %v6160_v19, %v8078_v7  ;;  %v8163_v8 = vsel %vm3192_vm0, %v3080_v16, -1e+30  ;;  %v8175_v25 = vsel %vm3192_vm0, %v3144_v50, -1e+30 }
 0x6c4   : > { %v3082_v32 = vpop.f32.mrf.mxu0  ;;  %v3146_v20 = vpop.f32.mrf.mxu1 }
 0x6c5   : > { %v8135_v37 = vsel %vm3192_vm0, %v3091_v59, -1e+30  ;;  %v8145_v33 = vsel %vm3192_vm0, %v3155_v13, -1e+30  ;;  %v3083_v21 = vadd.f32 %v8078_v7, %v3082_v32  ;;  %v3147_v10 = vadd.f32 %v8078_v7, %v3146_v20 }
 0x6c6   : > { %3259 = vmax.xlane.f32.xlu1 %v8123_v2  ;;  %3227 = vmax.xlane.f32.xlu0 %v8127_v3  ;;  %v6147_v61 = vpop.f32.mrf.mxu0  ;;  %v6163_v4 = vpop.f32.mrf.mxu1 }
 0x6c7   : > { %v8159_v60 = vsel %vm3192_vm0, %v3083_v21, -1e+30  ;;  %v3104_v41 = vadd.f32 %v6147_v61, %v8078_v7  ;;  %v8171_v46 = vsel %vm3192_vm0, %v3147_v10, -1e+30  ;;  %v3168_v23 = vadd.f32 %v6163_v4, %v8078_v7 }
 0x6c8   : > { %v3095_v9 = vpop.f32.mrf.mxu0  ;;  %v3159_v12 = vpop.f32.mrf.mxu1 }
 0x6c9   : > { %v8187_v57 = vsel %vm3192_vm0, %v3104_v41, -1e+30  ;;  %v8197_v44 = vsel %vm3192_vm0, %v3168_v23, -1e+30  ;;  %v3096_v58 = vadd.f32 %v8078_v7, %v3095_v9  ;;  %v3160_v34 = vadd.f32 %v8078_v7, %v3159_v12 }
 0x6ca   : > { %3239 = vmax.xlane.f32.xlu1 %v8135_v37  ;;  %3237 = vmax.xlane.f32.xlu0 %v8139_v45  ;;  %v6148_v22 = vpop.f32.mrf.mxu0  ;;  %v6164_v38 = vpop.f32.mrf.mxu1 }
 0x6cb   : > { %v3107_v5 = vadd.f32 %v6148_v22, %v8078_v7  ;;  %v3171_v26 = vadd.f32 %v6164_v38, %v8078_v7  ;;  %v8211_v6 = vsel %vm3192_vm0, %v3096_v58, -1e+30  ;;  %v8223_v61 = vsel %vm3192_vm0, %v3160_v34, -1e+30 }
 0x6cc   : > { %v3098_v49 = vpop.f32.mrf.mxu0  ;;  %v3162_v48 = vpop.f32.mrf.mxu1 }
 0x6cd   : > { %v8183_v17 = vsel %vm3192_vm0, %v3107_v5, -1e+30  ;;  %v8193_v1 = vsel %vm3192_vm0, %v3171_v26, -1e+30  ;;  %v3099_v39 = vadd.f32 %v8078_v7, %v3098_v49  ;;  %v3163_v62 = vadd.f32 %v8078_v7, %v3162_v48 }
 0x6ce   : > { %3271 = vmax.xlane.f32.xlu1 %v8145_v33  ;;  %3269 = vmax.xlane.f32.xlu0 %v8149_v35  ;;  %v6151_v36 = vpop.f32.mrf.mxu0  ;;  %v6167_v55 = vpop.f32.mrf.mxu1 }
 0x6cf   : > { %v8207_v27 = vsel %vm3192_vm0, %v3099_v39, -1e+30  ;;  %v3120_v15 = vadd.f32 %v6151_v36, %v8078_v7  ;;  %v8219_v32 = vsel %vm3192_vm0, %v3163_v62, -1e+30  ;;  %v3184_v38 = vadd.f32 %v6167_v55, %v8078_v7 }
 0x6d0   : > { %v3111_v42 = vpop.f32.mrf.mxu0  ;;  %v3175_v19 = vpop.f32.mrf.mxu1 }
 0x6d1   : > { %v8233_v9 = vsel %vm3192_vm0, %v3120_v15, -1e+30  ;;  %v3112_v4 = vadd.f32 %v8078_v7, %v3111_v42  ;;  %v3176_v22 = vadd.f32 %v8078_v7, %v3175_v19  ;;  %v8269_v48 = vsel %vm3192_vm0, %v3184_v38, -1e+30 }
 0x6d2   : > { %3235 = vmax.xlane.f32.xlu1 %v8159_v60  ;;  %3233 = vmax.xlane.f32.xlu0 %v8163_v8  ;;  %v6152_v59 = vpop.f32.mrf.mxu0  ;;  %v6168_v16 = vpop.f32.mrf.mxu1 }
 0x6d3   : > { %v3123_v13 = vadd.f32 %v6152_v59, %v8078_v7  ;;  %v8247_v5 = vsel %vm3192_vm0, %v3112_v4, -1e+30  ;;  %v3187_v23 = vadd.f32 %v6168_v16, %v8078_v7  ;;  %v8259_v49 = vsel %vm3192_vm0, %v3176_v22, -1e+30 }
 0x6d4   : > { %v3114_v20 = vpop.f32.mrf.mxu0  ;;  %v3178_v10 = vpop.f32.mrf.mxu1 }
 0x6d5   : > { %v8229_v21 = vsel %vm3192_vm0, %v3123_v13, -1e+30  ;;  %v3115_v50 = vadd.f32 %v8078_v7, %v3114_v20  ;;  %v3179_v12 = vadd.f32 %v8078_v7, %v3178_v10  ;;  %v8265_v36 = vsel %vm3192_vm0, %v3187_v23, -1e+30 }
 0x6d6   : > { %3267 = vmax.xlane.f32.xlu1 %v8171_v46  ;;  %3265 = vmax.xlane.f32.xlu0 %v8175_v25 }
 0x6d7   : > { %v8243_v41 = vsel %vm3192_vm0, %v3115_v50, -1e+30  ;;  %v8255_v26 = vsel %vm3192_vm0, %v3179_v12, -1e+30 }
 0x6da   : > { %3247 = vmax.xlane.f32.xlu1 %v8183_v17  ;;  %3245 = vmax.xlane.f32.xlu0 %v8187_v57 }
 0x6de   : > { %3279 = vmax.xlane.f32.xlu1 %v8193_v1  ;;  %3277 = vmax.xlane.f32.xlu0 %v8197_v44 }
 0x6e2   : > { %3243 = vmax.xlane.f32.xlu1 %v8207_v27  ;;  %3241 = vmax.xlane.f32.xlu0 %v8211_v6 }
 0x6e6   : > { %3275 = vmax.xlane.f32.xlu1 %v8219_v32  ;;  %3273 = vmax.xlane.f32.xlu0 %v8223_v61 }
 0x6ea   : > { %3255 = vmax.xlane.f32.xlu1 %v8229_v21  ;;  %3253 = vmax.xlane.f32.xlu0 %v8233_v9 }
 0x6ee   : > { %3251 = vmax.xlane.f32.xlu1 %v8243_v41  ;;  %3249 = vmax.xlane.f32.xlu0 %v8247_v5 }
 0x6f2   : > { %3283 = vmax.xlane.f32.xlu1 %v8255_v26  ;;  %3281 = vmax.xlane.f32.xlu0 %v8259_v49 }
 0x6f6   : > { %3287 = vmax.xlane.f32.xlu1 %v8265_v36  ;;  %3285 = vmax.xlane.f32.xlu0 %v8269_v48 }
 0x743   : > { %v3262_v7 = vpop.xlane.xlu0 %3261  ;;  %v3230_v58 = vpop.xlane.xlu1 %3229 }
 0x744   : > { %v8274_v39 = vsub.f32 %v8090_v18, %v3230_v58  ;;  %v8277_v42 = vsub.f32 %v8086_v11, %v3262_v7 }
 0x746   : > { %v3325_v55 = vmul.f32 1.442695, %v8274_v39  ;;  %v3357_v59 = vmul.f32 1.442695, %v8277_v42 }
 0x747   : > { %v3232_v34 = vpop.xlane.xlu1 %3231  ;;  %v3226_v62 = vpop.xlane.xlu0 %3225 }
 0x748   : > { %v8281_v31 = vsub.f32 %v8099_v24, %v3232_v34  ;;  %6443 = vpow2.f32 %v3325_v55  ;;  %v8285_v19 = vsub.f32 %v8103_v40, %v3226_v62 }
 0x74a   : > { %v3327_v15 = vmul.f32 1.442695, %v8281_v31  ;;  %v3321_v24 = vmul.f32 1.442695, %v8285_v19 }
 0x74b   : > { %v3264_v18 = vpop.xlane.xlu1 %3263  ;;  %v3258_v13 = vpop.xlane.xlu0 %3257 }
 0x74c   : > { %6445 = vpow2.f32 %v3327_v15  ;;  %v8289_v11 = vsub.f32 %v8111_v14, %v3264_v18  ;;  %v8292_v20 = vsub.f32 %v8115_v43, %v3258_v13 }
 0x74d   : > { %6447 = vpow2.f32 %v3357_v59 }
 0x74e   : > { %v3359_v16 = vmul.f32 1.442695, %v8289_v11  ;;  %v3353_v40 = vmul.f32 1.442695, %v8292_v20 }
 0x74f   : > { %v3260_v4 = vpop.xlane.xlu1 %3259  ;;  %v3228_v50 = vpop.xlane.xlu0 %3227 }
 0x750   : > { %6449 = vpow2.f32 %v3359_v16  ;;  %v8298_v10 = vsub.f32 %v8123_v2, %v3260_v4  ;;  %v8301_v22 = vsub.f32 %v8127_v3, %v3228_v50 }
 0x751   : > { %6451 = vpow2.f32 %v3321_v24 }
 0x752   : > { %v3323_v14 = vmul.f32 1.442695, %v8301_v22  ;;  %6453 = vpow2.f32 %v3353_v40  ;;  %v3355_v38 = vmul.f32 1.442695, %v8298_v10 }
 0x753   : > { %v3240_v43 = vpop.xlane.xlu1 %3239  ;;  %v3238_v12 = vpop.xlane.xlu0 %3237 }
 0x754   : > { %v8306_v23 = vsub.f32 %v8135_v37, %v3240_v43  ;;  %v8309_v7 = vsub.f32 %v8139_v45, %v3238_v12  ;;  %6455 = vpow2.f32 %v3323_v14 }
 0x755   : > { %v6444_v2 = vpop.eup %6443  ;;  %6457 = vpow2.f32 %v3355_v38 }
 0x756   : > { %v3333_v58 = vmul.f32 1.442695, %v8309_v7  ;;  %3389 = vadd.xlane.f32.xlu0 %v6444_v2  ;;  %v3335_v34 = vmul.f32 1.442695, %v8306_v23 }
 0x757   : > { %v3272_v3 = vpop.xlane.xlu1 %3271  ;;  %v3270_v55 = vpop.xlane.xlu0 %3269 }
 0x758   : > { %v8314_v62 = vsub.f32 %v8145_v33, %v3272_v3  ;;  %v8317_v59 = vsub.f32 %v8149_v35, %v3270_v55  ;;  %6459 = vpow2.f32 %v3333_v58 }
 0x759   : > { %v6446_v37 = vpop.eup %6445  ;;  %6461 = vpow2.f32 %v3335_v34 }
 0x75a   : > { %v6448_v45 = vpop.eup %6447  ;;  %v3365_v15 = vmul.f32 1.442695, %v8317_v59  ;;  %3391 = vadd.xlane.f32.xlu1 %v6446_v37  ;;  %v3367_v24 = vmul.f32 1.442695, %v8314_v62 }
 0x75b   : > { %3421 = vadd.xlane.f32.xlu0 %v6448_v45  ;;  %v3236_v18 = vpop.xlane.xlu1 %3235  ;;  %v3234_v13 = vpop.xlane.xlu0 %3233 }
 0x75c   : > { %v8322_v16 = vsub.f32 %v8159_v60, %v3236_v18  ;;  %v8325_v33 = vsub.f32 %v8163_v8, %v3234_v13  ;;  %6463 = vpow2.f32 %v3365_v15 }
 0x75d   : > { %v6450_v35 = vpop.eup %6449  ;;  %6465 = vpow2.f32 %v3367_v24 }
 0x75e   : > { %v6452_v4 = vpop.eup %6451  ;;  %v3329_v50 = vmul.f32 1.442695, %v8325_v33  ;;  %3423 = vadd.xlane.f32.xlu1 %v6450_v35  ;;  %v3331_v43 = vmul.f32 1.442695, %v8322_v16 }
 0x75f   : > { %3385 = vadd.xlane.f32.xlu0 %v6452_v4  ;;  %v3268_v40 = vpop.xlane.xlu1 %3267  ;;  %v3266_v14 = vpop.xlane.xlu0 %3265 }
 0x760   : > { %v8330_v12 = vsub.f32 %v8171_v46, %v3268_v40  ;;  %v8333_v60 = vsub.f32 %v8175_v25, %v3266_v14  ;;  %v6454_v8 = vpop.eup %6453  ;;  %6467 = vpow2.f32 %v3329_v50 }
 0x761   : > { %v6456_v38 = vpop.eup %6455  ;;  %6469 = vpow2.f32 %v3331_v43 }
 0x762   : > { %v3361_v2 = vmul.f32 1.442695, %v8333_v60  ;;  %3387 = vadd.xlane.f32.xlu1 %v6456_v38  ;;  %v3363_v55 = vmul.f32 1.442695, %v8330_v12  ;;  %v6458_v25 = vpop.eup %6457 }
 0x763   : > { %3417 = vadd.xlane.f32.xlu0 %v6454_v8  ;;  %v3248_v58 = vpop.xlane.xlu1 %3247  ;;  %v3246_v3 = vpop.xlane.xlu0 %3245 }
 0x764   : > { %v8338_v34 = vsub.f32 %v8183_v17, %v3248_v58  ;;  %v8341_v46 = vsub.f32 %v8187_v57, %v3246_v3  ;;  %6471 = vpow2.f32 %v3361_v2 }
 0x765   : > { %v6460_v37 = vpop.eup %6459  ;;  %6473 = vpow2.f32 %v3363_v55 }
 0x766   : > { %v3341_v45 = vmul.f32 1.442695, %v8341_v46  ;;  %3419 = vadd.xlane.f32.xlu1 %v6458_v25  ;;  %v3343_v13 = vmul.f32 1.442695, %v8338_v34  ;;  %v6462_v57 = vpop.eup %6461 }
 0x767   : > { %3397 = vadd.xlane.f32.xlu0 %v6460_v37  ;;  %v3280_v15 = vpop.xlane.xlu1 %3279  ;;  %v3278_v18 = vpop.xlane.xlu0 %3277 }
 0x768   : > { %v8346_v24 = vsub.f32 %v8193_v1, %v3280_v15  ;;  %v8349_v17 = vsub.f32 %v8197_v44, %v3278_v18  ;;  %6475 = vpow2.f32 %v3341_v45 }
 0x769   : > { %v6464_v35 = vpop.eup %6463  ;;  %6477 = vpow2.f32 %v3343_v13 }
 0x76a   : > { %v3373_v4 = vmul.f32 1.442695, %v8349_v17  ;;  %3399 = vadd.xlane.f32.xlu1 %v6462_v57  ;;  %v3375_v14 = vmul.f32 1.442695, %v8346_v24  ;;  %v6466_v44 = vpop.eup %6465 }
 0x76b   : > { %3429 = vadd.xlane.f32.xlu0 %v6464_v35  ;;  %v3244_v50 = vpop.xlane.xlu1 %3243  ;;  %v3242_v40 = vpop.xlane.xlu0 %3241 }
 0x76c   : > { %v8354_v43 = vsub.f32 %v8207_v27, %v3244_v50  ;;  %v8357_v1 = vsub.f32 %v8211_v6, %v3242_v40  ;;  %6479 = vpow2.f32 %v3373_v4 }
 0x76d   : > { %v6468_v8 = vpop.eup %6467  ;;  %6481 = vpow2.f32 %v3375_v14 }
 0x76e   : > { %v3337_v38 = vmul.f32 1.442695, %v8357_v1  ;;  %3431 = vadd.xlane.f32.xlu1 %v6466_v44  ;;  %v3339_v3 = vmul.f32 1.442695, %v8354_v43  ;;  %v6470_v6 = vpop.eup %6469 }
 0x76f   : > { %3393 = vadd.xlane.f32.xlu0 %v6468_v8  ;;  %v3276_v2 = vpop.xlane.xlu1 %3275  ;;  %v3274_v58 = vpop.xlane.xlu0 %3273 }
 0x770   : > { %v8362_v55 = vsub.f32 %v8219_v32, %v3276_v2  ;;  %v8365_v27 = vsub.f32 %v8223_v61, %v3274_v58  ;;  %6483 = vpow2.f32 %v3337_v38 }
 0x771   : > { %v6472_v25 = vpop.eup %6471  ;;  %6485 = vpow2.f32 %v3339_v3 }
 0x772   : > { %v3369_v37 = vmul.f32 1.442695, %v8365_v27  ;;  %3395 = vadd.xlane.f32.xlu1 %v6470_v6  ;;  %v3371_v18 = vmul.f32 1.442695, %v8362_v55  ;;  %v6474_v61 = vpop.eup %6473 }
 0x773   : > { %3425 = vadd.xlane.f32.xlu0 %v6472_v25  ;;  %v3256_v45 = vpop.xlane.xlu1 %3255  ;;  %v3254_v15 = vpop.xlane.xlu0 %3253 }
 0x774   : > { %v8370_v13 = vsub.f32 %v8229_v21, %v3256_v45  ;;  %v8373_v32 = vsub.f32 %v8233_v9, %v3254_v15  ;;  %6487 = vpow2.f32 %v3369_v37 }
 0x775   : > { %v6476_v57 = vpop.eup %6475  ;;  %6489 = vpow2.f32 %v3371_v18 }
 0x776   : > { %v3349_v35 = vmul.f32 1.442695, %v8373_v32  ;;  %3427 = vadd.xlane.f32.xlu1 %v6474_v61  ;;  %v3351_v40 = vmul.f32 1.442695, %v8370_v13  ;;  %v6478_v9 = vpop.eup %6477 }
 0x777   : > { %3405 = vadd.xlane.f32.xlu0 %v6476_v57  ;;  %v3252_v4 = vpop.xlane.xlu1 %3251  ;;  %v3250_v50 = vpop.xlane.xlu0 %3249 }
 0x778   : > { %v8378_v14 = vsub.f32 %v8243_v41, %v3252_v4  ;;  %v8381_v21 = vsub.f32 %v8247_v5, %v3250_v50  ;;  %6491 = vpow2.f32 %v3349_v35 }
 0x779   : > { %v6480_v44 = vpop.eup %6479  ;;  %6493 = vpow2.f32 %v3351_v40 }
 0x77a   : > { %v3345_v8 = vmul.f32 1.442695, %v8381_v21  ;;  %3407 = vadd.xlane.f32.xlu1 %v6478_v9  ;;  %v3347_v58 = vmul.f32 1.442695, %v8378_v14  ;;  %v6482_v5 = vpop.eup %6481 }
 0x77b   : > { %3437 = vadd.xlane.f32.xlu0 %v6480_v44  ;;  %v3284_v38 = vpop.xlane.xlu1 %3283  ;;  %v3282_v2 = vpop.xlane.xlu0 %3281 }
 0x77c   : > { %v8386_v3 = vsub.f32 %v8255_v26, %v3284_v38  ;;  %v8389_v41 = vsub.f32 %v8259_v49, %v3282_v2  ;;  %6495 = vpow2.f32 %v3345_v8 }
 0x77d   : > { %v6484_v6 = vpop.eup %6483  ;;  %6497 = vpow2.f32 %v3347_v58 }
 0x77e   : > { %v3377_v25 = vmul.f32 1.442695, %v8389_v41  ;;  %3439 = vadd.xlane.f32.xlu1 %v6482_v5  ;;  %v3379_v15 = vmul.f32 1.442695, %v8386_v3  ;;  %v6486_v26 = vpop.eup %6485 }
 0x77f   : > { %3401 = vadd.xlane.f32.xlu0 %v6484_v6  ;;  %v3288_v37 = vpop.xlane.xlu1 %3287  ;;  %v3286_v45 = vpop.xlane.xlu0 %3285 }
 0x780   : > { %v8394_v18 = vsub.f32 %v8269_v48, %v3286_v45  ;;  %6499 = vpow2.f32 %v3377_v25  ;;  %v8397_v49 = vsub.f32 %v8265_v36, %v3288_v37 }
 0x781   : > { %v6488_v61 = vpop.eup %6487  ;;  %6501 = vpow2.f32 %v3379_v15 }
 0x782   : > { %v3381_v57 = vmul.f32 1.442695, %v8394_v18  ;;  %3403 = vadd.xlane.f32.xlu1 %v6486_v26  ;;  %v6490_v35 = vpop.eup %6489  ;;  %v3383_v4 = vmul.f32 1.442695, %v8397_v49 }
 0x783   : > { %3433 = vadd.xlane.f32.xlu0 %v6488_v61 }
 0x784   : > { %6503 = vpow2.f32 %v3381_v57 }
 0x785   : > { %v6492_v50 = vpop.eup %6491  ;;  %6505 = vpow2.f32 %v3383_v4 }
 0x786   : > { %3435 = vadd.xlane.f32.xlu1 %v6490_v35  ;;  %v6494_v48 = vpop.eup %6493 }
 0x787   : > { %3413 = vadd.xlane.f32.xlu0 %v6492_v50 }
 0x789   : > { %v6496_v40 = vpop.eup %6495 }
 0x78a   : > { %3415 = vadd.xlane.f32.xlu1 %v6494_v48  ;;  %v6498_v36 = vpop.eup %6497 }
 0x78b   : > { %3409 = vadd.xlane.f32.xlu0 %v6496_v40 }
 0x78d   : > { %v6500_v9 = vpop.eup %6499 }
 0x78e   : > { %3411 = vadd.xlane.f32.xlu1 %v6498_v36  ;;  %v6502_v44 = vpop.eup %6501 }
 0x78f   : > { %3441 = vadd.xlane.f32.xlu0 %v6500_v9 }
 0x791   : > { %v6504_v8 = vpop.eup %6503 }
 0x792   : > { %3443 = vadd.xlane.f32.xlu1 %v6502_v44  ;;  %v6506_v38 = vpop.eup %6505 }
 0x793   : > { %3445 = vadd.xlane.f32.xlu0 %v6504_v8 }
 0x796   : > { %3447 = vadd.xlane.f32.xlu1 %v6506_v38 }
 0x7df   : > { %v3390_v2 = vpop.xlane.xlu0 %3389 }
 0x7e0   : > { %6507 = vlog2.f32 %v3390_v2 }
 0x7e3   : > { %v3392_v58 = vpop.xlane.xlu1 %3391 }
 0x7e4   : > { %6509 = vlog2.f32 %v3392_v58  ;;  %v3422_v5 = vpop.xlane.xlu0 %3421 }
 0x7e5   : > { %6511 = vlog2.f32 %v3422_v5 }
 0x7e7   : > { %v3424_v6 = vpop.xlane.xlu1 %3423 }
 0x7e8   : > { %6513 = vlog2.f32 %v3424_v6  ;;  %v3386_v25 = vpop.xlane.xlu0 %3385 }
 0x7e9   : > { %6515 = vlog2.f32 %v3386_v25 }
 0x7eb   : > { %v3388_v37 = vpop.xlane.xlu1 %3387 }
 0x7ec   : > { %v3418_v45 = vpop.xlane.xlu0 %3417  ;;  %6517 = vlog2.f32 %v3388_v37 }
 0x7ed   : > { %v6508_v15 = vpop.eup %6507  ;;  %6519 = vlog2.f32 %v3418_v45 }
 0x7ee   : > { %v3454_v26 = vmul.f32 0.6931472, %v6508_v15 }
 0x7ef   : > { %v3420_v61 = vpop.xlane.xlu1 %3419 }
 0x7f0   : > { %v3398_v57 = vpop.xlane.xlu0 %3397  ;;  %v3515_v4 = vsub.f32 %v8274_v39, %v3454_v26  ;;  %6521 = vlog2.f32 %v3420_v61 }
 0x7f1   : > { %v6510_v35 = vpop.eup %6509  ;;  %6523 = vlog2.f32 %v3398_v57 }
 0x7f2   : > { %v6512_v50 = vpop.eup %6511  ;;  %v3456_v48 = vmul.f32 0.6931472, %v6510_v35  ;;  %3547 = vst [vmem:[#allocation11 + $0x10] sm:$0xff] %v3515_v4 }
 0x7f3   : > { %v3486_v40 = vmul.f32 0.6931472, %v6512_v50  ;;  %v3400_v9 = vpop.xlane.xlu1 %3399 }
 0x7f4   : > { %v3516_v36 = vsub.f32 %v8281_v31, %v3456_v48  ;;  %v3430_v44 = vpop.xlane.xlu0 %3429  ;;  %6525 = vlog2.f32 %v3400_v9 }
 0x7f5   : > { %v6514_v8 = vpop.eup %6513  ;;  %v3531_v38 = vsub.f32 %v8277_v42, %v3486_v40  ;;  %6527 = vlog2.f32 %v3430_v44 }
 0x7f6   : > { %v6516_v2 = vpop.eup %6515  ;;  %3548 = vst [vmem:[#allocation11 + $0x18] sm:$0xff] %v3516_v36  ;;  %v3488_v58 = vmul.f32 0.6931472, %v6514_v8 }
 0x7f7   : > { %3563 = vst [vmem:[#allocation11 + $0x90] sm:$0xff] %v3531_v38  ;;  %v3450_v39 = vmul.f32 0.6931472, %v6516_v2  ;;  %v3432_v6 = vpop.xlane.xlu1 %3431 }
 0x7f8   : > { %v3532_v5 = vsub.f32 %v8289_v11, %v3488_v58  ;;  %v3394_v25 = vpop.xlane.xlu0 %3393  ;;  %6529 = vlog2.f32 %v3432_v6 }
 0x7f9   : > { %v3513_v37 = vsub.f32 %v8285_v19, %v3450_v39  ;;  %v6518_v31 = vpop.eup %6517  ;;  %6531 = vlog2.f32 %v3394_v25 }
 0x7fa   : > { %3564 = vst [vmem:[#allocation11 + $0x98] sm:$0xff] %v3532_v5  ;;  %v6520_v45 = vpop.eup %6519  ;;  %v3452_v42 = vmul.f32 0.6931472, %v6518_v31 }
 0x7fb   : > { %3545 = vst [vmem:[#allocation11] sm:$0xff] %v3513_v37  ;;  %v3482_v15 = vmul.f32 0.6931472, %v6520_v45  ;;  %v3396_v26 = vpop.xlane.xlu1 %3395 }
 0x7fc   : > { %v3426_v61 = vpop.xlane.xlu0 %3425  ;;  %v3514_v57 = vsub.f32 %v8301_v22, %v3452_v42  ;;  %6533 = vlog2.f32 %v3396_v26 }
 0x7fd   : > { %v6522_v35 = vpop.eup %6521  ;;  %v3529_v11 = vsub.f32 %v8292_v20, %v3482_v15  ;;  %6535 = vlog2.f32 %v3426_v61 }
 0x7fe   : > { %v6524_v4 = vpop.eup %6523  ;;  %3546 = vst [vmem:[#allocation11 + $0x8] sm:$0xff] %v3514_v57  ;;  %v3484_v19 = vmul.f32 0.6931472, %v6522_v35 }
 0x7ff   : > { %3561 = vst [vmem:[#allocation11 + $0x80] sm:$0xff] %v3529_v11  ;;  %v3462_v50 = vmul.f32 0.6931472, %v6524_v4  ;;  %v3428_v48 = vpop.xlane.xlu1 %3427 }
 0x800   : > { %v3406_v40 = vpop.xlane.xlu0 %3405  ;;  %v3530_v36 = vsub.f32 %v8298_v10, %v3484_v19  ;;  %6537 = vlog2.f32 %v3428_v48 }
 0x801   : > { %v6526_v9 = vpop.eup %6525  ;;  %v3519_v44 = vsub.f32 %v8309_v7, %v3462_v50  ;;  %6539 = vlog2.f32 %v3406_v40 }
 0x802   : > { %v6528_v22 = vpop.eup %6527  ;;  %3562 = vst [vmem:[#allocation11 + $0x88] sm:$0xff] %v3530_v36  ;;  %v3464_v8 = vmul.f32 0.6931472, %v6526_v9 }
 0x803   : > { %3551 = vst [vmem:[#allocation11 + $0x30] sm:$0xff] %v3519_v44  ;;  %v3494_v20 = vmul.f32 0.6931472, %v6528_v22  ;;  %v3408_v38 = vpop.xlane.xlu1 %3407 }
 0x804   : > { %v3438_v2 = vpop.xlane.xlu0 %3437  ;;  %v3520_v58 = vsub.f32 %v8306_v23, %v3464_v8  ;;  %6541 = vlog2.f32 %v3408_v38 }
 0x805   : > { %v6530_v39 = vpop.eup %6529  ;;  %v3535_v5 = vsub.f32 %v8317_v59, %v3494_v20  ;;  %6543 = vlog2.f32 %v3438_v2 }
 0x806   : > { %v6532_v10 = vpop.eup %6531  ;;  %3552 = vst [vmem:[#allocation11 + $0x38] sm:$0xff] %v3520_v58  ;;  %v3496_v6 = vmul.f32 0.6931472, %v6530_v39 }
 0x807   : > { %3567 = vst [vmem:[#allocation11 + $0xb0] sm:$0xff] %v3535_v5  ;;  %v3458_v7 = vmul.f32 0.6931472, %v6532_v10  ;;  %v3440_v25 = vpop.xlane.xlu1 %3439 }
 0x808   : > { %v3402_v37 = vpop.xlane.xlu0 %3401  ;;  %v3536_v31 = vsub.f32 %v8314_v62, %v3496_v6  ;;  %6545 = vlog2.f32 %v3440_v25 }
 0x809   : > { %v6534_v45 = vpop.eup %6533  ;;  %v3517_v42 = vsub.f32 %v8325_v33, %v3458_v7  ;;  %6547 = vlog2.f32 %v3402_v37 }
 0x80a   : > { %v6536_v23 = vpop.eup %6535  ;;  %3568 = vst [vmem:[#allocation11 + $0xb8] sm:$0xff] %v3536_v31  ;;  %v3460_v15 = vmul.f32 0.6931472, %v6534_v45 }
 0x80b   : > { %3549 = vst [vmem:[#allocation11 + $0x20] sm:$0xff] %v3517_v42  ;;  %v3490_v59 = vmul.f32 0.6931472, %v6536_v23  ;;  %v3404_v26 = vpop.xlane.xlu1 %3403 }
 0x80c   : > { %v3434_v61 = vpop.xlane.xlu0 %3433  ;;  %v3518_v57 = vsub.f32 %v8322_v16, %v3460_v15  ;;  %6549 = vlog2.f32 %v3404_v26 }
 0x80d   : > { %v6538_v35 = vpop.eup %6537  ;;  %v3533_v11 = vsub.f32 %v8333_v60, %v3490_v59  ;;  %6551 = vlog2.f32 %v3434_v61 }
 0x80e   : > { %v6540_v62 = vpop.eup %6539  ;;  %3550 = vst [vmem:[#allocation11 + $0x28] sm:$0xff] %v3518_v57  ;;  %v3492_v4 = vmul.f32 0.6931472, %v6538_v35 }
 0x80f   : > { %3565 = vst [vmem:[#allocation11 + $0xa0] sm:$0xff] %v3533_v11  ;;  %v3470_v33 = vmul.f32 0.6931472, %v6540_v62  ;;  %v3436_v19 = vpop.xlane.xlu1 %3435 }
 0x810   : > { %v3414_v50 = vpop.xlane.xlu0 %3413  ;;  %v3534_v48 = vsub.f32 %v8330_v12, %v3492_v4  ;;  %6553 = vlog2.f32 %v3436_v19 }
 0x811   : > { %v6542_v40 = vpop.eup %6541  ;;  %v3523_v36 = vsub.f32 %v8341_v46, %v3470_v33  ;;  %6555 = vlog2.f32 %v3414_v50 }
 0x812   : > { %v6544_v16 = vpop.eup %6543  ;;  %3566 = vst [vmem:[#allocation11 + $0xa8] sm:$0xff] %v3534_v48  ;;  %v3472_v9 = vmul.f32 0.6931472, %v6542_v40 }
 0x813   : > { %3555 = vst [vmem:[#allocation11 + $0x50] sm:$0xff] %v3523_v36  ;;  %v3502_v60 = vmul.f32 0.6931472, %v6544_v16  ;;  %v3416_v44 = vpop.xlane.xlu1 %3415 }
 0x814   : > { %v3410_v22 = vpop.xlane.xlu0 %3409  ;;  %v3524_v8 = vsub.f32 %v8338_v34, %v3472_v9  ;;  %6557 = vlog2.f32 %v3416_v44 }
 0x815   : > { %v6546_v20 = vpop.eup %6545  ;;  %v3539_v38 = vsub.f32 %v8349_v17, %v3502_v60  ;;  %6559 = vlog2.f32 %v3410_v22 }
 0x816   : > { %v6548_v12 = vpop.eup %6547  ;;  %3556 = vst [vmem:[#allocation11 + $0x58] sm:$0xff] %v3524_v8  ;;  %v3504_v2 = vmul.f32 0.6931472, %v6546_v20 }
 0x817   : > { %3571 = vst [vmem:[#allocation11 + $0xd0] sm:$0xff] %v3539_v38  ;;  %v3466_v46 = vmul.f32 0.6931472, %v6548_v12  ;;  %v3412_v58 = vpop.xlane.xlu1 %3411 }
 0x818   : > { %v3442_v39 = vpop.xlane.xlu0 %3441  ;;  %v3540_v5 = vsub.f32 %v8346_v24, %v3504_v2  ;;  %6561 = vlog2.f32 %v3412_v58 }
 0x819   : > { %v6550_v10 = vpop.eup %6549  ;;  %v3521_v6 = vsub.f32 %v8357_v1, %v3466_v46  ;;  %6563 = vlog2.f32 %v3442_v39 }
 0x81a   : > { %v6552_v34 = vpop.eup %6551  ;;  %3572 = vst [vmem:[#allocation11 + $0xd8] sm:$0xff] %v3540_v5  ;;  %v3468_v7 = vmul.f32 0.6931472, %v6550_v10 }
 0x81b   : > { %3553 = vst [vmem:[#allocation11 + $0x40] sm:$0xff] %v3521_v6  ;;  %v3498_v17 = vmul.f32 0.6931472, %v6552_v34  ;;  %v3444_v25 = vpop.xlane.xlu1 %3443 }
 0x81c   : > { %v3446_v37 = vpop.xlane.xlu0 %3445  ;;  %v3522_v31 = vsub.f32 %v8354_v43, %v3468_v7  ;;  %6565 = vlog2.f32 %v3444_v25 }
 0x81d   : > { %v6554_v45 = vpop.eup %6553  ;;  %v3537_v42 = vsub.f32 %v8365_v27, %v3498_v17  ;;  %6567 = vlog2.f32 %v3446_v37 }
 0x81e   : > { %v6556_v24 = vpop.eup %6555  ;;  %3554 = vst [vmem:[#allocation11 + $0x48] sm:$0xff] %v3522_v31  ;;  %v3500_v23 = vmul.f32 0.6931472, %v6554_v45 }
 0x81f   : > { %3569 = vst [vmem:[#allocation11 + $0xc0] sm:$0xff] %v3537_v42  ;;  %v3478_v1 = vmul.f32 0.6931472, %v6556_v24  ;;  %v3448_v15 = vpop.xlane.xlu1 %3447 }
 0x820   : > { %v3538_v59 = vsub.f32 %v8362_v55, %v3500_v23  ;;  %6569 = vlog2.f32 %v3448_v15 }
 0x821   : > { %v6558_v26 = vpop.eup %6557  ;;  %v3527_v61 = vsub.f32 %v8373_v32, %v3478_v1 }
 0x822   : > { %v6560_v57 = vpop.eup %6559  ;;  %3570 = vst [vmem:[#allocation11 + $0xc8] sm:$0xff] %v3538_v59  ;;  %v3480_v43 = vmul.f32 0.6931472, %v6558_v26 }
 0x823   : > { %3559 = vst [vmem:[#allocation11 + $0x70] sm:$0xff] %v3527_v61  ;;  %v3474_v35 = vmul.f32 0.6931472, %v6560_v57 }
 0x824   : > { %v3528_v27 = vsub.f32 %v8370_v13, %v3480_v43 }
 0x825   : > { %v6562_v11 = vpop.eup %6561  ;;  %v3525_v62 = vsub.f32 %v8381_v21, %v3474_v35 }
 0x826   : > { %v6564_v4 = vpop.eup %6563  ;;  %3560 = vst [vmem:[#allocation11 + $0x78] sm:$0xff] %v3528_v27  ;;  %v3476_v33 = vmul.f32 0.6931472, %v6562_v11 }
 0x827   : > { %3557 = vst [vmem:[#allocation11 + $0x60] sm:$0xff] %v3525_v62  ;;  %v3506_v19 = vmul.f32 0.6931472, %v6564_v4 }
 0x828   : > { %v3526_v55 = vsub.f32 %v8378_v14, %v3476_v33 }
 0x829   : > { %v6566_v50 = vpop.eup %6565  ;;  %v3541_v32 = vsub.f32 %v8389_v41, %v3506_v19 }
 0x82a   : > { %v6568_v48 = vpop.eup %6567  ;;  %3558 = vst [vmem:[#allocation11 + $0x68] sm:$0xff] %v3526_v55  ;;  %v3508_v40 = vmul.f32 0.6931472, %v6566_v50 }
 0x82b   : > { %3573 = vst [vmem:[#allocation11 + $0xe0] sm:$0xff] %v3541_v32  ;;  %v3510_v36 = vmul.f32 0.6931472, %v6568_v48 }
 0x82c   : > { %v3542_v13 = vsub.f32 %v8386_v3, %v3508_v40 }
 0x82d   : > { %v6570_v16 = vpop.eup %6569  ;;  %v3543_v21 = vsub.f32 %v8394_v18, %v3510_v36 }
 0x82e   : > { %3574 = vst [vmem:[#allocation11 + $0xe8] sm:$0xff] %v3542_v13  ;;  %v3512_v9 = vmul.f32 0.6931472, %v6570_v16 }
 0x82f   : > { %3575 = vst [vmem:[#allocation11 + $0xf0] sm:$0xff] %v3543_v21 }
 0x830   : > { %v3544_v60 = vsub.f32 %v8397_v49, %v3512_v9 }
 0x832   : > { %3576 = vst [vmem:[#allocation11 + $0xf8] sm:$0xff] %v3544_v60 }
 0x833 PF: > { %p5070_p13 = scmp.lt.s32.totalorder %s6837_s30, 2 }
 0x834   : > { %s4097_s13 = sshra.s32 (!%p5070_p13), %s7465_s20, 3  ;;  %p5104_p0 = scmp.ne.s32.totalorder (!%p5070_p13), %s6837_s30, 4 }
 0x835   : > { %3580 = sbr.rel (%p5070_p13) target bundleno = 2910 (0xb5e), region = 100  ;;  %s5103_s17 = sshll.u32 (!%p5070_p13), %s4097_s13, 2 }
 0x836   : > { %s8483_s20 = scalar_lea.vmem (!%p5070_p13), [#allocation3], %s5103_s17 }
 0x83a   : > { %v6855_v14 = vmov 0   ;;  %v9093_v3 = vld [vmem:[#allocation16_spill] sm:$0xff]  ;;  %v9094_v41 = vld [vmem:[#allocation15_spill] sm:$0xff]  ;;  %v9095_v18 = vld [vmem:[#allocation18_spill] sm:$0xff] }
 0x83b   : > { %6572 = vset.pattern.permute.xlu1 %v6855_v14  ;;  %6571 = vset.pattern.permute.xlu0 %v6855_v14  ;;  %v9096_v49 = vld [vmem:[#allocation17_spill] sm:$0xff]  ;;  %v9097_v44 = vld [vmem:[#allocation20_spill] sm:$0xff]  ;;  %v9104_v22 = vld [vmem:[#allocation27_spill] sm:$0xff] }
 0x83c   : > { %3625 = vperm.xlu1 %6572, %v7325_v53   ;;  %3615 = vperm.xlu0 %6571, %v7315_v29   ;;  %v9098_v53 = vld [vmem:[#allocation19_spill] sm:$0xff]  ;;  %v9099_v29 = vld [vmem:[#allocation22_spill] sm:$0xff]  ;;  %v9106_v20 = vld [vmem:[#allocation29_spill] sm:$0xff] }
 0x83d   : > { %v9105_v8 = vld [vmem:[#allocation26_spill] sm:$0xff]  ;;  %v9107_v38 = vld [vmem:[#allocation28_spill] sm:$0xff]  ;;  %v9108_v12 = vld [vmem:[#allocation31_spill] sm:$0xff] }
 0x83e   : > { %v3583_v2 = vld [vmem:[#allocation2 + $0xd8] sm:$0xff]  ;;  %v3581_v46 = vld [vmem:[#allocation2 + $0xb0] sm:$0xff]  ;;  %v5675_v58 = vld [vmem:[#allocation4 + $0x48] sm:$0xff]  }
 0x83f   : > { %v5487_v39 = vld [vmem:[#allocation4] sm:$0xff]   ;;  %v5492_v7 = vunpack.c.l.bf16 %v5675_v58  ;;  %v3584_v25 = vld [vmem:[#allocation2 + $0x18] sm:$0xff]  ;;  %v5493_v23 = vunpack.c.h.bf16 %v5675_v58  ;;  %v5676_v26 = vld [vmem:[#allocation4 + $0x68] sm:$0xff]  }
 0x840   : > { %3630 = vperm.xlu1 %6572, %v7331_v54   ;;  %3620 = vperm.xlu0 %6571, %v7320_v47   ;;  %v9100_v54 = vld [vmem:[#allocation21_spill] sm:$0xff]  ;;  %v9101_v47 = vld [vmem:[#allocation24_spill] sm:$0xff]  ;;  %v5488_v17 = vunpack.c.l.bf16 %v5487_v39  ;;  %v3582_v37 = vld [vmem:[#allocation2] sm:$0xff]  ;;  %v5489_v15 = vunpack.c.h.bf16 %v5487_v39  ;;  %v5497_v62 = vunpack.c.h.bf16 %v5676_v26  ;;  %v5496_v33 = vunpack.c.l.bf16 %v5676_v26 }
 0x841   : > { %v3586_v43 = vld [vmem:[#allocation2 + $0x68] sm:$0xff]  ;;  %v3585_v35 = vld [vmem:[#allocation2 + $0x50] sm:$0xff]  ;;  %v5677_v14 = vld [vmem:[#allocation4 + $0x78] sm:$0xff]  }
 0x842   : > { %v3588_v13 = vld [vmem:[#allocation2 + $0x48] sm:$0xff] }
 0x844   : > { %3640 = vperm.xlu1 %6572, %v7341_v0   ;;  %3635 = vperm.xlu0 %6571, %v7336_v63   ;;  %v9102_v0 = vld [vmem:[#allocation23_spill] sm:$0xff]  ;;  %v9103_v63 = vld [vmem:[#allocation25_spill] sm:$0xff] }
 0x848   : > { %3650 = vperm.xlu1 %6572, %v9093_v3   ;;  %3645 = vperm.xlu0 %6571, %v9094_v41   ;;  %v3587_v3 = vld [vmem:[#allocation2 + $0x30] sm:$0xff] }
 0x84c   : > { %3660 = vperm.xlu1 %6572, %v9095_v18   ;;  %3655 = vperm.xlu0 %6571, %v9096_v49  }
 0x850   : > { %3670 = vperm.xlu1 %6572, %v9097_v44   ;;  %3665 = vperm.xlu0 %6571, %v9098_v53  }
 0x854   : > { %3680 = vperm.xlu1 %6572, %v9099_v29   ;;  %3675 = vperm.xlu0 %6571, %v9100_v54   ;;  %v5678_v54 = vld [vmem:[#allocation4 + $0x8] sm:$0xff]  }
 0x855   : > { %v5504_v58 = vunpack.c.l.bf16 %v5678_v54 }
 0x858   : > { %3690 = vperm.xlu1 %6572, %v9101_v47   ;;  %3685 = vperm.xlu0 %6571, %v9102_v0   ;;  %v5501_v47 = vunpack.c.h.bf16 %v5677_v14 }
 0x85c   : > { %3700 = vperm.xlu1 %6572, %v7403_v52   ;;  %3695 = vperm.xlu0 %6571, %v7398_v51   ;;  %v9109_v52 = vld [vmem:[#allocation30_spill] sm:$0xff]  ;;  %v9110_v51 = vld [vmem:[#allocation33_spill] sm:$0xff] }
 0x860   : > { %3710 = vperm.xlu1 %6572, %v7413_v30   ;;  %3705 = vperm.xlu0 %6571, %v7408_v28   ;;  %v9111_v30 = vld [vmem:[#allocation32_spill] sm:$0xff]  ;;  %v9112_v28 = vld [vmem:[#allocation35_spill] sm:$0xff] }
 0x864   : > { %3720 = vperm.xlu1 %6572, %v7423_v56   ;;  %3715 = vperm.xlu0 %6571, %v9103_v63   ;;  %v9113_v56 = vld [vmem:[#allocation34_spill] sm:$0xff]  ;;  %v5500_v63 = vunpack.c.l.bf16 %v5677_v14 }
 0x868   : > { %3730 = vperm.xlu1 %6572, %v9104_v22   ;;  %3725 = vperm.xlu0 %6571, %v9105_v8   ;;  %v3590_v8 = vld [vmem:[#allocation2 + $0x88] sm:$0xff] }
 0x86c   : > { %3740 = vperm.xlu1 %6572, %v9106_v20   ;;  %3735 = vperm.xlu0 %6571, %v9107_v38   ;;  %v3589_v20 = vld [vmem:[#allocation2 + $0x80] sm:$0xff] }
 0x870   : > { %3750 = vperm.xlu1 %6572, %v9108_v12   ;;  %3745 = vperm.xlu0 %6571, %v9109_v52  }
 0x874   : > { %3760 = vperm.xlu1 %6572, %v9110_v51   ;;  %3755 = vperm.xlu0 %6571, %v9111_v30   ;;  %v5505_v30 = vunpack.c.h.bf16 %v5678_v54 }
 0x878   : > { %3770 = vperm.xlu1 %6572, %v9112_v28   ;;  %3765 = vperm.xlu0 %6571, %v9113_v56  }
 0x8b7   : > { %v3626_v5 = vpop.permute.xlu1 %3625  ;;  %v3616_v10 = vpop.permute.xlu0 %3615 }
 0x8b8   : > { %v3775_v6 = vmul.f32 %v3626_v5, %v3583_v2  ;;  %v3773_v34 = vmul.f32 %v3616_v10, %v3581_v46 }
 0x8ba   : > { %v3807_v31 = vmul.f32 0.9, %v3775_v6  ;;  %v3805_v45 = vmul.f32 0.9, %v3773_v34  ;;  %v3592_v34 = vld [vmem:[#allocation2 + $0xb8] sm:$0xff] }
 0x8bb   : > { %v3631_v42 = vpop.permute.xlu1 %3630  ;;  %v3621_v24 = vpop.permute.xlu0 %3620 }
 0x8bc   : > { %v3776_v1 = vmul.f32 %v3631_v42, %v3584_v25  ;;  %v3774_v59 = vmul.f32 %v3621_v24, %v3582_v37  ;;  %v8466_v61 = vadd.f32 %v5492_v7, %v3807_v31  ;;  %v8468_v57 = vadd.f32 %v5488_v17, %v3805_v45  ;;  %v3591_v7 = vld [vmem:[#allocation2 + $0xe8] sm:$0xff] }
 0x8be   : > { %v3808_v27 = vmul.f32 0.9, %v3776_v1  ;;  %v3806_v11 = vmul.f32 0.9, %v3774_v59  ;;  %v3939_v40 = vmul.f32 %v8466_v61, %v3626_v5  ;;  %v3937_v36 = vmul.f32 %v8468_v57, %v3616_v10  ;;  %v5679_v5 = vld [vmem:[#allocation4 + $0x50] sm:$0xff]  }
 0x8bf   : > { %v3641_v4 = vpop.permute.xlu1 %3640  ;;  %v3636_v19 = vpop.permute.xlu0 %3635  ;;  %v5509_v45 = vunpack.c.h.bf16 %v5679_v5 }
 0x8c0   : > { %v8471_v55 = vadd.f32 %v5493_v23, %v3808_v27  ;;  %v8473_v50 = vadd.f32 %v5489_v15, %v3806_v11  ;;  %v3778_v32 = vmul.f32 %v3641_v4, %v3586_v43  ;;  %v3777_v48 = vmul.f32 %v3636_v19, %v3585_v35  ;;  %v5680_v43 = vld [vmem:[#allocation4 + $0x40] sm:$0xff]   ;;  %v3594_v27 = vld [vmem:[#allocation2 + $0xf0] sm:$0xff] }
 0x8c2   : > { %v3940_v16 = vmul.f32 %v8471_v55, %v3631_v42  ;;  %v3938_v21 = vmul.f32 %v8473_v50, %v3621_v24  ;;  %v3810_v9 = vmul.f32 0.9, %v3778_v32  ;;  %v3809_v60 = vmul.f32 0.9, %v3777_v48 }
 0x8c3   : > { %v3651_v41 = vpop.permute.xlu1 %3650  ;;  %v3646_v18 = vpop.permute.xlu0 %3645  ;;  %v5508_v24 = vunpack.c.l.bf16 %v5679_v5  ;;  %v5513_v32 = vunpack.c.h.bf16 %v5680_v43 }
 0x8c4   : > { %v5558_v49 = vpack.c.bf16 %v3940_v16, %v3939_v40  ;;  %v5553_v44 = vpack.c.bf16 %v3938_v21, %v3937_v36  ;;  %v8479_v53 = vadd.f32 %v5497_v62, %v3810_v9  ;;  %v8481_v29 = vadd.f32 %v5496_v33, %v3809_v60  ;;  %v5681_v9 = vld [vmem:[#allocation4 + $0x38] sm:$0xff]  }
 0x8c5   : > { %v3780_v0 = vmul.f32 %v3651_v41, %v3588_v13  ;;  %v3779_v22 = vmul.f32 %v3646_v18, %v3587_v3  ;;  %v5512_v60 = vunpack.c.l.bf16 %v5680_v43  ;;  %v3596_v3 = vld [vmem:[#allocation2 + $0x78] sm:$0xff] }
 0x8c6   : > { %5690 = vst [vmem:[%s8483_s20 + $0x8] sm:$0xff] %v5558_v49   ;;  %5554 = vst [vmem:[%s8483_s20] sm:$0xff] %v5553_v44   ;;  %v3942_v38 = vmul.f32 %v8479_v53, %v3641_v4  ;;  %v3941_v12 = vmul.f32 %v8481_v29, %v3636_v19  ;;  %v3593_v19 = vld [vmem:[#allocation2 + $0x60] sm:$0xff] }
 0x8c7   : > { %v3812_v52 = vmul.f32 0.9, %v3780_v0  ;;  %v3811_v51 = vmul.f32 0.9, %v3779_v22  ;;  %v3661_v28 = vpop.permute.xlu1 %3660  ;;  %v3656_v56 = vpop.permute.xlu0 %3655 }
 0x8c8   : > { %v5563_v2 = vpack.c.bf16 %v3942_v38, %v3941_v12  ;;  %v3782_v46 = vmul.f32 %v3661_v28, %v3590_v8  ;;  %v3781_v39 = vmul.f32 %v3656_v56, %v3589_v20 }
 0x8c9   : > { %v8489_v10 = vadd.f32 %v5501_v47, %v3812_v52  ;;  %v8491_v6 = vadd.f32 %v5500_v63, %v3811_v51  ;;  %v5517_v47 = vunpack.c.h.bf16 %v5681_v9  ;;  %v5516_v63 = vunpack.c.l.bf16 %v5681_v9  ;;  %v5682_v52 = vld [vmem:[#allocation4 + $0x70] sm:$0xff]   ;;  %v3601_v9 = vld [vmem:[#allocation2 + $0xe0] sm:$0xff] }
 0x8ca   : > { %5691 = vst [vmem:[%s8483_s20 + $0x10] sm:$0xff] %v5563_v2   ;;  %v3814_v17 = vmul.f32 0.9, %v3782_v46  ;;  %v3813_v25 = vmul.f32 0.9, %v3781_v39  ;;  %v5521_v39 = vunpack.c.h.bf16 %v5682_v52 }
 0x8cb   : > { %v3944_v37 = vmul.f32 %v8489_v10, %v3651_v41  ;;  %v3943_v31 = vmul.f32 %v8491_v6, %v3646_v18  ;;  %v3671_v42 = vpop.permute.xlu1 %3670  ;;  %v3666_v23 = vpop.permute.xlu0 %3665  ;;  %v3595_v41 = vld [vmem:[#allocation2 + $0x8] sm:$0xff] }
 0x8cc   : > { %v8496_v1 = vadd.f32 %v5505_v30, %v3814_v17  ;;  %v8498_v15 = vadd.f32 %v5504_v58, %v3813_v25  ;;  %v3784_v59 = vmul.f32 %v3671_v42, %v3592_v34  ;;  %v3783_v26 = vmul.f32 %v3666_v23, %v3591_v7  ;;  %v3598_v30 = vld [vmem:[#allocation2 + $0x58] sm:$0xff] }
 0x8cd   : > { %v5568_v35 = vpack.c.bf16 %v3944_v37, %v3943_v31  ;;  %v5520_v34 = vunpack.c.l.bf16 %v5682_v52  ;;  %v3603_v52 = vld [vmem:[#allocation2 + $0x70] sm:$0xff] }
 0x8ce   : > { %v3946_v11 = vmul.f32 %v8496_v1, %v3661_v28  ;;  %v3945_v62 = vmul.f32 %v8498_v15, %v3656_v56  ;;  %v3816_v4 = vmul.f32 0.9, %v3784_v59  ;;  %v3815_v33 = vmul.f32 0.9, %v3783_v26  ;;  %v3597_v28 = vld [vmem:[#allocation2 + $0x38] sm:$0xff] }
 0x8cf   : > { %5692 = vst [vmem:[%s8483_s20 + $0x18] sm:$0xff] %v5568_v35   ;;  %v3681_v48 = vpop.permute.xlu1 %3680  ;;  %v3676_v40 = vpop.permute.xlu0 %3675  ;;  %v3599_v35 = vld [vmem:[#allocation2 + $0x40] sm:$0xff] }
 0x8d0   : > { %v5573_v36 = vpack.c.bf16 %v3946_v11, %v3945_v62  ;;  %v8503_v13 = vadd.f32 %v5509_v45, %v3816_v4  ;;  %v8505_v16 = vadd.f32 %v5508_v24, %v3815_v33  ;;  %v3786_v21 = vmul.f32 %v3681_v48, %v3594_v27  ;;  %v5683_v45 = vld [vmem:[#allocation4 + $0x60] sm:$0xff]   ;;  %v3600_v24 = vld [vmem:[#allocation2 + $0xc8] sm:$0xff] }
 0x8d1   : > { %v3785_v14 = vmul.f32 %v3676_v40, %v3593_v19  ;;  %v5525_v27 = vunpack.c.h.bf16 %v5683_v45 }
 0x8d2   : > { %5693 = vst [vmem:[%s8483_s20 + $0x20] sm:$0xff] %v5573_v36   ;;  %v3948_v18 = vmul.f32 %v8503_v13, %v3671_v42  ;;  %v3947_v49 = vmul.f32 %v8505_v16, %v3666_v23  ;;  %v3818_v44 = vmul.f32 0.9, %v3786_v21  ;;  %v3602_v21 = vld [vmem:[#allocation2 + $0x90] sm:$0xff] }
 0x8d3   : > { %v3817_v54 = vmul.f32 0.9, %v3785_v14  ;;  %v3691_v0 = vpop.permute.xlu1 %3690  ;;  %v3686_v22 = vpop.permute.xlu0 %3685 }
 0x8d4   : > { %v5578_v8 = vpack.c.bf16 %v3948_v18, %v3947_v49  ;;  %v8510_v20 = vadd.f32 %v5513_v32, %v3818_v44  ;;  %v3788_v38 = vmul.f32 %v3691_v0, %v3596_v3  ;;  %v3787_v12 = vmul.f32 %v3686_v22, %v3595_v41 }
 0x8d5   : > { %v8512_v51 = vadd.f32 %v5512_v60, %v3817_v54 }
 0x8d6   : > { %5694 = vst [vmem:[%s8483_s20 + $0x28] sm:$0xff] %v5578_v8   ;;  %v3950_v56 = vmul.f32 %v8510_v20, %v3681_v48  ;;  %v3820_v2 = vmul.f32 0.9, %v3788_v38  ;;  %v3819_v46 = vmul.f32 0.9, %v3787_v12  ;;  %v5684_v48 = vld [vmem:[#allocation4 + $0x18] sm:$0xff]  }
 0x8d7   : > { %v3949_v58 = vmul.f32 %v8512_v51, %v3676_v40  ;;  %v3701_v5 = vpop.permute.xlu1 %3700  ;;  %v3696_v7 = vpop.permute.xlu0 %3695  ;;  %v5524_v40 = vunpack.c.l.bf16 %v5683_v45  ;;  %v5529_v18 = vunpack.c.h.bf16 %v5684_v48  ;;  %v5528_v44 = vunpack.c.l.bf16 %v5684_v48  ;;  %v5685_v8 = vld [vmem:[#allocation4 + $0x20] sm:$0xff]   ;;  %v5686_v45 = vld [vmem:[#allocation4 + $0x10] sm:$0xff]  }
 0x8d8   : > { %v8517_v17 = vadd.f32 %v5517_v47, %v3820_v2  ;;  %v8519_v25 = vadd.f32 %v5516_v63, %v3819_v46  ;;  %v3790_v37 = vmul.f32 %v3701_v5, %v3598_v30  ;;  %v3789_v31 = vmul.f32 %v3696_v7, %v3597_v28  ;;  %v3604_v12 = vld [vmem:[#allocation2 + $0xc0] sm:$0xff] }
 0x8d9   : > { %v5583_v42 = vpack.c.bf16 %v3950_v56, %v3949_v58  ;;  %v5533_v46 = vunpack.c.h.bf16 %v5685_v8 }
 0x8da   : > { %v3952_v23 = vmul.f32 %v8517_v17, %v3691_v0  ;;  %v3951_v59 = vmul.f32 %v8519_v25, %v3686_v22  ;;  %v3822_v26 = vmul.f32 0.9, %v3790_v37  ;;  %v3821_v43 = vmul.f32 0.9, %v3789_v31 }
 0x8db   : > { %5695 = vst [vmem:[%s8483_s20 + $0x30] sm:$0xff] %v5583_v42   ;;  %v3711_v11 = vpop.permute.xlu1 %3710  ;;  %v3706_v62 = vpop.permute.xlu0 %3705 }
 0x8dc   : > { %v5588_v4 = vpack.c.bf16 %v3952_v23, %v3951_v59  ;;  %v8524_v33 = vadd.f32 %v5521_v39, %v3822_v26  ;;  %v8526_v19 = vadd.f32 %v5520_v34, %v3821_v43  ;;  %v3792_v32 = vmul.f32 %v3711_v11, %v3600_v24  ;;  %v3606_v24 = vld [vmem:[#allocation2 + $0xd0] sm:$0xff] }
 0x8dd   : > { %v3791_v36 = vmul.f32 %v3706_v62, %v3599_v35  ;;  %v5532_v39 = vunpack.c.l.bf16 %v5685_v8  ;;  %v3605_v35 = vld [vmem:[#allocation2 + $0xa8] sm:$0xff] }
 0x8de   : > { %5696 = vst [vmem:[%s8483_s20 + $0x38] sm:$0xff] %v5588_v4   ;;  %v3954_v60 = vmul.f32 %v8524_v33, %v3701_v5  ;;  %v3953_v14 = vmul.f32 %v8526_v19, %v3696_v7  ;;  %v3824_v3 = vmul.f32 0.9, %v3792_v32 }
 0x8df   : > { %v3823_v41 = vmul.f32 0.9, %v3791_v36  ;;  %v3721_v49 = vpop.permute.xlu1 %3720  ;;  %v3716_v54 = vpop.permute.xlu0 %3715  ;;  %v5687_v36 = vld [vmem:[#allocation4 + $0x30] sm:$0xff]  }
 0x8e0   : > { %v5593_v47 = vpack.c.bf16 %v3954_v60, %v3953_v14  ;;  %v8531_v0 = vadd.f32 %v5525_v27, %v3824_v3  ;;  %v3794_v63 = vmul.f32 %v3721_v49, %v3602_v21  ;;  %v3793_v22 = vmul.f32 %v3716_v54, %v3601_v9  ;;  %v3608_v60 = vld [vmem:[#allocation2 + $0x28] sm:$0xff]  ;;  %v3607_v14 = vld [vmem:[#allocation2 + $0x10] sm:$0xff] }
 0x8e1   : > { %v8533_v38 = vadd.f32 %v5524_v40, %v3823_v41  ;;  %v5537_v27 = vunpack.c.h.bf16 %v5686_v45  ;;  %v5536_v21 = vunpack.c.l.bf16 %v5686_v45 }
 0x8e2   : > { %5697 = vst [vmem:[%s8483_s20 + $0x40] sm:$0xff] %v5593_v47   ;;  %v3956_v30 = vmul.f32 %v8531_v0, %v3711_v11  ;;  %v3826_v28 = vmul.f32 0.9, %v3794_v63  ;;  %v3825_v56 = vmul.f32 0.9, %v3793_v22  ;;  %v5540_v47 = vunpack.c.l.bf16 %v5687_v36 }
 0x8e3   : > { %v3955_v2 = vmul.f32 %v8533_v38, %v3706_v62  ;;  %v3731_v58 = vpop.permute.xlu1 %3730  ;;  %v3726_v5 = vpop.permute.xlu0 %3725 }
 0x8e4   : > { %v8538_v34 = vadd.f32 %v5529_v18, %v3826_v28  ;;  %v8540_v7 = vadd.f32 %v5528_v44, %v3825_v56  ;;  %v3796_v37 = vmul.f32 %v3731_v58, %v3604_v12  ;;  %v3795_v31 = vmul.f32 %v3726_v5, %v3603_v52  ;;  %v3610_v56 = vld [vmem:[#allocation2 + $0xf8] sm:$0xff] }
 0x8e5   : > { %v5598_v42 = vpack.c.bf16 %v3956_v30, %v3955_v2  ;;  %v5541_v44 = vunpack.c.h.bf16 %v5687_v36  ;;  %v5688_v30 = vld [vmem:[#allocation4 + $0x28] sm:$0xff]   ;;  %v3609_v2 = vld [vmem:[#allocation2 + $0xa0] sm:$0xff] }
 0x8e6   : > { %v3958_v23 = vmul.f32 %v8538_v34, %v3721_v49  ;;  %v3957_v59 = vmul.f32 %v8540_v7, %v3716_v54  ;;  %v3828_v26 = vmul.f32 0.9, %v3796_v37  ;;  %v3827_v43 = vmul.f32 0.9, %v3795_v31  ;;  %v3611_v36 = vld [vmem:[#allocation2 + $0x20] sm:$0xff] }
 0x8e7   : > { %5698 = vst [vmem:[%s8483_s20 + $0x48] sm:$0xff] %v5598_v42   ;;  %v3741_v11 = vpop.permute.xlu1 %3740  ;;  %v3736_v62 = vpop.permute.xlu0 %3735  ;;  %v5545_v37 = vunpack.c.h.bf16 %v5688_v30  ;;  %v5544_v45 = vunpack.c.l.bf16 %v5688_v30 }
 0x8e8   : > { %v5603_v4 = vpack.c.bf16 %v3958_v23, %v3957_v59  ;;  %v8545_v32 = vadd.f32 %v5533_v46, %v3828_v26  ;;  %v8547_v48 = vadd.f32 %v5532_v39, %v3827_v43  ;;  %v3798_v40 = vmul.f32 %v3741_v11, %v3606_v24  ;;  %v5689_v43 = vld [vmem:[#allocation4 + $0x58] sm:$0xff]  }
 0x8e9   : > { %v3797_v9 = vmul.f32 %v3736_v62, %v3605_v35 }
 0x8ea   : > { %5699 = vst [vmem:[%s8483_s20 + $0x50] sm:$0xff] %v5603_v4   ;;  %v3960_v3 = vmul.f32 %v8545_v32, %v3731_v58  ;;  %v3959_v41 = vmul.f32 %v8547_v48, %v3726_v5  ;;  %v3830_v18 = vmul.f32 0.9, %v3798_v40 }
 0x8eb   : > { %v3829_v49 = vmul.f32 0.9, %v3797_v9  ;;  %v3751_v54 = vpop.permute.xlu1 %3750  ;;  %v3746_v63 = vpop.permute.xlu0 %3745 }
 0x8ec   : > { %v5608_v22 = vpack.c.bf16 %v3960_v3, %v3959_v41  ;;  %v8552_v8 = vadd.f32 %v5537_v27, %v3830_v18  ;;  %v3800_v12 = vmul.f32 %v3751_v54, %v3608_v60  ;;  %v3799_v52 = vmul.f32 %v3746_v63, %v3607_v14  ;;  %v3612_v27 = vld [vmem:[#allocation2 + $0x98] sm:$0xff] }
 0x8ed   : > { %v8554_v28 = vadd.f32 %v5536_v21, %v3829_v49  ;;  %v5549_v21 = vunpack.c.h.bf16 %v5689_v43  ;;  %v5548_v49 = vunpack.c.l.bf16 %v5689_v43 }
 0x8ee   : > { %5700 = vst [vmem:[%s8483_s20 + $0x58] sm:$0xff] %v5608_v22   ;;  %v3962_v46 = vmul.f32 %v8552_v8, %v3741_v11  ;;  %v3832_v58 = vmul.f32 0.9, %v3800_v12  ;;  %v3831_v39 = vmul.f32 0.9, %v3799_v52 }
 0x8ef   : > { %v3961_v5 = vmul.f32 %v8554_v28, %v3736_v62  ;;  %v3761_v31 = vpop.permute.xlu1 %3760  ;;  %v3756_v42 = vpop.permute.xlu0 %3755 }
 0x8f0   : > { %v8559_v24 = vadd.f32 %v5541_v44, %v3832_v58  ;;  %v8561_v23 = vadd.f32 %v5540_v47, %v3831_v39  ;;  %v3802_v59 = vmul.f32 %v3761_v31, %v3610_v56  ;;  %v3801_v26 = vmul.f32 %v3756_v42, %v3609_v2 }
 0x8f1   : > { %v5613_v35 = vpack.c.bf16 %v3962_v46, %v3961_v5 }
 0x8f2   : > { %v3964_v11 = vmul.f32 %v8559_v24, %v3751_v54  ;;  %v3963_v4 = vmul.f32 %v8561_v23, %v3746_v63  ;;  %v3834_v62 = vmul.f32 0.9, %v3802_v59  ;;  %v3833_v40 = vmul.f32 0.9, %v3801_v26 }
 0x8f3   : > { %5701 = vst [vmem:[%s8483_s20 + $0x60] sm:$0xff] %v5613_v35   ;;  %v3771_v9 = vpop.permute.xlu1 %3770  ;;  %v3766_v60 = vpop.permute.xlu0 %3765 }
 0x8f4   : > { %v5618_v14 = vpack.c.bf16 %v3964_v11, %v3963_v4  ;;  %v8566_v3 = vadd.f32 %v5545_v37, %v3834_v62  ;;  %v8568_v41 = vadd.f32 %v5544_v45, %v3833_v40  ;;  %v3804_v18 = vmul.f32 %v3771_v9, %v3612_v27 }
 0x8f5   : > { %v3803_v44 = vmul.f32 %v3766_v60, %v3611_v36 }
 0x8f6   : > { %5702 = vst [vmem:[%s8483_s20 + $0x68] sm:$0xff] %v5618_v14   ;;  %v3966_v54 = vmul.f32 %v8566_v3, %v3761_v31  ;;  %v3965_v47 = vmul.f32 %v8568_v41, %v3756_v42  ;;  %v3836_v63 = vmul.f32 0.9, %v3804_v18 }
 0x8f7   : > { %v3835_v22 = vmul.f32 0.9, %v3803_v44 }
 0x8f8   : > { %v5623_v12 = vpack.c.bf16 %v3966_v54, %v3965_v47  ;;  %v8573_v52 = vadd.f32 %v5549_v21, %v3836_v63 }
 0x8f9   : > { %v8575_v30 = vadd.f32 %v5548_v49, %v3835_v22 }
 0x8fa   : > { %5703 = vst [vmem:[%s8483_s20 + $0x70] sm:$0xff] %v5623_v12   ;;  %v3968_v56 = vmul.f32 %v8573_v52, %v3771_v9 }
 0x8fb   : > { %v3967_v2 = vmul.f32 %v8575_v30, %v3766_v60  ;;  %4136 = sbr.rel (%p5104_p0) target bundleno = 2910 (0xb5e), region = 104 }
 0x8fd   : > { %v5628_v46 = vpack.c.bf16 %v3968_v56, %v3967_v2 }
 0x8ff   : > { %5704 = vst [vmem:[%s8483_s20 + $0x78] sm:$0xff] %v5628_v46  }
 0x900   : > { %v6573_v58 = vld [vmem:[#allocation10 + $0x38] sm:$0xff]   ;;  %v6574_v39 = vld [vmem:[#allocation10 + $0x30] sm:$0xff]   ;;  %v4137_v5 = vpack.c.bf16 %v8473_v50, %v8468_v57  ;;  %v4145_v37 = vpack.c.bf16 %v8524_v33, %v8526_v19  ;;  %v6575_v31 = vld [vmem:[#allocation10 + $0x28] sm:$0xff]   ;;  %v4138_v42 = vpack.c.bf16 %v8471_v55, %v8466_v61  ;;  %v4146_v59 = vpack.c.bf16 %v8531_v0, %v8533_v38 }
 0x901   : > { %6169 = vmatprep.subr.bf16.mxu0 %v6573_v58  ;;  %6297 = vmatprep.subr.bf16.mxu1 %v6573_v58  ;;  %v6576_v45 = vld [vmem:[#allocation10 + $0x20] sm:$0xff]   ;;  %v6577_v57 = vld [vmem:[#allocation10 + $0x18] sm:$0xff]   ;;  %v6578_v50 = vld [vmem:[#allocation10 + $0x10] sm:$0xff]   ;;  %v4139_v26 = vpack.c.bf16 %v8479_v53, %v8481_v29  ;;  %v4147_v43 = vpack.c.bf16 %v8538_v34, %v8540_v7  ;;  %v4140_v35 = vpack.c.bf16 %v8489_v10, %v8491_v6 }
 0x902   : > { %6170 = vmatpush3.bf16.msra.mxu0 %v6573_v58  ;;  %6305 = vmatpush3.bf16.msra.mxu1 %v6573_v58  ;;  %v6579_v33 = vld [vmem:[#allocation10 + $0x8] sm:$0xff]   ;;  %v6580_v19 = vld [vmem:[#allocation10] sm:$0xff]   ;;  %v4148_v61 = vpack.c.bf16 %v8545_v32, %v8547_v48  ;;  %v4141_v55 = vpack.c.bf16 %v8496_v1, %v8498_v15  ;;  %v4149_v0 = vpack.c.bf16 %v8552_v8, %v8554_v28 }
 0x903   : > { %6171 = vmatprep.subr.bf16.mxu0 %v6574_v39  ;;  %6298 = vmatprep.subr.bf16.mxu1 %v6574_v39  ;;  %v4142_v53 = vpack.c.bf16 %v8503_v13, %v8505_v16  ;;  %v4150_v29 = vpack.c.bf16 %v8559_v24, %v8561_v23  ;;  %v4143_v10 = vpack.c.bf16 %v8510_v20, %v8512_v51  ;;  %v4385_v13 = vlaneseq  ;;  %v8619_v20 = vld [vmem:[%s9008_s8] ss:$0 sm:$0xff] }
 0x904   : > { %6185 = vmatprep.mubr.bf16.mxu0 %v4137_v5  ;;  %6201 = vmatprep.mubr.bf16.mxu1 %v4145_v37  ;;  %v4151_v6 = vpack.c.bf16 %v8566_v3, %v8568_v41  ;;  %v4144_v1 = vpack.c.bf16 %v8517_v17, %v8519_v25  ;;  %v4152_v15 = vpack.c.bf16 %v8573_v52, %v8575_v30 }
 0x905   : > { %v8614_v16 = vand.u32 127, %v4385_v13 }
 0x906   : > { %6172 = vmatpush3.bf16.msra.mxu0 %v6574_v39  ;;  %6306 = vmatpush3.bf16.msra.mxu1 %v6574_v39 }
 0x907   : > { %6173 = vmatprep.subr.bf16.mxu0 %v6575_v31  ;;  %6299 = vmatprep.subr.bf16.mxu1 %v6575_v31  ;;  %vm4387_vm1 = vcmp.lt.s32.totalorder %v8614_v16, 10 }
 0x90a   : > { %6174 = vmatpush3.bf16.msra.mxu0 %v6575_v31  ;;  %6307 = vmatpush3.bf16.msra.mxu1 %v6575_v31 }
 0x90b   : > { %6175 = vmatprep.subr.bf16.mxu0 %v6576_v45  ;;  %6300 = vmatprep.subr.bf16.mxu1 %v6576_v45 }
 0x90e   : > { %6176 = vmatpush3.bf16.msra.mxu0 %v6576_v45  ;;  %6308 = vmatpush3.bf16.msra.mxu1 %v6576_v45 }
 0x90f   : > { %6177 = vmatprep.subr.bf16.mxu0 %v6577_v57  ;;  %6301 = vmatprep.subr.bf16.mxu1 %v6577_v57 }
 0x912   : > { %6178 = vmatpush3.bf16.msra.mxu0 %v6577_v57  ;;  %6309 = vmatpush3.bf16.msra.mxu1 %v6577_v57 }
 0x913   : > { %6179 = vmatprep.subr.bf16.mxu0 %v6578_v50  ;;  %6302 = vmatprep.subr.bf16.mxu1 %v6578_v50 }
 0x916   : > { %6180 = vmatpush3.bf16.msra.mxu0 %v6578_v50  ;;  %6310 = vmatpush3.bf16.msra.mxu1 %v6578_v50 }
 0x917   : > { %6181 = vmatprep.subr.bf16.mxu0 %v6579_v33  ;;  %6303 = vmatprep.subr.bf16.mxu1 %v6579_v33 }
 0x91a   : > { %6182 = vmatpush3.bf16.msra.mxu0 %v6579_v33  ;;  %6311 = vmatpush3.bf16.msra.mxu1 %v6579_v33 }
 0x91b   : > { %6183 = vmatprep.subr.bf16.mxu0 %v6580_v19  ;;  %6304 = vmatprep.subr.bf16.mxu1 %v6580_v19 }
 0x91e   : > { %6184 = vmatpush3.bf16.msra.mxu0 %v6580_v19  ;;  %6312 = vmatpush3.bf16.msra.mxu1 %v6580_v19 }
 0x921   : > { %6186 = vmatmul.mubr.bf16.vlgmr.msra.gmra.mxu0 %v4138_v42  ;;  %6202 = vmatmul.mubr.bf16.vlgmr.msra.gmra.mxu1 %v4146_v59 }
 0x922   : > { %6189 = vmatprep.mubr.bf16.mxu0 %v4139_v26  ;;  %6205 = vmatprep.mubr.bf16.mxu1 %v4147_v43 }
 0x929   : > { %6190 = vmatmul.mubr.bf16.gmra.mxu0 %v4140_v35  ;;  %6206 = vmatmul.mubr.bf16.gmra.mxu1 %v4148_v61 }
 0x92a   : > { %6193 = vmatprep.mubr.bf16.mxu0 %v4141_v55  ;;  %6209 = vmatprep.mubr.bf16.mxu1 %v4149_v0 }
 0x931   : > { %6194 = vmatmul.mubr.bf16.gmra.mxu0 %v4142_v53  ;;  %6210 = vmatmul.mubr.bf16.gmra.mxu1 %v4150_v29 }
 0x932   : > { %6197 = vmatprep.mubr.bf16.mxu0 %v4143_v10  ;;  %6213 = vmatprep.mubr.bf16.mxu1 %v4151_v6 }
 0x939   : > { %6198 = vmatmul.mubr.bf16.gmra.mxu0 %v4144_v1  ;;  %6214 = vmatmul.mubr.bf16.gmra.mxu1 %v4152_v15 }
 0x9e1   : > { %v6187_v51 = vpop.f32.mrf.mxu0  ;;  %v6203_v38 = vpop.f32.mrf.mxu1 }
 0x9e2   : > { %v4267_v34 = vadd.f32 %v6187_v51, %v8619_v20  ;;  %v4331_v17 = vadd.f32 %v6203_v38, %v8619_v20 }
 0x9e3   : > { %v4258_v25 = vpop.f32.mrf.mxu0  ;;  %v4322_v7 = vpop.f32.mrf.mxu1 }
 0x9e4   : > { %v4259_v32 = vadd.f32 %v8619_v20, %v4258_v25  ;;  %v8627_v48 = vsel %vm4387_vm1, %v4331_v17, -1e+30  ;;  %v8631_v8 = vsel %vm4387_vm1, %v4267_v34, -1e+30  ;;  %v4323_v4 = vadd.f32 %v8619_v20, %v4322_v7 }
 0x9e5   : > { %4456 = vmax.xlane.f32.xlu0 %v8627_v48  ;;  %v6204_v28 = vpop.f32.mrf.mxu1  ;;  %4424 = vmax.xlane.f32.xlu1 %v8631_v8  ;;  %v6188_v24 = vpop.f32.mrf.mxu0 }
 0x9e6   : > { %v4270_v23 = vadd.f32 %v6188_v24, %v8619_v20  ;;  %v4334_v62 = vadd.f32 %v6204_v28, %v8619_v20  ;;  %v8644_v36 = vsel %vm4387_vm1, %v4259_v32, -1e+30  ;;  %v8656_v18 = vsel %vm4387_vm1, %v4323_v4, -1e+30 }
 0x9e7   : > { %v4261_v27 = vpop.f32.mrf.mxu0  ;;  %v4325_v11 = vpop.f32.mrf.mxu1 }
 0x9e8   : > { %v8640_v40 = vsel %vm4387_vm1, %v4270_v23, -1e+30  ;;  %v4262_v14 = vadd.f32 %v8619_v20, %v4261_v27  ;;  %v4326_v3 = vadd.f32 %v8619_v20, %v4325_v11  ;;  %v8652_v41 = vsel %vm4387_vm1, %v4334_v62, -1e+30 }
 0x9e9   : > { %4426 = vmax.xlane.f32.xlu1 %v8640_v40  ;;  %4420 = vmax.xlane.f32.xlu0 %v8644_v36  ;;  %v6191_v21 = vpop.f32.mrf.mxu0  ;;  %v6207_v9 = vpop.f32.mrf.mxu1 }
 0x9ea   : > { %v4283_v54 = vadd.f32 %v6191_v21, %v8619_v20  ;;  %v8664_v63 = vsel %vm4387_vm1, %v4326_v3, -1e+30  ;;  %v8668_v22 = vsel %vm4387_vm1, %v4262_v14, -1e+30  ;;  %v4347_v52 = vadd.f32 %v6207_v9, %v8619_v20 }
 0x9eb   : > { %v4274_v60 = vpop.f32.mrf.mxu0  ;;  %v4338_v44 = vpop.f32.mrf.mxu1 }
 0x9ec   : > { %v8680_v2 = vsel %vm4387_vm1, %v4283_v54, -1e+30  ;;  %v8690_v5 = vsel %vm4387_vm1, %v4347_v52, -1e+30  ;;  %v4275_v31 = vadd.f32 %v8619_v20, %v4274_v60  ;;  %v4339_v33 = vadd.f32 %v8619_v20, %v4338_v44 }
 0x9ed   : > { %4458 = vmax.xlane.f32.xlu1 %v8652_v41  ;;  %4452 = vmax.xlane.f32.xlu0 %v8656_v18  ;;  %v6192_v49 = vpop.f32.mrf.mxu0  ;;  %v6208_v12 = vpop.f32.mrf.mxu1 }
 0x9ee   : > { %v4286_v47 = vadd.f32 %v6192_v49, %v8619_v20  ;;  %v4350_v30 = vadd.f32 %v6208_v12, %v8619_v20  ;;  %v8704_v59 = vsel %vm4387_vm1, %v4275_v31, -1e+30  ;;  %v8716_v0 = vsel %vm4387_vm1, %v4339_v33, -1e+30 }
 0x9ef   : > { %v4277_v46 = vpop.f32.mrf.mxu0  ;;  %v4341_v37 = vpop.f32.mrf.mxu1 }
 0x9f0   : > { %v8676_v56 = vsel %vm4387_vm1, %v4286_v47, -1e+30  ;;  %v8686_v39 = vsel %vm4387_vm1, %v4350_v30, -1e+30  ;;  %v4278_v45 = vadd.f32 %v8619_v20, %v4277_v46  ;;  %v4342_v19 = vadd.f32 %v8619_v20, %v4341_v37 }
 0x9f1   : > { %4454 = vmax.xlane.f32.xlu1 %v8664_v63  ;;  %4422 = vmax.xlane.f32.xlu0 %v8668_v22  ;;  %v6195_v58 = vpop.f32.mrf.mxu0  ;;  %v6211_v50 = vpop.f32.mrf.mxu1 }
 0x9f2   : > { %v8700_v42 = vsel %vm4387_vm1, %v4278_v45, -1e+30  ;;  %v4299_v35 = vadd.f32 %v6195_v58, %v8619_v20  ;;  %v8712_v55 = vsel %vm4387_vm1, %v4342_v19, -1e+30  ;;  %v4363_v29 = vadd.f32 %v6211_v50, %v8619_v20 }
 0x9f3   : > { %v4290_v57 = vpop.f32.mrf.mxu0  ;;  %v4354_v43 = vpop.f32.mrf.mxu1 }
 0x9f4   : > { %v8728_v1 = vsel %vm4387_vm1, %v4299_v35, -1e+30  ;;  %v8738_v38 = vsel %vm4387_vm1, %v4363_v29, -1e+30  ;;  %v4291_v17 = vadd.f32 %v8619_v20, %v4290_v57  ;;  %v4355_v28 = vadd.f32 %v8619_v20, %v4354_v43 }
 0x9f5   : > { %4434 = vmax.xlane.f32.xlu1 %v8676_v56  ;;  %4432 = vmax.xlane.f32.xlu0 %v8680_v2  ;;  %v6196_v26 = vpop.f32.mrf.mxu0  ;;  %v6212_v53 = vpop.f32.mrf.mxu1 }
 0x9f6   : > { %v4302_v61 = vadd.f32 %v6196_v26, %v8619_v20  ;;  %v4366_v10 = vadd.f32 %v6212_v53, %v8619_v20  ;;  %v8752_v27 = vsel %vm4387_vm1, %v4291_v17, -1e+30  ;;  %v8764_v60 = vsel %vm4387_vm1, %v4355_v28, -1e+30 }
 0x9f7   : > { %v4293_v15 = vpop.f32.mrf.mxu0  ;;  %v4357_v34 = vpop.f32.mrf.mxu1 }
 0x9f8   : > { %v8724_v6 = vsel %vm4387_vm1, %v4302_v61, -1e+30  ;;  %v8734_v51 = vsel %vm4387_vm1, %v4366_v10, -1e+30  ;;  %v4294_v25 = vadd.f32 %v8619_v20, %v4293_v15  ;;  %v4358_v24 = vadd.f32 %v8619_v20, %v4357_v34 }
 0x9f9   : > { %4466 = vmax.xlane.f32.xlu1 %v8686_v39  ;;  %4464 = vmax.xlane.f32.xlu0 %v8690_v5  ;;  %v6199_v13 = vpop.f32.mrf.mxu0  ;;  %v6215_v32 = vpop.f32.mrf.mxu1 }
 0x9fa   : > { %v8748_v23 = vsel %vm4387_vm1, %v4294_v25, -1e+30  ;;  %v4315_v62 = vadd.f32 %v6199_v13, %v8619_v20  ;;  %v8760_v9 = vsel %vm4387_vm1, %v4358_v24, -1e+30  ;;  %v4379_v37 = vadd.f32 %v6215_v32, %v8619_v20 }
 0x9fb   : > { %v4306_v7 = vpop.f32.mrf.mxu0  ;;  %v4370_v4 = vpop.f32.mrf.mxu1 }
 0x9fc   : > { %v8774_v44 = vsel %vm4387_vm1, %v4315_v62, -1e+30  ;;  %v4307_v54 = vadd.f32 %v8619_v20, %v4306_v7  ;;  %v4371_v52 = vadd.f32 %v8619_v20, %v4370_v4  ;;  %v8810_v33 = vsel %vm4387_vm1, %v4379_v37, -1e+30 }
 0x9fd   : > { %4430 = vmax.xlane.f32.xlu1 %v8700_v42  ;;  %4428 = vmax.xlane.f32.xlu0 %v8704_v59  ;;  %v6200_v11 = vpop.f32.mrf.mxu0  ;;  %v6216_v3 = vpop.f32.mrf.mxu1 }
 0x9fe   : > { %v4318_v21 = vadd.f32 %v6200_v11, %v8619_v20  ;;  %v8788_v58 = vsel %vm4387_vm1, %v4307_v54, -1e+30  ;;  %v4382_v31 = vadd.f32 %v6216_v3, %v8619_v20  ;;  %v8800_v57 = vsel %vm4387_vm1, %v4371_v52, -1e+30 }
 0x9ff   : > { %v4309_v14 = vpop.f32.mrf.mxu0  ;;  %v4373_v12 = vpop.f32.mrf.mxu1 }
 0xa00   : > { %v8770_v49 = vsel %vm4387_vm1, %v4318_v21, -1e+30  ;;  %v4310_v47 = vadd.f32 %v8619_v20, %v4309_v14  ;;  %v4374_v30 = vadd.f32 %v8619_v20, %v4373_v12  ;;  %v8806_v50 = vsel %vm4387_vm1, %v4382_v31, -1e+30 }
 0xa01   : > { %4462 = vmax.xlane.f32.xlu1 %v8712_v55  ;;  %4460 = vmax.xlane.f32.xlu0 %v8716_v0 }
 0xa02   : > { %v8784_v46 = vsel %vm4387_vm1, %v4310_v47, -1e+30  ;;  %v8796_v45 = vsel %vm4387_vm1, %v4374_v30, -1e+30 }
 0xa05   : > { %4442 = vmax.xlane.f32.xlu1 %v8724_v6  ;;  %4440 = vmax.xlane.f32.xlu0 %v8728_v1 }
 0xa09   : > { %4474 = vmax.xlane.f32.xlu1 %v8734_v51  ;;  %4472 = vmax.xlane.f32.xlu0 %v8738_v38 }
 0xa0d   : > { %4438 = vmax.xlane.f32.xlu1 %v8748_v23  ;;  %4436 = vmax.xlane.f32.xlu0 %v8752_v27 }
 0xa11   : > { %4470 = vmax.xlane.f32.xlu1 %v8760_v9  ;;  %4468 = vmax.xlane.f32.xlu0 %v8764_v60 }
 0xa15   : > { %4450 = vmax.xlane.f32.xlu1 %v8770_v49  ;;  %4448 = vmax.xlane.f32.xlu0 %v8774_v44 }
 0xa19   : > { %4446 = vmax.xlane.f32.xlu1 %v8784_v46  ;;  %4444 = vmax.xlane.f32.xlu0 %v8788_v58 }
 0xa1d   : > { %4478 = vmax.xlane.f32.xlu1 %v8796_v45  ;;  %4476 = vmax.xlane.f32.xlu0 %v8800_v57 }
 0xa21   : > { %4482 = vmax.xlane.f32.xlu1 %v8806_v50  ;;  %4480 = vmax.xlane.f32.xlu0 %v8810_v33 }
 0xa6e   : > { %v4457_v20 = vpop.xlane.xlu0 %4456  ;;  %v4425_v19 = vpop.xlane.xlu1 %4424 }
 0xa6f   : > { %v8815_v26 = vsub.f32 %v8631_v8, %v4425_v19  ;;  %v8818_v43 = vsub.f32 %v8627_v48, %v4457_v20 }
 0xa71   : > { %v4520_v35 = vmul.f32 1.442695, %v8815_v26  ;;  %v4552_v29 = vmul.f32 1.442695, %v8818_v43 }
 0xa72   : > { %v4427_v61 = vpop.xlane.xlu1 %4426  ;;  %v4421_v53 = vpop.xlane.xlu0 %4420 }
 0xa73   : > { %v8822_v16 = vsub.f32 %v8640_v40, %v4427_v61  ;;  %6581 = vpow2.f32 %v4520_v35  ;;  %v8826_v10 = vsub.f32 %v8644_v36, %v4421_v53 }
 0xa75   : > { %v4522_v15 = vmul.f32 1.442695, %v8822_v16  ;;  %v4516_v40 = vmul.f32 1.442695, %v8826_v10 }
 0xa76   : > { %v4459_v8 = vpop.xlane.xlu1 %4458  ;;  %v4453_v13 = vpop.xlane.xlu0 %4452 }
 0xa77   : > { %6583 = vpow2.f32 %v4522_v15  ;;  %v8830_v48 = vsub.f32 %v8652_v41, %v4459_v8  ;;  %v8833_v34 = vsub.f32 %v8656_v18, %v4453_v13 }
 0xa78   : > { %6585 = vpow2.f32 %v4552_v29 }
 0xa79   : > { %v4554_v17 = vmul.f32 1.442695, %v8830_v48  ;;  %v4548_v36 = vmul.f32 1.442695, %v8833_v34 }
 0xa7a   : > { %v4455_v25 = vpop.xlane.xlu1 %4454  ;;  %v4423_v7 = vpop.xlane.xlu0 %4422 }
 0xa7b   : > { %6587 = vpow2.f32 %v4554_v17  ;;  %v8839_v32 = vsub.f32 %v8664_v63, %v4455_v25  ;;  %v8842_v28 = vsub.f32 %v8668_v22, %v4423_v7 }
 0xa7c   : > { %6589 = vpow2.f32 %v4516_v40 }
 0xa7d   : > { %v4518_v41 = vmul.f32 1.442695, %v8842_v28  ;;  %6591 = vpow2.f32 %v4548_v36  ;;  %v4550_v11 = vmul.f32 1.442695, %v8839_v32 }
 0xa7e   : > { %v4435_v18 = vpop.xlane.xlu1 %4434  ;;  %v4433_v24 = vpop.xlane.xlu0 %4432 }
 0xa7f   : > { %v8847_v4 = vsub.f32 %v8676_v56, %v4435_v18  ;;  %v8850_v62 = vsub.f32 %v8680_v2, %v4433_v24  ;;  %6593 = vpow2.f32 %v4518_v41 }
 0xa80   : > { %v6582_v63 = vpop.eup %6581  ;;  %6595 = vpow2.f32 %v4550_v11 }
 0xa81   : > { %v4528_v21 = vmul.f32 1.442695, %v8850_v62  ;;  %4584 = vadd.xlane.f32.xlu0 %v6582_v63  ;;  %v4530_v3 = vmul.f32 1.442695, %v8847_v4 }
 0xa82   : > { %v4467_v22 = vpop.xlane.xlu1 %4466  ;;  %v4465_v14 = vpop.xlane.xlu0 %4464 }
 0xa83   : > { %v8855_v54 = vsub.f32 %v8686_v39, %v4467_v22  ;;  %v8858_v47 = vsub.f32 %v8690_v5, %v4465_v14  ;;  %6597 = vpow2.f32 %v4528_v21 }
 0xa84   : > { %v6584_v56 = vpop.eup %6583  ;;  %6599 = vpow2.f32 %v4530_v3 }
 0xa85   : > { %v6586_v2 = vpop.eup %6585  ;;  %v4560_v12 = vmul.f32 1.442695, %v8858_v47  ;;  %4586 = vadd.xlane.f32.xlu1 %v6584_v56  ;;  %v4562_v37 = vmul.f32 1.442695, %v8855_v54 }
 0xa86   : > { %4616 = vadd.xlane.f32.xlu0 %v6586_v2  ;;  %v4431_v52 = vpop.xlane.xlu1 %4430  ;;  %v4429_v30 = vpop.xlane.xlu0 %4428 }
 0xa87   : > { %v8863_v31 = vsub.f32 %v8700_v42, %v4431_v52  ;;  %v8866_v39 = vsub.f32 %v8704_v59, %v4429_v30  ;;  %6601 = vpow2.f32 %v4560_v12 }
 0xa88   : > { %v6588_v5 = vpop.eup %6587  ;;  %6603 = vpow2.f32 %v4562_v37 }
 0xa89   : > { %v6590_v20 = vpop.eup %6589  ;;  %v4524_v19 = vmul.f32 1.442695, %v8866_v39  ;;  %4618 = vadd.xlane.f32.xlu1 %v6588_v5  ;;  %v4526_v53 = vmul.f32 1.442695, %v8863_v31 }
 0xa8a   : > { %4580 = vadd.xlane.f32.xlu0 %v6590_v20  ;;  %v4463_v35 = vpop.xlane.xlu1 %4462  ;;  %v4461_v61 = vpop.xlane.xlu0 %4460 }
 0xa8b   : > { %v8871_v29 = vsub.f32 %v8712_v55, %v4463_v35  ;;  %v8874_v42 = vsub.f32 %v8716_v0, %v4461_v61  ;;  %v6592_v59 = vpop.eup %6591  ;;  %6605 = vpow2.f32 %v4524_v19 }
 0xa8c   : > { %v6594_v15 = vpop.eup %6593  ;;  %6607 = vpow2.f32 %v4526_v53 }
 0xa8d   : > { %v4556_v8 = vmul.f32 1.442695, %v8874_v42  ;;  %4582 = vadd.xlane.f32.xlu1 %v6594_v15  ;;  %v4558_v17 = vmul.f32 1.442695, %v8871_v29  ;;  %v6596_v0 = vpop.eup %6595 }
 0xa8e   : > { %4612 = vadd.xlane.f32.xlu0 %v6592_v59  ;;  %v4443_v13 = vpop.xlane.xlu1 %4442  ;;  %v4441_v40 = vpop.xlane.xlu0 %4440 }
 0xa8f   : > { %v8879_v25 = vsub.f32 %v8724_v6, %v4443_v13  ;;  %v8882_v55 = vsub.f32 %v8728_v1, %v4441_v40  ;;  %6609 = vpow2.f32 %v4556_v8 }
 0xa90   : > { %v6598_v7 = vpop.eup %6597  ;;  %6611 = vpow2.f32 %v4558_v17 }
 0xa91   : > { %v4536_v36 = vmul.f32 1.442695, %v8882_v55  ;;  %4614 = vadd.xlane.f32.xlu1 %v6596_v0  ;;  %v4538_v24 = vmul.f32 1.442695, %v8879_v25  ;;  %v6600_v1 = vpop.eup %6599 }
 0xa92   : > { %4592 = vadd.xlane.f32.xlu0 %v6598_v7  ;;  %v4475_v41 = vpop.xlane.xlu1 %4474  ;;  %v4473_v18 = vpop.xlane.xlu0 %4472 }
 0xa93   : > { %v8887_v11 = vsub.f32 %v8734_v51, %v4475_v41  ;;  %v8890_v6 = vsub.f32 %v8738_v38, %v4473_v18  ;;  %6613 = vpow2.f32 %v4536_v36 }
 0xa94   : > { %v6602_v63 = vpop.eup %6601  ;;  %6615 = vpow2.f32 %v4538_v24 }
 0xa95   : > { %v4568_v21 = vmul.f32 1.442695, %v8890_v6  ;;  %4594 = vadd.xlane.f32.xlu1 %v6600_v1  ;;  %v4570_v3 = vmul.f32 1.442695, %v8887_v11  ;;  %v6604_v38 = vpop.eup %6603 }
 0xa96   : > { %4624 = vadd.xlane.f32.xlu0 %v6602_v63  ;;  %v4439_v22 = vpop.xlane.xlu1 %4438  ;;  %v4437_v14 = vpop.xlane.xlu0 %4436 }
 0xa97   : > { %v8895_v56 = vsub.f32 %v8748_v23, %v4439_v22  ;;  %v8898_v51 = vsub.f32 %v8752_v27, %v4437_v14  ;;  %6617 = vpow2.f32 %v4568_v21 }
 0xa98   : > { %v6606_v2 = vpop.eup %6605  ;;  %6619 = vpow2.f32 %v4570_v3 }
 0xa99   : > { %v4532_v12 = vmul.f32 1.442695, %v8898_v51  ;;  %4626 = vadd.xlane.f32.xlu1 %v6604_v38  ;;  %v4534_v37 = vmul.f32 1.442695, %v8895_v56  ;;  %v6608_v27 = vpop.eup %6607 }
 0xa9a   : > { %4588 = vadd.xlane.f32.xlu0 %v6606_v2  ;;  %v4471_v52 = vpop.xlane.xlu1 %4470  ;;  %v4469_v30 = vpop.xlane.xlu0 %4468 }
 0xa9b   : > { %v8903_v5 = vsub.f32 %v8760_v9, %v4471_v52  ;;  %v8906_v23 = vsub.f32 %v8764_v60, %v4469_v30  ;;  %6621 = vpow2.f32 %v4532_v12 }
 0xa9c   : > { %v6610_v20 = vpop.eup %6609  ;;  %6623 = vpow2.f32 %v4534_v37 }
 0xa9d   : > { %v4564_v19 = vmul.f32 1.442695, %v8906_v23  ;;  %4590 = vadd.xlane.f32.xlu1 %v6608_v27  ;;  %v4566_v53 = vmul.f32 1.442695, %v8903_v5  ;;  %v6612_v60 = vpop.eup %6611 }
 0xa9e   : > { %4620 = vadd.xlane.f32.xlu0 %v6610_v20  ;;  %v4451_v35 = vpop.xlane.xlu1 %4450  ;;  %v4449_v61 = vpop.xlane.xlu0 %4448 }
 0xa9f   : > { %v8911_v59 = vsub.f32 %v8770_v49, %v4451_v35  ;;  %v8914_v9 = vsub.f32 %v8774_v44, %v4449_v61  ;;  %6625 = vpow2.f32 %v4564_v19 }
 0xaa0   : > { %v6614_v15 = vpop.eup %6613  ;;  %6627 = vpow2.f32 %v4566_v53 }
 0xaa1   : > { %v4544_v8 = vmul.f32 1.442695, %v8914_v9  ;;  %4622 = vadd.xlane.f32.xlu1 %v6612_v60  ;;  %v4546_v17 = vmul.f32 1.442695, %v8911_v59  ;;  %v6616_v44 = vpop.eup %6615 }
 0xaa2   : > { %4600 = vadd.xlane.f32.xlu0 %v6614_v15  ;;  %v4447_v13 = vpop.xlane.xlu1 %4446  ;;  %v4445_v40 = vpop.xlane.xlu0 %4444 }
 0xaa3   : > { %v8919_v0 = vsub.f32 %v8784_v46, %v4447_v13  ;;  %v8922_v49 = vsub.f32 %v8788_v58, %v4445_v40  ;;  %6629 = vpow2.f32 %v4544_v8 }
 0xaa4   : > { %v6618_v7 = vpop.eup %6617  ;;  %6631 = vpow2.f32 %v4546_v17 }
 0xaa5   : > { %v4540_v36 = vmul.f32 1.442695, %v8922_v49  ;;  %4602 = vadd.xlane.f32.xlu1 %v6616_v44  ;;  %v4542_v24 = vmul.f32 1.442695, %v8919_v0  ;;  %v6620_v58 = vpop.eup %6619 }
 0xaa6   : > { %4632 = vadd.xlane.f32.xlu0 %v6618_v7  ;;  %v4479_v41 = vpop.xlane.xlu1 %4478  ;;  %v4477_v18 = vpop.xlane.xlu0 %4476 }
 0xaa7   : > { %v8927_v1 = vsub.f32 %v8796_v45, %v4479_v41  ;;  %v8930_v46 = vsub.f32 %v8800_v57, %v4477_v18  ;;  %6633 = vpow2.f32 %v4540_v36 }
 0xaa8   : > { %v6622_v63 = vpop.eup %6621  ;;  %6635 = vpow2.f32 %v4542_v24 }
 0xaa9   : > { %v4572_v21 = vmul.f32 1.442695, %v8930_v46  ;;  %4634 = vadd.xlane.f32.xlu1 %v6620_v58  ;;  %v4574_v3 = vmul.f32 1.442695, %v8927_v1  ;;  %v6624_v45 = vpop.eup %6623 }
 0xaaa   : > { %4596 = vadd.xlane.f32.xlu0 %v6622_v63  ;;  %v4483_v22 = vpop.xlane.xlu1 %4482  ;;  %v4481_v14 = vpop.xlane.xlu0 %4480 }
 0xaab   : > { %v8935_v38 = vsub.f32 %v8810_v33, %v4481_v14  ;;  %6637 = vpow2.f32 %v4572_v21  ;;  %v8938_v57 = vsub.f32 %v8806_v50, %v4483_v22 }
 0xaac   : > { %v6626_v2 = vpop.eup %6625  ;;  %6639 = vpow2.f32 %v4574_v3 }
 0xaad   : > { %v4576_v12 = vmul.f32 1.442695, %v8935_v38  ;;  %4598 = vadd.xlane.f32.xlu1 %v6624_v45  ;;  %v6628_v52 = vpop.eup %6627  ;;  %v4578_v30 = vmul.f32 1.442695, %v8938_v57 }
 0xaae   : > { %4628 = vadd.xlane.f32.xlu0 %v6626_v2 }
 0xaaf   : > { %6641 = vpow2.f32 %v4576_v12 }
 0xab0   : > { %v6630_v37 = vpop.eup %6629  ;;  %6643 = vpow2.f32 %v4578_v30 }
 0xab1   : > { %4630 = vadd.xlane.f32.xlu1 %v6628_v52  ;;  %v6632_v33 = vpop.eup %6631 }
 0xab2   : > { %4608 = vadd.xlane.f32.xlu0 %v6630_v37 }
 0xab4   : > { %v6634_v27 = vpop.eup %6633 }
 0xab5   : > { %4610 = vadd.xlane.f32.xlu1 %v6632_v33  ;;  %v6636_v50 = vpop.eup %6635 }
 0xab6   : > { %4604 = vadd.xlane.f32.xlu0 %v6634_v27 }
 0xab8   : > { %v6638_v20 = vpop.eup %6637 }
 0xab9   : > { %4606 = vadd.xlane.f32.xlu1 %v6636_v50  ;;  %v6640_v19 = vpop.eup %6639 }
 0xaba   : > { %4636 = vadd.xlane.f32.xlu0 %v6638_v20 }
 0xabc   : > { %v6642_v35 = vpop.eup %6641 }
 0xabd   : > { %4638 = vadd.xlane.f32.xlu1 %v6640_v19  ;;  %v6644_v61 = vpop.eup %6643 }
 0xabe   : > { %4640 = vadd.xlane.f32.xlu0 %v6642_v35 }
 0xac1   : > { %4642 = vadd.xlane.f32.xlu1 %v6644_v61 }
 0xb0a   : > { %v4585_v53 = vpop.xlane.xlu0 %4584 }
 0xb0b   : > { %6645 = vlog2.f32 %v4585_v53 }
 0xb0e   : > { %v4587_v60 = vpop.xlane.xlu1 %4586 }
 0xb0f   : > { %6647 = vlog2.f32 %v4587_v60  ;;  %v4617_v15 = vpop.xlane.xlu0 %4616 }
 0xb10   : > { %6649 = vlog2.f32 %v4617_v15 }
 0xb12   : > { %v4619_v8 = vpop.xlane.xlu1 %4618 }
 0xb13   : > { %6651 = vlog2.f32 %v4619_v8  ;;  %v4581_v13 = vpop.xlane.xlu0 %4580 }
 0xb14   : > { %6653 = vlog2.f32 %v4581_v13 }
 0xb16   : > { %v4583_v40 = vpop.xlane.xlu1 %4582 }
 0xb17   : > { %v4613_v17 = vpop.xlane.xlu0 %4612  ;;  %6655 = vlog2.f32 %v4583_v40 }
 0xb18   : > { %v6646_v44 = vpop.eup %6645  ;;  %6657 = vlog2.f32 %v4613_v17 }
 0xb19   : > { %v4649_v7 = vmul.f32 0.6931472, %v6646_v44 }
 0xb1a   : > { %v4615_v36 = vpop.xlane.xlu1 %4614 }
 0xb1b   : > { %v4593_v41 = vpop.xlane.xlu0 %4592  ;;  %v4710_v24 = vsub.f32 %v8815_v26, %v4649_v7  ;;  %6659 = vlog2.f32 %v4615_v36 }
 0xb1c   : > { %v6648_v18 = vpop.eup %6647  ;;  %6661 = vlog2.f32 %v4593_v41 }
 0xb1d   : > { %v6650_v58 = vpop.eup %6649  ;;  %v4651_v63 = vmul.f32 0.6931472, %v6648_v18  ;;  %4742 = vst [vmem:[#allocation11 + $0x10] sm:$0xff] %v4710_v24 }
 0xb1e   : > { %v4681_v21 = vmul.f32 0.6931472, %v6650_v58  ;;  %v4595_v14 = vpop.xlane.xlu1 %4594 }
 0xb1f   : > { %v4711_v22 = vsub.f32 %v8822_v16, %v4651_v63  ;;  %v4625_v3 = vpop.xlane.xlu0 %4624  ;;  %6663 = vlog2.f32 %v4595_v14 }
 0xb20   : > { %v6652_v45 = vpop.eup %6651  ;;  %v4726_v2 = vsub.f32 %v8818_v43, %v4681_v21  ;;  %6665 = vlog2.f32 %v4625_v3 }
 0xb21   : > { %v6654_v12 = vpop.eup %6653  ;;  %4743 = vst [vmem:[#allocation11 + $0x18] sm:$0xff] %v4711_v22  ;;  %v4683_v52 = vmul.f32 0.6931472, %v6652_v45 }
 0xb22   : > { %4758 = vst [vmem:[#allocation11 + $0x90] sm:$0xff] %v4726_v2  ;;  %v4645_v26 = vmul.f32 0.6931472, %v6654_v12  ;;  %v4627_v37 = vpop.xlane.xlu1 %4626 }
 0xb23   : > { %v4727_v30 = vsub.f32 %v8830_v48, %v4683_v52  ;;  %v4589_v33 = vpop.xlane.xlu0 %4588  ;;  %6667 = vlog2.f32 %v4627_v37 }
 0xb24   : > { %v4708_v27 = vsub.f32 %v8826_v10, %v4645_v26  ;;  %v6656_v16 = vpop.eup %6655  ;;  %6669 = vlog2.f32 %v4589_v33 }
 0xb25   : > { %4759 = vst [vmem:[#allocation11 + $0x98] sm:$0xff] %v4727_v30  ;;  %v6658_v50 = vpop.eup %6657  ;;  %v4647_v43 = vmul.f32 0.6931472, %v6656_v16 }
 0xb26   : > { %4740 = vst [vmem:[#allocation11] sm:$0xff] %v4708_v27  ;;  %v4677_v20 = vmul.f32 0.6931472, %v6658_v50  ;;  %v4591_v19 = vpop.xlane.xlu1 %4590 }
 0xb27   : > { %v4621_v35 = vpop.xlane.xlu0 %4620  ;;  %v4709_v61 = vsub.f32 %v8842_v28, %v4647_v43  ;;  %6671 = vlog2.f32 %v4591_v19 }
 0xb28   : > { %v6660_v53 = vpop.eup %6659  ;;  %v4724_v48 = vsub.f32 %v8833_v34, %v4677_v20  ;;  %6673 = vlog2.f32 %v4621_v35 }
 0xb29   : > { %v6662_v60 = vpop.eup %6661  ;;  %4741 = vst [vmem:[#allocation11 + $0x8] sm:$0xff] %v4709_v61  ;;  %v4679_v10 = vmul.f32 0.6931472, %v6660_v53 }
 0xb2a   : > { %4756 = vst [vmem:[#allocation11 + $0x80] sm:$0xff] %v4724_v48  ;;  %v4657_v15 = vmul.f32 0.6931472, %v6662_v60  ;;  %v4623_v8 = vpop.xlane.xlu1 %4622 }
 0xb2b   : > { %v4601_v13 = vpop.xlane.xlu0 %4600  ;;  %v4725_v40 = vsub.f32 %v8839_v32, %v4679_v10  ;;  %6675 = vlog2.f32 %v4623_v8 }
 0xb2c   : > { %v6664_v17 = vpop.eup %6663  ;;  %v4714_v44 = vsub.f32 %v8850_v62, %v4657_v15  ;;  %6677 = vlog2.f32 %v4601_v13 }
 0xb2d   : > { %v6666_v28 = vpop.eup %6665  ;;  %4757 = vst [vmem:[#allocation11 + $0x88] sm:$0xff] %v4725_v40  ;;  %v4659_v7 = vmul.f32 0.6931472, %v6664_v17 }
 0xb2e   : > { %4746 = vst [vmem:[#allocation11 + $0x30] sm:$0xff] %v4714_v44  ;;  %v4689_v34 = vmul.f32 0.6931472, %v6666_v28  ;;  %v4603_v36 = vpop.xlane.xlu1 %4602 }
 0xb2f   : > { %v4633_v41 = vpop.xlane.xlu0 %4632  ;;  %v4715_v18 = vsub.f32 %v8847_v4, %v4659_v7  ;;  %6679 = vlog2.f32 %v4603_v36 }
 0xb30   : > { %v6668_v24 = vpop.eup %6667  ;;  %v4730_v58 = vsub.f32 %v8858_v47, %v4689_v34  ;;  %6681 = vlog2.f32 %v4633_v41 }
 0xb31   : > { %v6670_v32 = vpop.eup %6669  ;;  %4747 = vst [vmem:[#allocation11 + $0x38] sm:$0xff] %v4715_v18  ;;  %v4691_v63 = vmul.f32 0.6931472, %v6668_v24 }
 0xb32   : > { %4762 = vst [vmem:[#allocation11 + $0xb0] sm:$0xff] %v4730_v58  ;;  %v4653_v62 = vmul.f32 0.6931472, %v6670_v32  ;;  %v4635_v21 = vpop.xlane.xlu1 %4634 }
 0xb33   : > { %v4597_v22 = vpop.xlane.xlu0 %4596  ;;  %v4731_v14 = vsub.f32 %v8855_v54, %v4691_v63  ;;  %6683 = vlog2.f32 %v4635_v21 }
 0xb34   : > { %v6672_v3 = vpop.eup %6671  ;;  %v4712_v45 = vsub.f32 %v8866_v39, %v4653_v62  ;;  %6685 = vlog2.f32 %v4597_v22 }
 0xb35   : > { %v6674_v4 = vpop.eup %6673  ;;  %4763 = vst [vmem:[#allocation11 + $0xb8] sm:$0xff] %v4731_v14  ;;  %v4655_v2 = vmul.f32 0.6931472, %v6672_v3 }
 0xb36   : > { %4744 = vst [vmem:[#allocation11 + $0x20] sm:$0xff] %v4712_v45  ;;  %v4685_v47 = vmul.f32 0.6931472, %v6674_v4  ;;  %v4599_v12 = vpop.xlane.xlu1 %4598 }
 0xb37   : > { %v4629_v52 = vpop.xlane.xlu0 %4628  ;;  %v4713_v26 = vsub.f32 %v8863_v31, %v4655_v2  ;;  %6687 = vlog2.f32 %v4599_v12 }
 0xb38   : > { %v6676_v30 = vpop.eup %6675  ;;  %v4728_v37 = vsub.f32 %v8874_v42, %v4685_v47  ;;  %6689 = vlog2.f32 %v4629_v52 }
 0xb39   : > { %v6678_v54 = vpop.eup %6677  ;;  %4745 = vst [vmem:[#allocation11 + $0x28] sm:$0xff] %v4713_v26  ;;  %v4687_v33 = vmul.f32 0.6931472, %v6676_v30 }
 0xb3a   : > { %4760 = vst [vmem:[#allocation11 + $0xa0] sm:$0xff] %v4728_v37  ;;  %v4665_v39 = vmul.f32 0.6931472, %v6678_v54  ;;  %v4631_v27 = vpop.xlane.xlu1 %4630 }
 0xb3b   : > { %v4609_v16 = vpop.xlane.xlu0 %4608  ;;  %v4729_v50 = vsub.f32 %v8871_v29, %v4687_v33  ;;  %6691 = vlog2.f32 %v4631_v27 }
 0xb3c   : > { %v6680_v43 = vpop.eup %6679  ;;  %v4718_v20 = vsub.f32 %v8882_v55, %v4665_v39  ;;  %6693 = vlog2.f32 %v4609_v16 }
 0xb3d   : > { %v6682_v31 = vpop.eup %6681  ;;  %4761 = vst [vmem:[#allocation11 + $0xa8] sm:$0xff] %v4729_v50  ;;  %v4667_v19 = vmul.f32 0.6931472, %v6680_v43 }
 0xb3e   : > { %4750 = vst [vmem:[#allocation11 + $0x50] sm:$0xff] %v4718_v20  ;;  %v4697_v42 = vmul.f32 0.6931472, %v6682_v31  ;;  %v4611_v35 = vpop.xlane.xlu1 %4610 }
 0xb3f   : > { %v4605_v61 = vpop.xlane.xlu0 %4604  ;;  %v4719_v53 = vsub.f32 %v8879_v25, %v4667_v19  ;;  %6695 = vlog2.f32 %v4611_v35 }
 0xb40   : > { %v6684_v48 = vpop.eup %6683  ;;  %v4734_v60 = vsub.f32 %v8890_v6, %v4697_v42  ;;  %6697 = vlog2.f32 %v4605_v61 }
 0xb41   : > { %v6686_v29 = vpop.eup %6685  ;;  %4751 = vst [vmem:[#allocation11 + $0x58] sm:$0xff] %v4719_v53  ;;  %v4699_v10 = vmul.f32 0.6931472, %v6684_v48 }
 0xb42   : > { %4766 = vst [vmem:[#allocation11 + $0xd0] sm:$0xff] %v4734_v60  ;;  %v4661_v55 = vmul.f32 0.6931472, %v6686_v29  ;;  %v4607_v15 = vpop.xlane.xlu1 %4606 }
 0xb43   : > { %v4637_v8 = vpop.xlane.xlu0 %4636  ;;  %v4735_v13 = vsub.f32 %v8887_v11, %v4699_v10  ;;  %6699 = vlog2.f32 %v4607_v15 }
 0xb44   : > { %v6688_v40 = vpop.eup %6687  ;;  %v4716_v17 = vsub.f32 %v8898_v51, %v4661_v55  ;;  %6701 = vlog2.f32 %v4637_v8 }
 0xb45   : > { %v6690_v25 = vpop.eup %6689  ;;  %4767 = vst [vmem:[#allocation11 + $0xd8] sm:$0xff] %v4735_v13  ;;  %v4663_v44 = vmul.f32 0.6931472, %v6688_v40 }
 0xb46   : > { %4748 = vst [vmem:[#allocation11 + $0x40] sm:$0xff] %v4716_v17  ;;  %v4693_v6 = vmul.f32 0.6931472, %v6690_v25  ;;  %v4639_v28 = vpop.xlane.xlu1 %4638 }
 0xb47   : > { %v4641_v7 = vpop.xlane.xlu0 %4640  ;;  %v4717_v34 = vsub.f32 %v8895_v56, %v4663_v44  ;;  %6703 = vlog2.f32 %v4639_v28 }
 0xb48   : > { %v6692_v36 = vpop.eup %6691  ;;  %v4732_v41 = vsub.f32 %v8906_v23, %v4693_v6  ;;  %6705 = vlog2.f32 %v4641_v7 }
 0xb49   : > { %v6694_v11 = vpop.eup %6693  ;;  %4749 = vst [vmem:[#allocation11 + $0x48] sm:$0xff] %v4717_v34  ;;  %v4695_v18 = vmul.f32 0.6931472, %v6692_v36 }
 0xb4a   : > { %4764 = vst [vmem:[#allocation11 + $0xc0] sm:$0xff] %v4732_v41  ;;  %v4673_v51 = vmul.f32 0.6931472, %v6694_v11  ;;  %v4643_v24 = vpop.xlane.xlu1 %4642 }
 0xb4b   : > { %v4733_v58 = vsub.f32 %v8903_v5, %v4695_v18  ;;  %6707 = vlog2.f32 %v4643_v24 }
 0xb4c   : > { %v6696_v32 = vpop.eup %6695  ;;  %v4722_v63 = vsub.f32 %v8914_v9, %v4673_v51 }
 0xb4d   : > { %v6698_v62 = vpop.eup %6697  ;;  %4765 = vst [vmem:[#allocation11 + $0xc8] sm:$0xff] %v4733_v58  ;;  %v4675_v56 = vmul.f32 0.6931472, %v6696_v32 }
 0xb4e   : > { %4754 = vst [vmem:[#allocation11 + $0x70] sm:$0xff] %v4722_v63  ;;  %v4669_v21 = vmul.f32 0.6931472, %v6698_v62 }
 0xb4f   : > { %v4723_v23 = vsub.f32 %v8911_v59, %v4675_v56 }
 0xb50   : > { %v6700_v22 = vpop.eup %6699  ;;  %v4720_v14 = vsub.f32 %v8922_v49, %v4669_v21 }
 0xb51   : > { %v6702_v3 = vpop.eup %6701  ;;  %4755 = vst [vmem:[#allocation11 + $0x78] sm:$0xff] %v4723_v23  ;;  %v4671_v45 = vmul.f32 0.6931472, %v6700_v22 }
 0xb52   : > { %4752 = vst [vmem:[#allocation11 + $0x60] sm:$0xff] %v4720_v14  ;;  %v4701_v4 = vmul.f32 0.6931472, %v6702_v3 }
 0xb53   : > { %v4721_v5 = vsub.f32 %v8919_v0, %v4671_v45 }
 0xb54   : > { %v6704_v2 = vpop.eup %6703  ;;  %v4736_v9 = vsub.f32 %v8930_v46, %v4701_v4 }
 0xb55   : > { %v6706_v47 = vpop.eup %6705  ;;  %4753 = vst [vmem:[#allocation11 + $0x68] sm:$0xff] %v4721_v5  ;;  %v4703_v12 = vmul.f32 0.6931472, %v6704_v2 }
 0xb56   : > { %4768 = vst [vmem:[#allocation11 + $0xe0] sm:$0xff] %v4736_v9  ;;  %v4705_v52 = vmul.f32 0.6931472, %v6706_v47 }
 0xb57   : > { %v4737_v59 = vsub.f32 %v8927_v1, %v4703_v12 }
 0xb58   : > { %v6708_v26 = vpop.eup %6707  ;;  %v4738_v49 = vsub.f32 %v8935_v38, %v4705_v52 }
 0xb59   : > { %4769 = vst [vmem:[#allocation11 + $0xe8] sm:$0xff] %v4737_v59  ;;  %v4707_v30 = vmul.f32 0.6931472, %v6708_v26 }
 0xb5a   : > { %4770 = vst [vmem:[#allocation11 + $0xf0] sm:$0xff] %v4738_v49 }
 0xb5b   : > { %v4739_v37 = vsub.f32 %v8938_v57, %v4707_v30 }
 0xb5d   : > { %4771 = vst [vmem:[#allocation11 + $0xf8] sm:$0xff] %v4739_v37 }
 0xb5e PF: > { %p8976_p1 = scmp.eq.s32.totalorder %s4889_s12, 4  ;;  %s6856_s23 = smov [#allocation11]  }
 0xb5f   : > { %s4781_s24 = sshll.u32 %s6856_s23, 4  ;;  %s4782_s24 = int_to_ptr.vmem [resolvable:$true] %s4781_s24 }
 0xb60   : > { %s6787_s25 = scalar_lea.vmem %s4782_s24, 4096  ;;  %p6794_p2 = scmp.lt.s32.totalorder %s4782_s24, %s4782_s24 }
 0xb61   : > { %p6788_p4 = scmp.ne.s32.totalorder %s4782_s24, %s6787_s25  ;;  %p6795_p3 = scmp.lt.s32.totalorder %s6787_s25, %s6787_s25 }
 0xb63   : > { %p6789_p8 = pnand %p6788_p4, %p8976_p1  ;;  %p6796_p5 = por %p6795_p3, %p6794_p2 }
 0xb65   : > { %p6790_p9 = pneg %p6789_p8 }
 0xb67   : > { %p6797_p7 = pnand %p6796_p5, %p6790_p9 }
 0xb69   : > { %6800 = shalt.err (!%p6797_p7)
}
 0xb6a   : > { %s6857_s26 = smov 128   ;;  %s6858_s12 = smov 8  }
 0xb6b   : > { %6326 = dma.vmem_to_hbm [thread:$0]  (%p8976_p1), %s4782_s24, 4096, %s9009_s9, [#allocation7], %s6857_s26, %s6857_s26, %s6858_s12  }
 0xb6c   : > { %6832 = dma.done.wait (%p8976_p1), [#allocation7], 4096  }
 0xb6d   : > { %6834 = vsyncadd (%p8976_p1), [#allocation7], 4294963200 }
 0xb6e PF: > { %s22_s11 = sadd.s32 1, %s6845_s11   ;;  %s9115_s30 = smov %s6841_s10 }
 0xb6f   : > { %p19_p10 = scmp.ge.s32.totalorder %s22_s11, 7   ;;  %s9116_s10 = smov %s9118_s18 }
 0xb71   :  { %21 = sbr.rel (!%p19_p10) target bundleno = 4 (0x4), region = 141 }
 0xb76   :  { %4797 = vsyncpa [#allocation6], 1 }
 0xb77   :  { %4799 = vsyncpa [#allocation6 + $0x1], 1 }
 0xb78   :  { %4800 = vsyncpa [#allocation9], 1 }
 0xb79   :  { %4801 = vsyncpa [#allocation7], 1 }
 0xb7a   :  { %4803 = vsyncpa [#allocation7 + $0x1], 1 }

</bundles_post_ra>
